<compile_context>
chip_gen: v7x
topology: tpu7x:2x2x1
jax: 0.10.0
libtpu: 0.0.40
codegen_flags: <defaults>
</compile_context>

<pallas_src>
import functools

import jax
import jax.numpy as jnp
from jax import lax
from jax.experimental import pallas as pl
from jax.experimental.pallas import tpu as pltpu

CPAD = 128  # channel padding = lane width -> lane-dense loads/stores


# ---------------------------------------------------------------------------
# Pallas kernel: in-kernel patch formation + MXU matmul + bias + Hardswish
# ---------------------------------------------------------------------------
def _conv_bn_hswish_kernel(x_ref, w_ref, b_ref, o_ref, acc_ref, *, kh, kw, H, W):
    # x_ref : (1, H+2p, W+2p, Cp)  bf16 halo tile (one image)
    # w_ref : (kh*kw, Cp, CPAD)    bf16 weight, BN scale folded, channel-padded
    # b_ref : (1, CPAD)            f32 folded BN bias (zero on padded channels)
    # o_ref : (1, H, W, CPAD)      bf16 output (lane-dense)
    # acc_ref: (H*W, CPAD)         f32 VMEM accumulator
    Cp = x_ref.shape[-1]
    acc_ref[...] = jnp.zeros_like(acc_ref)
    for tap in range(kh * kw):                      # static unroll, <= 9 taps
        di, dj = tap // kw, tap % kw
        patch = x_ref[0, di:di + H, dj:dj + W, :].reshape(H * W, Cp)
        acc_ref[...] += jnp.dot(patch, w_ref[tap],
                                preferred_element_type=jnp.float32)
    y = acc_ref[...] + b_ref[...]                   # f32 epilogue
    y = y * jnp.clip(y + 3.0, 0.0, 6.0) * (1.0 / 6.0)   # Hardswish
    o_ref[...] = y.reshape(1, H, W, CPAD).astype(o_ref.dtype)


def conv_bn_hswish(x, layer):
    """x: (N, H, W, Cp) bf16, channel-padded.  Returns (N, H, W, CPAD) bf16."""
    N, H, W, Cp = x.shape
    kh, kw, pad = layer["kh"], layer["kw"], layer["pad"]
    assert Cp == layer["cin_pad"]
    xp = jnp.pad(x, ((0, 0), (pad, pad), (pad, pad), (0, 0)))   # spatial halo
    Hp, Wp = H + 2 * pad, W + 2 * pad
    w_pad, bias_pad = layer["w_pad"], layer["bias_pad"]

    kern = functools.partial(_conv_bn_hswish_kernel, kh=kh, kw=kw, H=H, W=W)
    flops = 2 * N * H * W * kh * kw * layer["cin"] * layer["cout"]
    bytes_accessed = (xp.size * 2 + w_pad.size * 2 + bias_pad.size * 4
                      + N * H * W * CPAD * 2)

    return pl.pallas_call(
        kern,
        out_shape=jax.ShapeDtypeStruct((N, H, W, CPAD), jnp.bfloat16),
        grid_spec=pltpu.PrefetchScalarGridSpec(
            num_scalar_prefetch=0,
            grid=(N,),                               # one image per grid step
            in_specs=[
                pl.BlockSpec((1, Hp, Wp, Cp), lambda n: (n, 0, 0, 0)),
                pl.BlockSpec((kh * kw, Cp, CPAD), lambda n: (0, 0, 0)),
                pl.BlockSpec((1, CPAD), lambda n: (0, 0)),
            ],
            out_specs=pl.BlockSpec((1, H, W, CPAD), lambda n: (n, 0, 0, 0)),
            scratch_shapes=[pltpu.VMEM((H * W, CPAD), jnp.float32)],
        ),
        compiler_params=pltpu.CompilerParams(
            dimension_semantics=("parallel",)),      # both TCs on v7x
        cost_estimate=pl.CostEstimate(flops=flops, transcendentals=0,
                                      bytes_accessed=bytes_accessed),
    )(xp, w_pad, bias_pad)


# ---------------------------------------------------------------------------
# YoloBody.forward semantics (activations carried bf16 / channel-padded NHWC)
# ---------------------------------------------------------------------------
def yolo_body_forward(x_nchw, layers, save_list):
    N, Cin, H, W = x_nchw.shape
    out = jnp.transpose(x_nchw, (0, 2, 3, 1))                       # NHWC
    out = jnp.pad(out, ((0, 0), (0, 0), (0, 0), (0, CPAD - Cin)))
    out = out.astype(jnp.bfloat16)
    y = []
    last_real = Cin
    for i, m in enumerate(layers):
        if m["f"] > 0:
            # torch.cat([out, y[sorted(save_list).index(m.f)]], dim=1)
            # (padded 128-channel blocks are concatenated; the next conv's
            #  padded weight maps its real input channels onto the blocks)
            out = jnp.concatenate(
                [out, y[sorted(save_list).index(m["f"])]], axis=-1)
        else:
            out = conv_bn_hswish(out, m)
            last_real = m["cout"]
        if i in save_list:
            y.append(out)
    # last layer is a conv here; slice its real channels, back to f32 NCHW
    out = out[..., :last_real].astype(jnp.float32)
    return jnp.transpose(out, (0, 3, 1, 2))


# ---------------------------------------------------------------------------
# Deterministic synthetic parameters (BN folded + channel-padded at build time)
# ---------------------------------------------------------------------------
def make_conv_layer(key, cin, cout, ksize, pad, in_segments, cin_pad, f=-1):
    k1, k2, k3, k4, k5 = jax.random.split(key, 5)
    kh, kw = ksize
    weight = 0.1 * jax.random.normal(k1, (kh, kw, cin, cout), jnp.float32)
    gamma = 1.0 + 0.1 * jax.random.normal(k2, (cout,), jnp.float32)
    beta = 0.1 * jax.random.normal(k3, (cout,), jnp.float32)
    running_mean = 0.05 * jax.random.normal(k4, (cout,), jnp.float32)
    running_var = jnp.abs(0.1 * jax.random.normal(k5, (cout,), jnp.float32)) + 1.0
    eps = 0.001                                  # set by _initialize_weights
    scale = gamma / jnp.sqrt(running_var + eps)  # inference-mode BN folding
    bias = beta - running_mean * scale

    w_fold = weight * scale[None, None, None, :]            # scale into weight
    # channel-padded, lane-dense kernel operands; `in_segments` says where the
    # real input channels live in the padded (possibly concatenated) input.
    w_r = w_fold.reshape(kh * kw, cin, cout)
    w_pad = jnp.zeros((kh * kw, cin_pad, CPAD), jnp.float32)
    c = 0
    for off, cnt in in_segments:
        w_pad = w_pad.at[:, off:off + cnt, :cout].set(w_r[:, c:c + cnt, :])
        c += cnt
    bias_pad = jnp.zeros((1, CPAD), jnp.float32).at[0, :cout].set(bias)

    return dict(type="conv", f=f, kh=kh, kw=kw, pad=pad, cin=cin, cout=cout,
                cin_pad=cin_pad,
                w_pad=w_pad.astype(jnp.bfloat16),
                bias_pad=bias_pad,
                # unpadded f32 params for the pure-JAX reference
                w_ref=w_fold, b_ref=bias)


# Pure-JAX f32 reference (same forward-loop semantics) for validation.
def reference_forward(x_nchw, layers, save_list):
    out = jnp.transpose(x_nchw, (0, 2, 3, 1))
    y = []
    for i, m in enumerate(layers):
        if m["f"] > 0:
            out = jnp.concatenate(
                [out, y[sorted(save_list).index(m["f"])]], axis=-1)
        else:
            o = lax.conv_general_dilated(
                out, m["w_ref"], window_strides=(1, 1),
                padding=[(m["pad"], m["pad"])] * 2,
                dimension_numbers=("NHWC", "HWIO", "NHWC"))
            o = o + m["b_ref"]
            out = o * jnp.clip(o + 3.0, 0.0, 6.0) / 6.0
        if i in save_list:
            y.append(out)
    return jnp.transpose(out, (0, 3, 1, 2))


if __name__ == "__main__":
    key = jax.random.PRNGKey(0)
    N, Cin, H, W = 2, 4, 16, 16
    x = jax.random.normal(jax.random.fold_in(key, 999), (N, Cin, H, W),
                          jnp.float32)

    # Representative body: Conv stack + one concat route back to layer 1.
    save_list = [1]
    layers = [
        make_conv_layer(jax.random.fold_in(key, 0), 4, 8, (3, 3), 1,
                        in_segments=[(0, 4)], cin_pad=CPAD, f=-1),        # 0
        make_conv_layer(jax.random.fold_in(key, 1), 8, 8, (3, 3), 1,
                        in_segments=[(0, 8)], cin_pad=CPAD, f=-1),        # 1 (saved)
        make_conv_layer(jax.random.fold_in(key, 2), 8, 8, (3, 3), 1,
                        in_segments=[(0, 8)], cin_pad=CPAD, f=-1),        # 2
        dict(type="concat", f=1),                                         # 3
        make_conv_layer(jax.random.fold_in(key, 4), 16, 8, (1, 1), 0,
                        in_segments=[(0, 8), (CPAD, 8)], cin_pad=2 * CPAD,
                        f=-1),                                            # 4
    ]

    out = yolo_body_forward(x, layers, save_list)
    out = jax.block_until_ready(out)
    assert out.shape == (N, 8, H, W) and out.dtype == jnp.float32

    ref = jax.block_until_ready(reference_forward(x, layers, save_list))
    rel_err = float(jnp.max(jnp.abs(out - ref)) /
                    (jnp.max(jnp.abs(ref)) + 1e-6))
    assert rel_err < 0.1, f"mismatch vs f32 reference: rel-err={rel_err}"
    print("KERNEL_OK")
</pallas_src>

<mosaic_0001>
module attributes {stable_mosaic.version = 11 : i64} {
  func.func @_conv_bn_hswish_kernel(%arg0: i32, %arg1: memref<1x18x18x128xbf16, #tpu.memory_space<vmem>>, %arg2: memref<9x128x128xbf16, #tpu.memory_space<vmem>>, %arg3: memref<1x128xf32, #tpu.memory_space<vmem>>, %arg4: memref<1x16x16x128xbf16, #tpu.memory_space<vmem>>, %arg5: memref<256x128xf32, #tpu.memory_space<vmem>>) attributes {dimension_semantics = [#tpu.dimension_semantics<parallel>], iteration_bounds = array<i64: 2>, scalar_prefetch = 0 : i64, scratch_operands = 1 : i64, tpu.core_type = #tpu.core_type<tc>, window_params = [{transform_indices = @transform_0, window_bounds = array<i64: 1, 18, 18, 128>}, {pipeline_mode = #tpu.pipeline_mode<synchronous>, transform_indices = @transform_1, window_bounds = array<i64: 9, 128, 128>}, {pipeline_mode = #tpu.pipeline_mode<synchronous>, transform_indices = @transform_2, window_bounds = array<i64: 1, 128>}, {transform_indices = @transform_3, window_bounds = array<i64: 1, 16, 16, 128>}]} {
    %cst = arith.constant 0.000000e+00 : f32
    %0 = vector.broadcast %cst : f32 to vector<256x128xf32>
    %c0 = arith.constant 0 : index
    %c0_0 = arith.constant 0 : index
    %1 = vector.load %arg5[%c0, %c0_0] : memref<256x128xf32, #tpu.memory_space<vmem>>, vector<256x128xf32>
    tpu.vector_store %arg5[%c0, %c0_0], %0 {strides = array<i32>} : memref<256x128xf32, #tpu.memory_space<vmem>>, vector<256x128xf32>,
    %c0_1 = arith.constant 0 : index
    %c0_2 = arith.constant 0 : index
    %c0_3 = arith.constant 0 : index
    %c0_4 = arith.constant 0 : index
    %2 = vector.load %arg1[%c0_1, %c0_2, %c0_3, %c0_4] : memref<1x18x18x128xbf16, #tpu.memory_space<vmem>>, vector<1x16x16x128xbf16>
    %3 = vector.shape_cast %2 : vector<1x16x16x128xbf16> to vector<16x16x128xbf16>
    %4 = vector.shape_cast %3 : vector<16x16x128xbf16> to vector<256x128xbf16>
    %c0_5 = arith.constant 0 : index
    %c0_6 = arith.constant 0 : index
    %5 = vector.load %arg5[%c0_5, %c0_6] : memref<256x128xf32, #tpu.memory_space<vmem>>, vector<256x128xf32>
    %c0_7 = arith.constant 0 : index
    %c0_8 = arith.constant 0 : index
    %c0_9 = arith.constant 0 : index
    %6 = vector.load %arg2[%c0_7, %c0_8, %c0_9] : memref<9x128x128xbf16, #tpu.memory_space<vmem>>, vector<1x128x128xbf16>
    %7 = vector.shape_cast %6 : vector<1x128x128xbf16> to vector<128x128xbf16>
    %cst_10 = arith.constant dense<0.000000e+00> : vector<256x128xf32>
    %8 = tpu.matmul %4, %7, %cst_10 {dimension_numbers = #tpu.dot_dimension_numbers<[1], [0], [0], [1], [0, 0, 1, 1], [], []>} : vector<256x128xbf16>, vector<128x128xbf16>, vector<256x128xf32> -> vector<256x128xf32>
    %9 = arith.addf %5, %8 : vector<256x128xf32>
    %c0_11 = arith.constant 0 : index
    %c0_12 = arith.constant 0 : index
    %10 = vector.load %arg5[%c0_11, %c0_12] : memref<256x128xf32, #tpu.memory_space<vmem>>, vector<256x128xf32>
    tpu.vector_store %arg5[%c0_11, %c0_12], %9 {strides = array<i32>} : memref<256x128xf32, #tpu.memory_space<vmem>>, vector<256x128xf32>,
    %c0_13 = arith.constant 0 : index
    %c0_14 = arith.constant 0 : index
    %c1 = arith.constant 1 : index
    %c0_15 = arith.constant 0 : index
    %11 = vector.load %arg1[%c0_13, %c0_14, %c1, %c0_15] : memref<1x18x18x128xbf16, #tpu.memory_space<vmem>>, vector<1x16x16x128xbf16>
    %12 = vector.shape_cast %11 : vector<1x16x16x128xbf16> to vector<16x16x128xbf16>
    %13 = vector.shape_cast %12 : vector<16x16x128xbf16> to vector<256x128xbf16>
    %c0_16 = arith.constant 0 : index
    %c0_17 = arith.constant 0 : index
    %14 = vector.load %arg5[%c0_16, %c0_17] : memref<256x128xf32, #tpu.memory_space<vmem>>, vector<256x128xf32>
    %c1_18 = arith.constant 1 : index
    %c0_19 = arith.constant 0 : index
    %c0_20 = arith.constant 0 : index
    %15 = vector.load %arg2[%c1_18, %c0_19, %c0_20] : memref<9x128x128xbf16, #tpu.memory_space<vmem>>, vector<1x128x128xbf16>
    %16 = vector.shape_cast %15 : vector<1x128x128xbf16> to vector<128x128xbf16>
    %cst_21 = arith.constant dense<0.000000e+00> : vector<256x128xf32>
    %17 = tpu.matmul %13, %16, %cst_21 {dimension_numbers = #tpu.dot_dimension_numbers<[1], [0], [0], [1], [0, 0, 1, 1], [], []>} : vector<256x128xbf16>, vector<128x128xbf16>, vector<256x128xf32> -> vector<256x128xf32>
    %18 = arith.addf %14, %17 : vector<256x128xf32>
    %c0_22 = arith.constant 0 : index
    %c0_23 = arith.constant 0 : index
    %19 = vector.load %arg5[%c0_22, %c0_23] : memref<256x128xf32, #tpu.memory_space<vmem>>, vector<256x128xf32>
    tpu.vector_store %arg5[%c0_22, %c0_23], %18 {strides = array<i32>} : memref<256x128xf32, #tpu.memory_space<vmem>>, vector<256x128xf32>,
    %c0_24 = arith.constant 0 : index
    %c0_25 = arith.constant 0 : index
    %c2 = arith.constant 2 : index
    %c0_26 = arith.constant 0 : index
    %20 = vector.load %arg1[%c0_24, %c0_25, %c2, %c0_26] : memref<1x18x18x128xbf16, #tpu.memory_space<vmem>>, vector<1x16x16x128xbf16>
    %21 = vector.shape_cast %20 : vector<1x16x16x128xbf16> to vector<16x16x128xbf16>
    %22 = vector.shape_cast %21 : vector<16x16x128xbf16> to vector<256x128xbf16>
    %c0_27 = arith.constant 0 : index
    %c0_28 = arith.constant 0 : index
    %23 = vector.load %arg5[%c0_27, %c0_28] : memref<256x128xf32, #tpu.memory_space<vmem>>, vector<256x128xf32>
    %c2_29 = arith.constant 2 : index
    %c0_30 = arith.constant 0 : index
    %c0_31 = arith.constant 0 : index
    %24 = vector.load %arg2[%c2_29, %c0_30, %c0_31] : memref<9x128x128xbf16, #tpu.memory_space<vmem>>, vector<1x128x128xbf16>
    %25 = vector.shape_cast %24 : vector<1x128x128xbf16> to vector<128x128xbf16>
    %cst_32 = arith.constant dense<0.000000e+00> : vector<256x128xf32>
    %26 = tpu.matmul %22, %25, %cst_32 {dimension_numbers = #tpu.dot_dimension_numbers<[1], [0], [0], [1], [0, 0, 1, 1], [], []>} : vector<256x128xbf16>, vector<128x128xbf16>, vector<256x128xf32> -> vector<256x128xf32>
    %27 = arith.addf %23, %26 : vector<256x128xf32>
    %c0_33 = arith.constant 0 : index
    %c0_34 = arith.constant 0 : index
    %28 = vector.load %arg5[%c0_33, %c0_34] : memref<256x128xf32, #tpu.memory_space<vmem>>, vector<256x128xf32>
    tpu.vector_store %arg5[%c0_33, %c0_34], %27 {strides = array<i32>} : memref<256x128xf32, #tpu.memory_space<vmem>>, vector<256x128xf32>,
    %c0_35 = arith.constant 0 : index
    %c1_36 = arith.constant 1 : index
    %c0_37 = arith.constant 0 : index
    %c0_38 = arith.constant 0 : index
    %29 = vector.load %arg1[%c0_35, %c1_36, %c0_37, %c0_38] : memref<1x18x18x128xbf16, #tpu.memory_space<vmem>>, vector<1x16x16x128xbf16>
    %30 = vector.shape_cast %29 : vector<1x16x16x128xbf16> to vector<16x16x128xbf16>
    %31 = vector.shape_cast %30 : vector<16x16x128xbf16> to vector<256x128xbf16>
    %c0_39 = arith.constant 0 : index
    %c0_40 = arith.constant 0 : index
    %32 = vector.load %arg5[%c0_39, %c0_40] : memref<256x128xf32, #tpu.memory_space<vmem>>, vector<256x128xf32>
    %c3 = arith.constant 3 : index
    %c0_41 = arith.constant 0 : index
    %c0_42 = arith.constant 0 : index
    %33 = vector.load %arg2[%c3, %c0_41, %c0_42] : memref<9x128x128xbf16, #tpu.memory_space<vmem>>, vector<1x128x128xbf16>
    %34 = vector.shape_cast %33 : vector<1x128x128xbf16> to vector<128x128xbf16>
    %cst_43 = arith.constant dense<0.000000e+00> : vector<256x128xf32>
    %35 = tpu.matmul %31, %34, %cst_43 {dimension_numbers = #tpu.dot_dimension_numbers<[1], [0], [0], [1], [0, 0, 1, 1], [], []>} : vector<256x128xbf16>, vector<128x128xbf16>, vector<256x128xf32> -> vector<256x128xf32>
    %36 = arith.addf %32, %35 : vector<256x128xf32>
    %c0_44 = arith.constant 0 : index
    %c0_45 = arith.constant 0 : index
    %37 = vector.load %arg5[%c0_44, %c0_45] : memref<256x128xf32, #tpu.memory_space<vmem>>, vector<256x128xf32>
    tpu.vector_store %arg5[%c0_44, %c0_45], %36 {strides = array<i32>} : memref<256x128xf32, #tpu.memory_space<vmem>>, vector<256x128xf32>,
    %c0_46 = arith.constant 0 : index
    %c1_47 = arith.constant 1 : index
    %c1_48 = arith.constant 1 : index
    %c0_49 = arith.constant 0 : index
    %38 = vector.load %arg1[%c0_46, %c1_47, %c1_48, %c0_49] : memref<1x18x18x128xbf16, #tpu.memory_space<vmem>>, vector<1x16x16x128xbf16>
    %39 = vector.shape_cast %38 : vector<1x16x16x128xbf16> to vector<16x16x128xbf16>
    %40 = vector.shape_cast %39 : vector<16x16x128xbf16> to vector<256x128xbf16>
    %c0_50 = arith.constant 0 : index
    %c0_51 = arith.constant 0 : index
    %41 = vector.load %arg5[%c0_50, %c0_51] : memref<256x128xf32, #tpu.memory_space<vmem>>, vector<256x128xf32>
    %c4 = arith.constant 4 : index
    %c0_52 = arith.constant 0 : index
    %c0_53 = arith.constant 0 : index
    %42 = vector.load %arg2[%c4, %c0_52, %c0_53] : memref<9x128x128xbf16, #tpu.memory_space<vmem>>, vector<1x128x128xbf16>
    %43 = vector.shape_cast %42 : vector<1x128x128xbf16> to vector<128x128xbf16>
    %cst_54 = arith.constant dense<0.000000e+00> : vector<256x128xf32>
    %44 = tpu.matmul %40, %43, %cst_54 {dimension_numbers = #tpu.dot_dimension_numbers<[1], [0], [0], [1], [0, 0, 1, 1], [], []>} : vector<256x128xbf16>, vector<128x128xbf16>, vector<256x128xf32> -> vector<256x128xf32>
    %45 = arith.addf %41, %44 : vector<256x128xf32>
    %c0_55 = arith.constant 0 : index
    %c0_56 = arith.constant 0 : index
    %46 = vector.load %arg5[%c0_55, %c0_56] : memref<256x128xf32, #tpu.memory_space<vmem>>, vector<256x128xf32>
    tpu.vector_store %arg5[%c0_55, %c0_56], %45 {strides = array<i32>} : memref<256x128xf32, #tpu.memory_space<vmem>>, vector<256x128xf32>,
    %c0_57 = arith.constant 0 : index
    %c1_58 = arith.constant 1 : index
    %c2_59 = arith.constant 2 : index
    %c0_60 = arith.constant 0 : index
    %47 = vector.load %arg1[%c0_57, %c1_58, %c2_59, %c0_60] : memref<1x18x18x128xbf16, #tpu.memory_space<vmem>>, vector<1x16x16x128xbf16>
    %48 = vector.shape_cast %47 : vector<1x16x16x128xbf16> to vector<16x16x128xbf16>
    %49 = vector.shape_cast %48 : vector<16x16x128xbf16> to vector<256x128xbf16>
    %c0_61 = arith.constant 0 : index
    %c0_62 = arith.constant 0 : index
    %50 = vector.load %arg5[%c0_61, %c0_62] : memref<256x128xf32, #tpu.memory_space<vmem>>, vector<256x128xf32>
    %c5 = arith.constant 5 : index
    %c0_63 = arith.constant 0 : index
    %c0_64 = arith.constant 0 : index
    %51 = vector.load %arg2[%c5, %c0_63, %c0_64] : memref<9x128x128xbf16, #tpu.memory_space<vmem>>, vector<1x128x128xbf16>
    %52 = vector.shape_cast %51 : vector<1x128x128xbf16> to vector<128x128xbf16>
    %cst_65 = arith.constant dense<0.000000e+00> : vector<256x128xf32>
    %53 = tpu.matmul %49, %52, %cst_65 {dimension_numbers = #tpu.dot_dimension_numbers<[1], [0], [0], [1], [0, 0, 1, 1], [], []>} : vector<256x128xbf16>, vector<128x128xbf16>, vector<256x128xf32> -> vector<256x128xf32>
    %54 = arith.addf %50, %53 : vector<256x128xf32>
    %c0_66 = arith.constant 0 : index
    %c0_67 = arith.constant 0 : index
    %55 = vector.load %arg5[%c0_66, %c0_67] : memref<256x128xf32, #tpu.memory_space<vmem>>, vector<256x128xf32>
    tpu.vector_store %arg5[%c0_66, %c0_67], %54 {strides = array<i32>} : memref<256x128xf32, #tpu.memory_space<vmem>>, vector<256x128xf32>,
    %c0_68 = arith.constant 0 : index
    %c2_69 = arith.constant 2 : index
    %c0_70 = arith.constant 0 : index
    %c0_71 = arith.constant 0 : index
    %56 = vector.load %arg1[%c0_68, %c2_69, %c0_70, %c0_71] : memref<1x18x18x128xbf16, #tpu.memory_space<vmem>>, vector<1x16x16x128xbf16>
    %57 = vector.shape_cast %56 : vector<1x16x16x128xbf16> to vector<16x16x128xbf16>
    %58 = vector.shape_cast %57 : vector<16x16x128xbf16> to vector<256x128xbf16>
    %c0_72 = arith.constant 0 : index
    %c0_73 = arith.constant 0 : index
    %59 = vector.load %arg5[%c0_72, %c0_73] : memref<256x128xf32, #tpu.memory_space<vmem>>, vector<256x128xf32>
    %c6 = arith.constant 6 : index
    %c0_74 = arith.constant 0 : index
    %c0_75 = arith.constant 0 : index
    %60 = vector.load %arg2[%c6, %c0_74, %c0_75] : memref<9x128x128xbf16, #tpu.memory_space<vmem>>, vector<1x128x128xbf16>
    %61 = vector.shape_cast %60 : vector<1x128x128xbf16> to vector<128x128xbf16>
    %cst_76 = arith.constant dense<0.000000e+00> : vector<256x128xf32>
    %62 = tpu.matmul %58, %61, %cst_76 {dimension_numbers = #tpu.dot_dimension_numbers<[1], [0], [0], [1], [0, 0, 1, 1], [], []>} : vector<256x128xbf16>, vector<128x128xbf16>, vector<256x128xf32> -> vector<256x128xf32>
    %63 = arith.addf %59, %62 : vector<256x128xf32>
    %c0_77 = arith.constant 0 : index
    %c0_78 = arith.constant 0 : index
    %64 = vector.load %arg5[%c0_77, %c0_78] : memref<256x128xf32, #tpu.memory_space<vmem>>, vector<256x128xf32>
    tpu.vector_store %arg5[%c0_77, %c0_78], %63 {strides = array<i32>} : memref<256x128xf32, #tpu.memory_space<vmem>>, vector<256x128xf32>,
    %c0_79 = arith.constant 0 : index
    %c2_80 = arith.constant 2 : index
    %c1_81 = arith.constant 1 : index
    %c0_82 = arith.constant 0 : index
    %65 = vector.load %arg1[%c0_79, %c2_80, %c1_81, %c0_82] : memref<1x18x18x128xbf16, #tpu.memory_space<vmem>>, vector<1x16x16x128xbf16>
    %66 = vector.shape_cast %65 : vector<1x16x16x128xbf16> to vector<16x16x128xbf16>
    %67 = vector.shape_cast %66 : vector<16x16x128xbf16> to vector<256x128xbf16>
    %c0_83 = arith.constant 0 : index
    %c0_84 = arith.constant 0 : index
    %68 = vector.load %arg5[%c0_83, %c0_84] : memref<256x128xf32, #tpu.memory_space<vmem>>, vector<256x128xf32>
    %c7 = arith.constant 7 : index
    %c0_85 = arith.constant 0 : index
    %c0_86 = arith.constant 0 : index
    %69 = vector.load %arg2[%c7, %c0_85, %c0_86] : memref<9x128x128xbf16, #tpu.memory_space<vmem>>, vector<1x128x128xbf16>
    %70 = vector.shape_cast %69 : vector<1x128x128xbf16> to vector<128x128xbf16>
    %cst_87 = arith.constant dense<0.000000e+00> : vector<256x128xf32>
    %71 = tpu.matmul %67, %70, %cst_87 {dimension_numbers = #tpu.dot_dimension_numbers<[1], [0], [0], [1], [0, 0, 1, 1], [], []>} : vector<256x128xbf16>, vector<128x128xbf16>, vector<256x128xf32> -> vector<256x128xf32>
    %72 = arith.addf %68, %71 : vector<256x128xf32>
    %c0_88 = arith.constant 0 : index
    %c0_89 = arith.constant 0 : index
    %73 = vector.load %arg5[%c0_88, %c0_89] : memref<256x128xf32, #tpu.memory_space<vmem>>, vector<256x128xf32>
    tpu.vector_store %arg5[%c0_88, %c0_89], %72 {strides = array<i32>} : memref<256x128xf32, #tpu.memory_space<vmem>>, vector<256x128xf32>,
    %c0_90 = arith.constant 0 : index
    %c2_91 = arith.constant 2 : index
    %c2_92 = arith.constant 2 : index
    %c0_93 = arith.constant 0 : index
    %74 = vector.load %arg1[%c0_90, %c2_91, %c2_92, %c0_93] : memref<1x18x18x128xbf16, #tpu.memory_space<vmem>>, vector<1x16x16x128xbf16>
    %75 = vector.shape_cast %74 : vector<1x16x16x128xbf16> to vector<16x16x128xbf16>
    %76 = vector.shape_cast %75 : vector<16x16x128xbf16> to vector<256x128xbf16>
    %c0_94 = arith.constant 0 : index
    %c0_95 = arith.constant 0 : index
    %77 = vector.load %arg5[%c0_94, %c0_95] : memref<256x128xf32, #tpu.memory_space<vmem>>, vector<256x128xf32>
    %c8 = arith.constant 8 : index
    %c0_96 = arith.constant 0 : index
    %c0_97 = arith.constant 0 : index
    %78 = vector.load %arg2[%c8, %c0_96, %c0_97] : memref<9x128x128xbf16, #tpu.memory_space<vmem>>, vector<1x128x128xbf16>
    %79 = vector.shape_cast %78 : vector<1x128x128xbf16> to vector<128x128xbf16>
    %cst_98 = arith.constant dense<0.000000e+00> : vector<256x128xf32>
    %80 = tpu.matmul %76, %79, %cst_98 {dimension_numbers = #tpu.dot_dimension_numbers<[1], [0], [0], [1], [0, 0, 1, 1], [], []>} : vector<256x128xbf16>, vector<128x128xbf16>, vector<256x128xf32> -> vector<256x128xf32>
    %81 = arith.addf %77, %80 : vector<256x128xf32>
    %c0_99 = arith.constant 0 : index
    %c0_100 = arith.constant 0 : index
    %82 = vector.load %arg5[%c0_99, %c0_100] : memref<256x128xf32, #tpu.memory_space<vmem>>, vector<256x128xf32>
    tpu.vector_store %arg5[%c0_99, %c0_100], %81 {strides = array<i32>} : memref<256x128xf32, #tpu.memory_space<vmem>>, vector<256x128xf32>,
    %c0_101 = arith.constant 0 : index
    %c0_102 = arith.constant 0 : index
    %83 = vector.load %arg5[%c0_101, %c0_102] : memref<256x128xf32, #tpu.memory_space<vmem>>, vector<256x128xf32>
    %c0_103 = arith.constant 0 : index
    %c0_104 = arith.constant 0 : index
    %84 = vector.load %arg3[%c0_103, %c0_104] : memref<1x128xf32, #tpu.memory_space<vmem>>, vector<1x128xf32>
    %85 = vector.broadcast %84 : vector<1x128xf32> to vector<256x128xf32>
    %86 = arith.addf %83, %85 : vector<256x128xf32>
    %cst_105 = arith.constant 3.000000e+00 : f32
    %87 = vector.broadcast %cst_105 : f32 to vector<256x128xf32>
    %88 = arith.addf %86, %87 : vector<256x128xf32>
    %cst_106 = arith.constant 0.000000e+00 : f32
    %cst_107 = arith.constant 6.000000e+00 : f32
    %89 = vector.broadcast %cst_106 : f32 to vector<256x128xf32>
    %90 = arith.maximumf %89, %88 : vector<256x128xf32>
    %91 = vector.broadcast %cst_107 : f32 to vector<256x128xf32>
    %92 = arith.minimumf %91, %90 : vector<256x128xf32>
    %93 = arith.mulf %86, %92 : vector<256x128xf32>
    %cst_108 = arith.constant 0.166666672 : f32
    %94 = vector.broadcast %cst_108 : f32 to vector<256x128xf32>
    %95 = arith.mulf %93, %94 : vector<256x128xf32>
    %96 = vector.shape_cast %95 : vector<256x128xf32> to vector<1x16x16x128xf32>
    %97 = arith.truncf %96 : vector<1x16x16x128xf32> to vector<1x16x16x128xbf16>
    %c0_109 = arith.constant 0 : index
    %c0_110 = arith.constant 0 : index
    %c0_111 = arith.constant 0 : index
    %c0_112 = arith.constant 0 : index
    %98 = vector.load %arg4[%c0_109, %c0_110, %c0_111, %c0_112] : memref<1x16x16x128xbf16, #tpu.memory_space<vmem>>, vector<1x16x16x128xbf16>
    tpu.vector_store %arg4[%c0_109, %c0_110, %c0_111, %c0_112], %97 {strides = array<i32>} : memref<1x16x16x128xbf16, #tpu.memory_space<vmem>>, vector<1x16x16x128xbf16>,
    return
  }
  func.func @transform_0(%arg0: i32) -> (i32, i32, i32, i32) {
    %c0_i32 = arith.constant 0 : i32
    %c0_i32_0 = arith.constant 0 : i32
    %c0_i32_1 = arith.constant 0 : i32
    %c0_i32_2 = arith.constant 0 : i32
    return %arg0, %c0_i32, %c0_i32_0, %c0_i32_1 : i32, i32, i32, i32
  }
  func.func @transform_1(%arg0: i32) -> (i32, i32, i32) {
    %c0_i32 = arith.constant 0 : i32
    %c0_i32_0 = arith.constant 0 : i32
    %c0_i32_1 = arith.constant 0 : i32
    %c0_i32_2 = arith.constant 0 : i32
    return %c0_i32, %c0_i32_0, %c0_i32_1 : i32, i32, i32
  }
  func.func @transform_2(%arg0: i32) -> (i32, i32) {
    %c0_i32 = arith.constant 0 : i32
    %c0_i32_0 = arith.constant 0 : i32
    %c0_i32_1 = arith.constant 0 : i32
    return %c0_i32, %c0_i32_0 : i32, i32
  }
  func.func @transform_3(%arg0: i32) -> (i32, i32, i32, i32) {
    %c0_i32 = arith.constant 0 : i32
    %c0_i32_0 = arith.constant 0 : i32
    %c0_i32_1 = arith.constant 0 : i32
    %c0_i32_2 = arith.constant 0 : i32
    return %arg0, %c0_i32, %c0_i32_0, %c0_i32_1 : i32, i32, i32, i32
  }
}

</mosaic_0001>

<bundles_post_ra>
// kernel: tpu_custom_call.1
= control target key start
LH: loop header
LB: loop body
LE: loop exit
PB: predicated region body
PF: predicated region fallthrough
CT: control target
= control target key end

     0   :  { %8 = vsyncpa [#allocation4], 0  ;;  %s9521_s0 = inlined_call_operand.vmem [shape: bf16[2,18,18,128], index: 0, kind: input, shape index: {}]   ;;  %s9522_s1 = inlined_call_operand.vmem [shape: bf16[9,128,128], index: 1, kind: input, shape index: {}]   ;;  %s9523_s2 = inlined_call_operand.vmem [shape: f32[1,128], index: 2, kind: input, shape index: {}]   ;;  %s9524_s3 = inlined_call_operand.hbm [shape: bf16[2,16,16,128], index: 3, kind: output, shape index: {}]  }
   0x1   :  { %10 = vsyncpa [#allocation4 + $0x1], 0  ;;  %s8259_s12 = smov 0   ;;  %s8261_s13 = smov 0  }
   0x2   :  { %s8263_s14 = smov 0   ;;  %s8265_s15 = smov 0  }
   0x3 LB: > { %s8280_s16 = sadd.s32 4294967295, %s8234_s15   ;;  %s6262_s17 = sadd.s32 4294967294, %s8234_s15   ;;  %s8234_s15 = sphi %s8265_s15, %s9534_s15   ;;  %s8230_s14 = sphi %s8263_s14, %s9533_s14   ;;  %s8226_s13 = sphi %s8261_s13, %s9532_s13   ;;  %s8222_s12 = sphi %s8259_s12, %s9531_s12  }
   0x4   : > { %s8284_s18 = sadd.s32 1, %s8234_s15   ;;  %s91_s19 = sadd.s32 1, %s8230_s14 }
   0x5   : > { %s88_s20 = ssub.s32 %s8234_s15, %s8284_s18  ;;  %p101_p0 = scmp.ne.s32.totalorder %s8230_s14, %s8226_s13 }
   0x6   : > { %p89_p1 = scmp.eq.s32.totalorder %s88_s20, 0  ;;  %p102_p2 = scmp.eq.s32.totalorder %s8280_s16, 1 }
   0x7   : > { %p107_p3 = scmp.ne.s32.totalorder %s8226_s13, %s8222_s12  ;;  %p108_p4 = scmp.eq.s32.totalorder %s6262_s17, 1 }
   0x8   : > { %s8295_s21 = scalar_select %p89_p1, %s8230_s14, %s91_s19  }
   0x9   : > { %p8297_p5 = por %p102_p2, %p101_p0  ;;  %p8301_p6 = por %p108_p4, %p107_p3 }
   0xa   : > { %p6265_p7 = scmp.ge.s32.totalorder %s8234_s15, 1  ;;  %p140_p8 = scmp.lt.s32.totalorder %s8234_s15, 3 }
   0xc   : > { %p141_p9 = pnand %p6265_p7, %p140_p8 }
   0xd   : > { %v8044_v0 = vld [vmem:[%s9522_s1] sm:$0xff] (!%p141_p9)   ;;  %v8046_v2 = vld [vmem:[%s9522_s1 + $0x8] sm:$0xff] (!%p141_p9)   ;;  %p164_p10 = scmp.lt.s32.totalorder (!%p141_p9), %s8280_s16, 1  ;;  %v8048_v4 = vld [vmem:[%s9522_s1 + $0x10] sm:$0xff] (!%p141_p9)   ;;  %vm699_vm0 = vsmask.f32 (!%p141_p9), 3328 }
   0xe   : > { %144 = sbr.rel (%p141_p9) target bundleno = 587 (0x24b), region = 32  ;;  %v8045_v1 = vld [vmem:[%s9522_s1 + $0x100] sm:$0xff] (!%p141_p9)   ;;  %7298 = vmatprep.subr.bf16.mxu1 (!%p141_p9), %v8044_v0  ;;  %v8047_v3 = vld [vmem:[%s9522_s1 + $0x108] sm:$0xff] (!%p141_p9)   ;;  %v8049_v5 = vld [vmem:[%s9522_s1 + $0x110] sm:$0xff] (!%p141_p9)   ;;  %vm700_vm1 = vsmask.f32 (!%p141_p9), 7440 }
   0xf   : > { %7490 = vmatprep.subr.bf16.mxu0 (!%p141_p9), %v8045_v1  ;;  %7299 = vmatpush3.bf16.msra.mxu1 (!%p141_p9), %v8044_v0  ;;  %v8050_v6 = vld [vmem:[%s9522_s1 + $0x18] sm:$0xff] (!%p141_p9)   ;;  %v8052_v8 = vld [vmem:[%s9522_s1 + $0x20] sm:$0xff] (!%p141_p9)   ;;  %v8054_v10 = vld [vmem:[%s9522_s1 + $0x28] sm:$0xff] (!%p141_p9)   ;;  %vm1568_vm3 = vcmask (!%p141_p9), 1042432   ;;  %vm1569_vm4 = vcmask (!%p141_p9), 1046532   ;;  %s6986_s17 = sshll.u32 (!%p141_p9), %s8280_s16, 11 }
  0x10   : > { %7491 = vmatpush3.bf16.msra.mxu0 (!%p141_p9), %v8045_v1  ;;  %7300 = vmatprep.subr.bf16.mxu1 (!%p141_p9), %v8046_v2  ;;  %v8051_v7 = vld [vmem:[%s9522_s1 + $0x118] sm:$0xff] (!%p141_p9)   ;;  %v8053_v9 = vld [vmem:[%s9522_s1 + $0x120] sm:$0xff] (!%p141_p9)   ;;  %v8055_v11 = vld [vmem:[%s9522_s1 + $0x128] sm:$0xff] (!%p141_p9)   ;;  %s9472_s25 = scalar_lea.hbm (!%p141_p9), %s9524_s3, %s6986_s17  ;;  %s8236_s27 = smov (!%p141_p9), [#allocation3]  }
  0x11   : > { %7492 = vmatprep.subr.bf16.mxu0 (!%p141_p9), %v8047_v3  ;;  %v8056_v18 = vld [vmem:[%s9522_s1 + $0x30] sm:$0xff] (!%p141_p9)   ;;  %v8058_v32 = vld [vmem:[%s9522_s1 + $0x38] sm:$0xff] (!%p141_p9)   ;;  %vm8368_vm2 = vmor (!%p141_p9), %vm699_vm0, %vm700_vm1  ;;  %s8176_s28 = sshll.u32 (!%p141_p9), %s8236_s27, 4  ;;  %s8177_s28 = int_to_ptr.vmem [resolvable:$false] %s8176_s28 }
  0x12   : > { %v8057_v24 = vld [vmem:[%s9522_s1 + $0x130] sm:$0xff] (!%p141_p9)   ;;  %v8059_v38 = vld [vmem:[%s9522_s1 + $0x138] sm:$0xff] (!%p141_p9)   ;;  %v8062_v47 = vld [vmem:[%s9522_s1 + $0x40] sm:$0xff] (!%p141_p9)   ;;  %s8178_s29 = scalar_lea.vmem (!%p141_p9), %s8177_s28, 4096 }
  0x13   : > { %7301 = vmatpush3.bf16.msra.mxu1 (!%p141_p9), %v8046_v2  ;;  %v8063_v52 = vld [vmem:[%s9522_s1 + $0x140] sm:$0xff] (!%p141_p9)   ;;  %vm8468_vm5 = vmor (!%p141_p9), %vm1568_vm3, %vm1569_vm4 }
  0x14   : > { %7493 = vmatpush3.bf16.msra.mxu0 (!%p141_p9), %v8047_v3  ;;  %7302 = vmatprep.subr.bf16.mxu1 (!%p141_p9), %v8048_v4 }
  0x15   : > { %s165_s9 = scalar_select %p164_p10, %s8280_s16, 1  ;;  %7494 = vmatprep.subr.bf16.mxu0 %v8049_v5 }
  0x17   : > { %s8002_s20 = smul.u32 216, %s165_s9  ;;  %7303 = vmatpush3.bf16.msra.mxu1 %v8048_v4  ;;  %s161_s9 = sand.u32 1, %s8226_s13  }
  0x18   : > { %7495 = vmatpush3.bf16.msra.mxu0 %v8049_v5  ;;  %7304 = vmatprep.subr.bf16.mxu1 %v8050_v6  ;;  %s6266_s10 = sshll.u32 %s161_s9, 7  ;;  %s9480_s16 = scalar_lea.sflag [#allocation4], %s161_s9 }
  0x19   : > { %7496 = vmatprep.subr.bf16.mxu0 %v8051_v7  ;;  %s8345_s5 = scalar_lea.vmem %s9521_s0, %s8002_s20  ;;  %s9421_s11 = scalar_lea.vmem [#allocation3], %s6266_s10 }
  0x1a   : > { %v8060_v12 = vld [vmem:[%s8345_s5] sm:$0xff]   ;;  %v6460_v13 = vld [vmem:[%s8345_s5 + $0xc] sm:$0xf]  ;;  %v6461_v14 = vld [vmem:[%s8345_s5 + $0x10] sm:$0xf]  ;;  %s6200_s19 = sshll.u32 %s9421_s11, 4  ;;  %s9474_s19 = int_to_ptr.vmem [resolvable:$true] %s6200_s19 }
  0x1b   : > { %7305 = vmatpush3.bf16.msra.mxu1 %v8050_v6  ;;  %7314 = vmatprep.mubr.bf16.mxu1 %v8060_v12  ;;  %v6462_v15 = vld [vmem:[%s8345_s5 + $0x14] sm:$0x1]  ;;  %v2569_v16 = vshrl.u32 %v6460_v13, 16  ;;  %v2572_v17 = vshll.u32 %v6460_v13, 16  ;;  %v2578_v19 = vshll.u32 %v6461_v14, 16  ;;  %v2582_v20 = vshrl.u32 %v6461_v14, 16  ;;  %p8179_p0 = scmp.lt.s32.totalorder %s9474_s19, %s8177_s28 }
  0x1c   : > { %7497 = vmatpush3.bf16.msra.mxu0 %v8051_v7  ;;  %7306 = vmatprep.subr.bf16.mxu1 %v8052_v8  ;;  %v2588_v21 = vshll.u32 %v6462_v15, 16  ;;  %v6463_v29 = vld [vmem:[%s8345_s5 + $0x18] sm:$0xf]  ;;  %v6464_v30 = vld [vmem:[%s8345_s5 + $0x1c] sm:$0xf]  ;;  %v8061_v55 = vld [vmem:[%s8345_s5 + $0xc] sm:$0xff]  }
  0x1d   : > { %7498 = vmatprep.subr.bf16.mxu0 %v8053_v9  ;;  %v2571_v22 = vrot.slane %v2569_v16, 4  ;;  %v2574_v23 = vrot.slane %v2572_v17, 5  ;;  %v2580_v25 = vrot.slane %v2578_v19, 5  ;;  %v2584_v26 = vrot.slane %v2582_v20, 4  ;;  %v6465_v31 = vld [vmem:[%s8345_s5 + $0x20] sm:$0x1] }
  0x1e   : > { %v2590_v27 = vrot.slane %v2588_v21, 5  ;;  %v2593_v35 = vshrl.u32 %v6463_v29, 16  ;;  %v2596_v36 = vshll.u32 %v6463_v29, 16  ;;  %v2602_v37 = vshll.u32 %v6464_v30, 16  ;;  %v6466_v53 = vld [vmem:[%s8345_s5 + $0x24] sm:$0xf] }
  0x1f   : > { %7307 = vmatpush3.bf16.msra.mxu1 %v8052_v8  ;;  %v2575_v28 = vor.u32 %v2574_v23, %v2571_v22  ;;  %v2585_v34 = vor.u32 %v2584_v26, %v2580_v25  ;;  %v2606_v40 = vshrl.u32 %v6464_v30, 16  ;;  %v2612_v41 = vshll.u32 %v6465_v31, 16  ;;  %v6467_v57 = vld [vmem:[%s8345_s5 + $0x28] sm:$0xf]  ;;  %v6468_v58 = vld [vmem:[%s8345_s5 + $0x2c] sm:$0x1] }
  0x20   : > { %7499 = vmatpush3.bf16.msra.mxu0 %v8053_v9  ;;  %7308 = vmatprep.subr.bf16.mxu1 %v8054_v10  ;;  %v2595_v43 = vrot.slane %v2593_v35, 4  ;;  %v2598_v44 = vrot.slane %v2596_v36, 5  ;;  %v2604_v45 = vrot.slane %v2602_v37, 5  ;;  %v2617_v59 = vshrl.u32 %v6466_v53, 16  ;;  %v8065_v2 = vld [vmem:[%s8345_s5 + $0x18] sm:$0xff]   ;;  %v8064_v6 = vld [vmem:[%s9522_s1 + $0x148] sm:$0xff]  }
  0x21   : > { %7500 = vmatprep.subr.bf16.mxu0 %v8055_v11  ;;  %v2576_v39 = vrot.slane %v2575_v28, 4  ;;  %v2586_v42 = vrot.slane %v2585_v34, 4  ;;  %v2608_v48 = vrot.slane %v2606_v40, 4  ;;  %v2614_v51 = vrot.slane %v2612_v41, 5  ;;  %v6469_v13 = vld [vmem:[%s8345_s5 + $0x30] sm:$0xf] }
  0x22   : > { %v2599_v50 = vor.u32 %v2598_v44, %v2595_v43  ;;  %v2620_v60 = vshll.u32 %v6466_v53, 16  ;;  %v2626_v62 = vshll.u32 %v6467_v57, 16  ;;  %v2630_v63 = vshrl.u32 %v6467_v57, 16  ;;  %v6470_v14 = vld [vmem:[%s8345_s5 + $0x34] sm:$0xf]  ;;  %v8066_v28 = vld [vmem:[%s8345_s5 + $0x24] sm:$0xff]  }
  0x23   : > { %7309 = vmatpush3.bf16.msra.mxu1 %v8054_v10  ;;  %v2581_v46 = vsel %vm8368_vm2, %v2576_v39, %v2580_v25  ;;  %v2591_v49 = vsel %vm8368_vm2, %v2586_v42, %v2590_v27  ;;  %v2609_v56 = vor.u32 %v2608_v48, %v2604_v45  ;;  %v2636_v0 = vshll.u32 %v6468_v58, 16  ;;  %v8067_v10 = vld [vmem:[%s9522_s1 + $0x48] sm:$0xff]   ;;  %v6471_v17 = vld [vmem:[%s8345_s5 + $0x38] sm:$0x1]  ;;  %v8068_v31 = vld [vmem:[%s9522_s1 + $0x150] sm:$0xff]   ;;  %s8172_s26 = scalar_lea.vmem %s9474_s19, 2048 }
  0x24   : > { %7501 = vmatpush3.bf16.msra.mxu0 %v8055_v11  ;;  %7310 = vmatprep.subr.bf16.mxu1 %v8056_v18  ;;  %v6524_v54 = vcombine.low %v2581_v46, %v2591_v49  ;;  %v2600_v61 = vrot.slane %v2599_v50, 4  ;;  %v2619_v3 = vrot.slane %v2617_v59, 4  ;;  %v2622_v4 = vrot.slane %v2620_v60, 5  ;;  %v8070_v36 = vld [vmem:[%s8345_s5 + $0x30] sm:$0xff]   ;;  %v6472_v39 = vld [vmem:[%s8345_s5 + $0x3c] sm:$0xf]  ;;  %p8173_p11 = scmp.ne.s32.totalorder %s9474_s19, %s8172_s26  ;;  %p8180_p1 = scmp.lt.s32.totalorder %s8178_s29, %s8172_s26 }
  0x25   : > { %7502 = vmatprep.subr.bf16.mxu0 %v8057_v24  ;;  %v2610_v1 = vrot.slane %v2609_v56, 4  ;;  %v2628_v7 = vrot.slane %v2626_v62, 5  ;;  %v2632_v8 = vrot.slane %v2630_v63, 4  ;;  %v2638_v9 = vrot.slane %v2636_v0, 5  ;;  %v6473_v40 = vld [vmem:[%s8345_s5 + $0x40] sm:$0xf] }
  0x26   : > { %7506 = vmatprep.mubr.bf16.mxu0 %v6524_v54  ;;  %v2605_v5 = vsel %vm8368_vm2, %v2600_v61, %v2604_v45  ;;  %v2623_v12 = vor.u32 %v2622_v4, %v2619_v3  ;;  %v2644_v19 = vshll.u32 %v6469_v13, 16  ;;  %v2650_v21 = vshll.u32 %v6470_v14, 16  ;;  %v6474_v41 = vld [vmem:[%s8345_s5 + $0x44] sm:$0x1]  ;;  %v8072_v54 = vld [vmem:[%s9522_s1 + $0x50] sm:$0xff]   ;;  %p8174_p12 = pnand %p8173_p11, %p8297_p5  ;;  %p8181_p2 = por %p8180_p1, %p8179_p0 }
  0x27   : > { %7311 = vmatpush3.bf16.msra.mxu1 %v8056_v18  ;;  %v2615_v11 = vsel %vm8368_vm2, %v2610_v1, %v2614_v51  ;;  %v2633_v16 = vor.u32 %v2632_v8, %v2628_v7  ;;  %v2641_v18 = vshrl.u32 %v6469_v13, 16  ;;  %v2654_v22 = vshrl.u32 %v6470_v14, 16  ;;  %v6475_v58 = vld [vmem:[%s8345_s5 + $0x48] sm:$0xf]  ;;  %v6476_v61 = vld [vmem:[%s8345_s5 + $0x4c] sm:$0xf] }
  0x28   : > { %7503 = vmatpush3.bf16.msra.mxu0 %v8057_v24  ;;  %7312 = vmatprep.subr.bf16.mxu1 %v8058_v32  ;;  %v6525_v15 = vcombine.low %v2605_v5, %v2615_v11  ;;  %v2624_v20 = vrot.slane %v2623_v12, 4  ;;  %v2660_v23 = vshll.u32 %v6471_v17, 16  ;;  %v2646_v26 = vrot.slane %v2644_v19, 5  ;;  %v6477_v62 = vld [vmem:[%s8345_s5 + $0x50] sm:$0x1]  ;;  %v8073_v8 = vld [vmem:[%s9522_s1 + $0x160] sm:$0xff]   ;;  %p8175_p13 = pneg %p8174_p12 }
  0x29   : > { %7504 = vmatprep.subr.bf16.mxu0 %v8059_v38  ;;  %v2634_v24 = vrot.slane %v2633_v16, 4  ;;  %v2643_v25 = vrot.slane %v2641_v18, 4  ;;  %v2652_v29 = vrot.slane %v2650_v21, 5  ;;  %v2656_v30 = vrot.slane %v2654_v22, 4  ;;  %v8075_v18 = vld [vmem:[%s8345_s5 + $0x48] sm:$0xff]  }
  0x2a   : > { %v2629_v27 = vsel %vm8368_vm2, %v2624_v20, %v2628_v7  ;;  %v2662_v35 = vrot.slane %v2660_v23, 5  ;;  %v2665_v43 = vshrl.u32 %v6472_v39, 16  ;;  %v2668_v44 = vshll.u32 %v6472_v39, 16  ;;  %v6478_v19 = vld [vmem:[%s8345_s5 + $0x54] sm:$0xf]  ;;  %v8074_v23 = vld [vmem:[%s9522_s1 + $0x168] sm:$0xff]   ;;  %p8182_p3 = pnand %p8181_p2, %p8175_p13 }
  0x2b   : > { %7313 = vmatpush3.bf16.msra.mxu1 %v8058_v32  ;;  %v2639_v32 = vsel %vm8368_vm2, %v2634_v24, %v2638_v9  ;;  %v2647_v34 = vor.u32 %v2646_v26, %v2643_v25  ;;  %v2674_v45 = vshll.u32 %v6473_v40, 16  ;;  %v2678_v48 = vshrl.u32 %v6473_v40, 16  ;;  %v6479_v20 = vld [vmem:[%s8345_s5 + $0x58] sm:$0xf]  ;;  %v6480_v24 = vld [vmem:[%s8345_s5 + $0x5c] sm:$0x1] }
  0x2c   : > { %7505 = vmatpush3.bf16.msra.mxu0 %v8059_v38  ;;  %7346 = vmatprep.subr.bf16.mxu1 %v8062_v47  ;;  %v6526_v37 = vcombine.low %v2629_v27, %v2639_v32  ;;  %v2657_v38 = vor.u32 %v2656_v30, %v2652_v29  ;;  %v2684_v49 = vshll.u32 %v6474_v41, 16  ;;  %v2667_v51 = vrot.slane %v2665_v43, 4  ;;  %v8076_v39 = vld [vmem:[%s8345_s5 + $0x54] sm:$0xff]   ;;  %v6481_v43 = vld [vmem:[%s8345_s5 + $0x60] sm:$0xf] }
  0x2d   : > { %7538 = vmatprep.subr.bf16.mxu0 %v8063_v52  ;;  %v2648_v42 = vrot.slane %v2647_v34, 4  ;;  %v2676_v53 = vrot.slane %v2674_v45, 5  ;;  %v2680_v56 = vrot.slane %v2678_v48, 4  ;;  %v2689_v63 = vshrl.u32 %v6475_v58, 16  ;;  %v8077_v40 = vld [vmem:[%s9522_s1 + $0x58] sm:$0xff]  }
  0x2e   : > { %7315 = vmatmul.mubr.bf16.vlgmr.msra.gmra.mrb[0].mxu1 %v8061_v55  ;;  %v2658_v46 = vrot.slane %v2657_v38, 4  ;;  %v2686_v57 = vrot.slane %v2684_v49, 5  ;;  %v2692_v0 = vshll.u32 %v6475_v58, 16  ;;  %v2702_v3 = vshrl.u32 %v6476_v61, 16  ;;  %v6483_v45 = vld [vmem:[%s8345_s5 + $0x68] sm:$0x1] }
  0x2f   : > { %7507 = vmatmul.mubr.bf16.vlgmr.msra.gmra.mrb[0].mxu0 %v6525_v15  ;;  %7347 = vmatpush3.bf16.msra.mxu1 %v8062_v47  ;;  %v8069_v47 = vld [vmem:[%s9522_s1 + $0x158] sm:$0xff]   ;;  %v2653_v50 = vsel %vm8368_vm2, %v2648_v42, %v2652_v29  ;;  %v2681_v1 = vor.u32 %v2680_v56, %v2676_v53  ;;  %v2708_v4 = vshll.u32 %v6477_v62, 16  ;;  %v2713_v25 = vshrl.u32 %v6478_v19, 16 }
  0x30   : > { %7539 = vmatpush3.bf16.msra.mxu0 %v8063_v52  ;;  %7318 = vmatprep.mubr.bf16.mxu1 %v8065_v2  ;;  %v2670_v52 = vrot.slane %v2668_v44, 5  ;;  %v2663_v55 = vsel %vm8368_vm2, %v2658_v46, %v2662_v35  ;;  %v2698_v2 = vshll.u32 %v6476_v61, 16  ;;  %v2694_v7 = vrot.slane %v2692_v0, 5  ;;  %v6482_v44 = vld [vmem:[%s8345_s5 + $0x64] sm:$0xf] }
  0x31   : > { %7540 = vmatprep.subr.bf16.mxu0 %v8064_v6  ;;  %7348 = vmatprep.subr.bf16.mxu1 %v8067_v10  ;;  %v6527_v59 = vcombine.low %v2653_v50, %v2663_v55  ;;  %v2682_v9 = vrot.slane %v2681_v1, 4  ;;  %v2704_v12 = vrot.slane %v2702_v3, 4  ;;  %v2710_v17 = vrot.slane %v2708_v4, 5  ;;  %v8078_v50 = vld [vmem:[%s9522_s1 + $0x170] sm:$0xff]   ;;  %v6548_v0 = vld [vmem:[%s8345_s5 + $0xc] sm:$0xe] }
  0x32   : > { %7510 = vmatprep.mubr.bf16.mxu0 %v6526_v37  ;;  %v2671_v60 = vor.u32 %v2670_v52, %v2667_v51  ;;  %v2700_v11 = vrot.slane %v2698_v2, 5  ;;  %v2716_v26 = vshll.u32 %v6478_v19, 16  ;;  %v2726_v29 = vshrl.u32 %v6479_v20, 16 }
  0x33   : > { %7349 = vmatpush3.bf16.msra.mxu1 %v8067_v10  ;;  %v8071_v10 = vld [vmem:[%s8345_s5 + $0x3c] sm:$0xff]   ;;  %v2687_v15 = vsel %vm8368_vm2, %v2682_v9, %v2686_v57  ;;  %v2732_v30 = vshll.u32 %v6480_v24, 16  ;;  %v2715_v32 = vrot.slane %v2713_v25, 4  ;;  %v2740_v48 = vshll.u32 %v6481_v43, 16 }
  0x34   : > { %7541 = vmatpush3.bf16.msra.mxu0 %v8064_v6  ;;  %7350 = vmatprep.subr.bf16.mxu1 %v8072_v54  ;;  %v2672_v5 = vrot.slane %v2671_v60, 4  ;;  %v2691_v6 = vrot.slane %v2689_v63, 4  ;;  %v2705_v16 = vor.u32 %v2704_v12, %v2700_v11  ;;  %v2718_v34 = vrot.slane %v2716_v26, 5  ;;  %v8079_v60 = vld [vmem:[%s9522_s1 + $0x178] sm:$0xff]   ;;  %v8080_v63 = vld [vmem:[%s8345_s5 + $0x60] sm:$0xff]  }
  0x35   : > { %7542 = vmatprep.subr.bf16.mxu0 %v8068_v31  ;;  %v2728_v37 = vrot.slane %v2726_v29, 4  ;;  %v2734_v38 = vrot.slane %v2732_v30, 5  ;;  %v2746_v49 = vshll.u32 %v6482_v44, 16  ;;  %v2750_v52 = vshrl.u32 %v6482_v44, 16  ;;  %v6554_v29 = vld [vmem:[%s8345_s5 + $0x24] sm:$0xe] }
  0x36   : > { %7319 = vmatmul.mubr.bf16.gmra.mrb[4].mxu1 %v8066_v28  ;;  %v2677_v13 = vsel %vm8368_vm2, %v2672_v5, %v2676_v53  ;;  %v2695_v14 = vor.u32 %v2694_v7, %v2691_v6  ;;  %v2706_v27 = vrot.slane %v2705_v16, 4  ;;  %v2722_v28 = vshll.u32 %v6479_v20, 16  ;;  %v6549_v5 = vld [vmem:[%s8345_s5 + $0x10] sm:$0xf]  ;;  %v6550_v6 = vld [vmem:[%s8345_s5 + $0x14] sm:$0x1] }
  0x37   : > { %7322 = vmatprep.mubr.bf16.mxu1 %v8070_v36  ;;  %7351 = vmatpush3.bf16.msra.mxu1 %v8072_v54  ;;  %v6528_v21 = vcombine.low %v2677_v13, %v2687_v15  ;;  %v2719_v42 = vor.u32 %v2718_v34, %v2715_v32  ;;  %v2756_v53 = vshll.u32 %v6483_v45, 16  ;;  %v2742_v56 = vrot.slane %v2740_v48, 5  ;;  %v8083_v13 = vld [vmem:[%s9522_s1 + $0x180] sm:$0xff]   ;;  %v6552_v20 = vld [vmem:[%s8345_s5 + $0x1c] sm:$0xf]  ;;  %v8087_v48 = vld [vmem:[%s9522_s1 + $0x188] sm:$0xff]  }
  0x38   : > { %7543 = vmatpush3.bf16.msra.mxu0 %v8068_v31  ;;  %v2696_v22 = vrot.slane %v2695_v14, 4  ;;  %v2711_v35 = vsel %vm8368_vm2, %v2706_v27, %v2710_v17  ;;  %v2724_v36 = vrot.slane %v2722_v28, 5  ;;  %7352 = vmatprep.subr.bf16.mxu1 %v8077_v40  ;;  %v2748_v57 = vrot.slane %v2746_v49, 5  ;;  %v8081_v17 = vld [vmem:[%s8345_s5 + $0x6c] sm:$0xff]   ;;  %v6558_v44 = vld [vmem:[%s8345_s5 + $0x34] sm:$0xf] }
  0x39   : > { %7511 = vmatmul.mubr.bf16.gmra.mrb[4].mxu0 %v6527_v59  ;;  %7544 = vmatprep.subr.bf16.mxu0 %v8069_v47  ;;  %v2720_v51 = vrot.slane %v2719_v42, 4  ;;  %v2752_v59 = vrot.slane %v2750_v52, 4  ;;  %v2758_v3 = vrot.slane %v2756_v53, 5  ;;  %v6596_v7 = vrot.slane %v6548_v0, 9  ;;  %v6556_v32 = vld [vmem:[%s8345_s5 + $0x2c] sm:$0x1] }
  0x3a   : > { %7514 = vmatprep.mubr.bf16.mxu0 %v6528_v21  ;;  %v2701_v31 = vsel %vm8368_vm2, %v2696_v22, %v2700_v11  ;;  %v2729_v46 = vor.u32 %v2728_v37, %v2724_v36  ;;  %v3436_v9 = vrot.slane %v6549_v5, 5  ;;  %v8082_v11 = vld [vmem:[%s9522_s1 + $0x60] sm:$0xff]   ;;  %v3443_v26 = vrot.slane %v6552_v20, 5  ;;  %v6563_v0 = vld [vmem:[%s8345_s5 + $0x48] sm:$0xe] }
  0x3b   : > { %v6529_v41 = vcombine.low %v2701_v31, %v2711_v35  ;;  %7353 = vmatpush3.bf16.msra.mxu1 %v8077_v40  ;;  %v2725_v58 = vsel %vm8368_vm2, %v2720_v51, %v2724_v36  ;;  %v2753_v2 = vor.u32 %v2752_v59, %v2748_v57  ;;  %v6553_v21 = vld [vmem:[%s8345_s5 + $0x20] sm:$0x1]  ;;  %v6555_v31 = vld [vmem:[%s8345_s5 + $0x28] sm:$0xf]  ;;  %v6598_v34 = vrot.slane %v6554_v29, 9  ;;  %v8090_v59 = vld [vmem:[%s9522_s1 + $0x70] sm:$0xff]  }
  0x3c   : > { %7545 = vmatpush3.bf16.msra.mxu0 %v8069_v47  ;;  %v2737_v47 = vshrl.u32 %v6481_v43, 16  ;;  %v2730_v54 = vrot.slane %v2729_v46, 4  ;;  %v3437_v15 = vsel %vm8468_vm5, %v6596_v7, %v3436_v9  ;;  %v3438_v16 = vrot.slane %v3436_v9, 4  ;;  %7354 = vmatprep.subr.bf16.mxu1 %v8082_v11  ;;  %v8085_v42 = vld [vmem:[%s8345_s5 + $0x84] sm:$0xff]   ;;  %v6557_v43 = vld [vmem:[%s8345_s5 + $0x30] sm:$0xe] }
  0x3d   : > { %7546 = vmatprep.subr.bf16.mxu0 %v8073_v8  ;;  %v2754_v12 = vrot.slane %v2753_v2, 4  ;;  %v3446_v27 = vrot.slane %v6553_v21, 5  ;;  %v3445_v30 = vrot.slane %v3443_v26, 4  ;;  %v3450_v36 = vrot.slane %v6555_v31, 5  ;;  %v6559_v46 = vld [vmem:[%s8345_s5 + $0x38] sm:$0x1] }
  0x3e   : > { %7323 = vmatmul.mubr.bf16.gmra.mrb[8].mxu1 %v8071_v10  ;;  %v2739_v55 = vrot.slane %v2737_v47, 4  ;;  %v2735_v61 = vsel %vm8368_vm2, %v2730_v54, %v2734_v38  ;;  %v3439_v10 = vrot.slane %v6550_v6, 5  ;;  %v3453_v37 = vrot.slane %v6556_v32, 5  ;;  %v8088_v54 = vld [vmem:[%s8345_s5 + $0x90] sm:$0xff]   ;;  %v6564_v5 = vld [vmem:[%s8345_s5 + $0x4c] sm:$0xf] }
  0x3f   : > { %7326 = vmatprep.mubr.bf16.mxu1 %v8075_v18  ;;  %v6530_v1 = vcombine.low %v2725_v58, %v2735_v61  ;;  %v6551_v18 = vld [vmem:[%s8345_s5 + $0x18] sm:$0xe]  ;;  %v2759_v19 = vsel %vm8368_vm2, %v2754_v12, %v2758_v3  ;;  %7355 = vmatpush3.bf16.msra.mxu1 %v8082_v11  ;;  %v3447_v38 = vsel %vm8468_vm5, %v3445_v30, %v3446_v27  ;;  %v3457_v47 = vrot.slane %v6558_v44, 5  ;;  %v8089_v3 = vld [vmem:[%s8345_s5 + $0x9c] sm:$0xff]   ;;  %v6565_v6 = vld [vmem:[%s8345_s5 + $0x50] sm:$0x1] }
  0x40   : > { %7547 = vmatpush3.bf16.msra.mxu0 %v8073_v8  ;;  %v2743_v62 = vor.u32 %v2742_v56, %v2739_v55  ;;  %v6597_v22 = vrot.slane %v6551_v18, 9  ;;  %v3440_v25 = vsel %vm8468_vm5, %v3438_v16, %v3439_v10  ;;  %v3451_v40 = vsel %vm8468_vm5, %v6598_v34, %v3450_v36  ;;  %v6560_v55 = vld [vmem:[%s8345_s5 + $0x3c] sm:$0xe]  ;;  %v6561_v56 = vld [vmem:[%s8345_s5 + $0x40] sm:$0xf]  ;;  %v8091_v12 = vld [vmem:[%s9522_s1 + $0x190] sm:$0xff]  }
  0x41   : > { %7548 = vmatprep.subr.bf16.mxu0 %v8074_v23  ;;  %7515 = vmatmul.mubr.bf16.gmra.mrb[8].mxu0 %v6529_v41  ;;  %v6628_v28 = vcombine.low %v3437_v15, %v3440_v25  ;;  %v3452_v41 = vrot.slane %v3450_v36, 4  ;;  %v3460_v51 = vrot.slane %v6559_v46, 5  ;;  %v3459_v53 = vrot.slane %v3457_v47, 4  ;;  %v8092_v15 = vld [vmem:[%s8345_s5 + $0xa8] sm:$0xff]   ;;  %v6566_v16 = vld [vmem:[%s8345_s5 + $0x54] sm:$0xe] }
  0x42   : > { %v2744_v8 = vrot.slane %v2743_v62, 4  ;;  %7518 = vmatprep.mubr.bf16.mxu0 %v6530_v1  ;;  %v3444_v35 = vsel %vm8468_vm5, %v6597_v22, %v3443_v26  ;;  %v6600_v58 = vrot.slane %v6560_v55, 9  ;;  %v6601_v7 = vrot.slane %v6563_v0, 9  ;;  %v6568_v18 = vld [vmem:[%s8345_s5 + $0x5c] sm:$0x1]  ;;  %v8093_v34 = vld [vmem:[%s8345_s5 + $0xb4] sm:$0xff]  }
  0x43   : > { %v6629_v45 = vcombine.low %v3444_v35, %v3447_v38  ;;  %v3454_v49 = vsel %vm8468_vm5, %v3452_v41, %v3453_v37  ;;  %v3474_v11 = vrot.slane %v6565_v6, 5  ;;  %v3481_v21 = vrot.slane %v6568_v18, 5  ;;  %v8094_v26 = vld [vmem:[%s9522_s1 + $0x78] sm:$0xff]   ;;  %v6569_v27 = vld [vmem:[%s8345_s5 + $0x60] sm:$0xe] }
  0x44   : > { %7549 = vmatpush3.bf16.msra.mxu0 %v8074_v23  ;;  %v2749_v14 = vsel %vm8368_vm2, %v2744_v8, %v2748_v57  ;;  %v8084_v23 = vld [vmem:[%s8345_s5 + $0x78] sm:$0xff]   ;;  %v6630_v52 = vcombine.low %v3451_v40, %v3454_v49  ;;  %v6562_v57 = vld [vmem:[%s8345_s5 + $0x44] sm:$0x1]  ;;  %v3471_v8 = vrot.slane %v6564_v5, 5  ;;  %v6571_v29 = vld [vmem:[%s8345_s5 + $0x68] sm:$0x1] }
  0x45   : > { %7550 = vmatprep.subr.bf16.mxu0 %v8078_v50  ;;  %v6531_v24 = vcombine.low %v2749_v14, %v2759_v19  ;;  %v3467_v61 = vrot.slane %v6562_v57, 5  ;;  %v6602_v19 = vrot.slane %v6566_v16, 9  ;;  %v6603_v30 = vrot.slane %v6569_v27, 9  ;;  %v8095_v31 = vld [vmem:[%s9522_s1 + $0x198] sm:$0xff]   ;;  %v652_v40 = vld [vmem:[%s8345_s5 + $0x4] sm:$0xf] }
  0x46   : > { %7327 = vmatmul.mubr.bf16.gmra.mrb[12].mxu1 %v8076_v39  ;;  %v8086_v39 = vld [vmem:[%s9522_s1 + $0x68] sm:$0xff]   ;;  %v3473_v14 = vrot.slane %v3471_v8, 4  ;;  %v3472_v22 = vsel %vm8468_vm5, %v6601_v7, %v3471_v8  ;;  %v3488_v36 = vrot.slane %v6571_v29, 5  ;;  %v716_v49 = vshrl.u32 %v652_v40, 16  ;;  %v655_v5 = vld [vmem:[%s8345_s5 + $0x10] sm:$0xf] }
  0x47   : > { %7330 = vmatprep.mubr.bf16.mxu1 %v8080_v63  ;;  %7356 = vmatprep.subr.bf16.mxu1 %v8086_v39  ;;  %v3461_v63 = vsel %vm8468_vm5, %v3459_v53, %v3460_v51  ;;  %v653_v41 = vld [vmem:[%s8345_s5 + $0x8] sm:$0x1]  ;;  %v6572_v46 = vld [vmem:[%s8345_s5 + $0x6c] sm:$0xe]  ;;  %v6573_v51 = vld [vmem:[%s8345_s5 + $0x70] sm:$0xf] }
  0x48   : > { %7551 = vmatpush3.bf16.msra.mxu0 %v8078_v50  ;;  %v6599_v50 = vrot.slane %v6557_v43, 9  ;;  %7357 = vmatpush3.bf16.msra.mxu1 %v8086_v39  ;;  %v651_v39 = vld [vmem:[%s8345_s5] sm:$0xf]  ;;  %v3492_v57 = vrot.slane %v6573_v51, 5  ;;  %v656_v6 = vld [vmem:[%s8345_s5 + $0x14] sm:$0x1] }
  0x49   : > { %7552 = vmatprep.subr.bf16.mxu0 %v8079_v60  ;;  %7519 = vmatmul.mubr.bf16.gmra.mrb[12].mxu0 %v6531_v24  ;;  %v703_v44 = vshrl.u32 %v651_v39, 16  ;;  %v6577_v29 = vld [vmem:[%s8345_s5 + $0x80] sm:$0x1] }
  0x4a   : > { %7554 = vmatprep.mubr.bf16.mxu0 %v6628_v28  ;;  %v3458_v62 = vsel %vm8468_vm5, %v6599_v50, %v3457_v47  ;;  %7358 = vmatprep.subr.bf16.mxu1 %v8090_v59  ;;  %v6570_v28 = vld [vmem:[%s8345_s5 + $0x64] sm:$0xf]  ;;  %v722_v50 = vshll.u32 %v653_v41, 16  ;;  %v658_v41 = vld [vmem:[%s8345_s5 + $0x1c] sm:$0xf] }
  0x4b   : > { %v6631_v9 = vcombine.low %v3458_v62, %v3461_v63  ;;  %v3485_v35 = vrot.slane %v6570_v28, 5  ;;  %v8569_v47 = vld [vmem:[%s9522_s1 + $0x80] sm:$0xff]   ;;  %v654_v63 = vld [vmem:[%s8345_s5 + $0xc] sm:$0xf]  ;;  %v764_v51 = vshrl.u32 %v658_v41, 16 }
  0x4c   : > { %7553 = vmatpush3.bf16.msra.mxu0 %v8079_v60  ;;  %v3464_v60 = vrot.slane %v6561_v56, 5  ;;  %7359 = vmatpush3.bf16.msra.mxu1 %v8090_v59  ;;  %v6574_v56 = vld [vmem:[%s8345_s5 + $0x74] sm:$0x1]  ;;  %v724_v62 = vrot.slane %v722_v50, 5  ;;  %v727_v8 = vshrl.u32 %v654_v63, 16 }
  0x4d   : > { %7586 = vmatprep.subr.bf16.mxu0 %v8083_v13  ;;  %7360 = vmatprep.subr.bf16.mxu1 %v8094_v26  ;;  %v3487_v43 = vrot.slane %v3485_v35, 4 }
  0x4e   : > { %7331 = vmatmul.mubr.bf16.gmra.mrb[16].mxu1 %v8081_v17  ;;  %v3465_v1 = vsel %vm8468_vm5, %v6600_v58, %v3464_v60  ;;  %v3466_v2 = vrot.slane %v3464_v60, 4  ;;  %v6567_v17 = vld [vmem:[%s8345_s5 + $0x58] sm:$0xf]  ;;  %v8097_v58 = vld [vmem:[%s9522_s1 + $0x1a0] sm:$0xff]   ;;  %v729_v18 = vrot.slane %v727_v8, 4 }
  0x4f   : > { %7334 = vmatprep.mubr.bf16.mxu1 %v8084_v23  ;;  %v3478_v20 = vrot.slane %v6567_v17, 5  ;;  %v3475_v23 = vsel %vm8468_vm5, %v3473_v14, %v3474_v11  ;;  %v3489_v53 = vsel %vm8468_vm5, %v3487_v43, %v3488_v36  ;;  %v8099_v11 = vld [vmem:[%s9522_s1 + $0x1a8] sm:$0xff]   ;;  %v740_v14 = vshrl.u32 %v655_v5, 16  ;;  %v657_v36 = vld [vmem:[%s8345_s5 + $0x18] sm:$0xf] }
  0x50   : > { %v3468_v10 = vsel %vm8468_vm5, %v3466_v2, %v3467_v61  ;;  %v6633_v37 = vcombine.low %v3472_v22, %v3475_v23  ;;  %7361 = vmatpush3.bf16.msra.mxu1 %v8094_v26  ;;  %v718_v61 = vrot.slane %v716_v49, 4  ;;  %v3494_v2 = vrot.slane %v3492_v57, 4  ;;  %v6576_v26 = vld [vmem:[%s8345_s5 + $0x7c] sm:$0xf] }
  0x51   : > { %7555 = vmatmul.mubr.bf16.vlgmr.msra.gmra.mrb[0].mxu0 %v6629_v45  ;;  %v3479_v24 = vsel %vm8468_vm5, %v6602_v19, %v3478_v20  ;;  %v3480_v25 = vrot.slane %v3478_v20, 4  ;;  %v706_v45 = vshll.u32 %v651_v39, 16  ;;  %7394 = vmatprep.subr.bf16.mxu1 %v8569_v47  ;;  %v6575_v20 = vld [vmem:[%s8345_s5 + $0x78] sm:$0xe] }
  0x52   : > { %7587 = vmatpush3.bf16.msra.mxu0 %v8083_v13  ;;  %7558 = vmatprep.mubr.bf16.mxu0 %v6630_v52  ;;  %v6632_v13 = vcombine.low %v3465_v1, %v3468_v10  ;;  %v6604_v52 = vrot.slane %v6572_v46, 9  ;;  %v736_v10 = vshll.u32 %v655_v5, 16  ;;  %v760_v46 = vshll.u32 %v658_v41, 16 }
  0x53   : > { %7588 = vmatprep.subr.bf16.mxu0 %v8087_v48  ;;  %v3482_v32 = vsel %vm8468_vm5, %v3480_v25, %v3481_v21  ;;  %v708_v55 = vrot.slane %v706_v45, 5  ;;  %v8101_v21 = vld [vmem:[%s9522_s1 + $0x1b0] sm:$0xff]   ;;  %v754_v45 = vshll.u32 %v657_v36, 16 }
  0x54   : > { %v6634_v38 = vcombine.low %v3479_v24, %v3482_v32  ;;  %v3493_v1 = vsel %vm8468_vm5, %v6604_v52, %v3492_v57  ;;  %v738_v23 = vrot.slane %v736_v10, 5  ;;  %v742_v24 = vrot.slane %v740_v14, 4 }
  0x56   : > { %7335 = vmatmul.mubr.bf16.gmra.mrb[20].mxu1 %v8085_v42  ;;  %7589 = vmatpush3.bf16.msra.mxu0 %v8087_v48  ;;  %v8563_v42 = vsel %vm8468_vm5, %v6603_v30, %v3485_v35  ;;  %v712_v48 = vshll.u32 %v652_v40, 16  ;;  %v6605_v30 = vrot.slane %v6575_v20, 9  ;;  %v3502_v35 = vrot.slane %v6577_v29, 5 }
  0x57   : > { %7338 = vmatprep.mubr.bf16.mxu1 %v8088_v54  ;;  %7590 = vmatprep.subr.bf16.mxu0 %v8091_v12  ;;  %v705_v54 = vrot.slane %v703_v44, 4  ;;  %v6635_v59 = vcombine.low %v8563_v42, %v3489_v53  ;;  %v659_v42 = vld [vmem:[%s8345_s5 + $0x20] sm:$0x1]  ;;  %v751_v44 = vshrl.u32 %v657_v36, 16  ;;  %v6579_v53 = vld [vmem:[%s8345_s5 + $0x88] sm:$0xf] }
  0x58   : > { %v714_v60 = vrot.slane %v712_v48, 5  ;;  %v6578_v48 = vld [vmem:[%s8345_s5 + $0x84] sm:$0xe]  ;;  %v770_v52 = vshll.u32 %v659_v42, 16 }
  0x59   : > { %7559 = vmatmul.mubr.bf16.gmra.mrb[4].mxu0 %v6631_v9  ;;  %v709_v0 = vor.u32 %v708_v55, %v705_v54  ;;  %v730_v9 = vshll.u32 %v654_v63, 16  ;;  %v6580_v54 = vld [vmem:[%s8345_s5 + $0x8c] sm:$0x1]  ;;  %v753_v57 = vrot.slane %v751_v44, 4  ;;  %v766_v63 = vrot.slane %v764_v51, 4 }
  0x5a   : > { %7562 = vmatprep.mubr.bf16.mxu0 %v6632_v13  ;;  %7591 = vmatpush3.bf16.msra.mxu0 %v8091_v12  ;;  %v719_v7 = vor.u32 %v718_v61, %v714_v60  ;;  %v6606_v5 = vrot.slane %v6578_v48, 9  ;;  %v6585_v51 = vld [vmem:[%s8345_s5 + $0xa0] sm:$0xf] }
  0x5b   : > { %7592 = vmatprep.subr.bf16.mxu0 %v8095_v31  ;;  %v710_v12 = vrot.slane %v709_v0, 4  ;;  %v732_v19 = vrot.slane %v730_v9, 5  ;;  %v772_v0 = vrot.slane %v770_v52, 5 }
  0x5c   : > { %v720_v16 = vrot.slane %v719_v7, 4  ;;  %v3509_v7 = vrot.slane %v6580_v54, 5 }
  0x5d   : > { %v715_v22 = vsel %vm8368_vm2, %v710_v12, %v714_v60  ;;  %v733_v28 = vor.u32 %v732_v19, %v729_v18  ;;  %v661_v60 = vld [vmem:[%s8345_s5 + $0x28] sm:$0xf]  ;;  %v8100_v12 = vld [vmem:[%s9522_s1 + $0x90] sm:$0xff]   ;;  %v8633_v18 = vld [vmem:[%s9522_s1 + $0x1c0] sm:$0xff]  }
  0x5e   : > { %7339 = vmatmul.mubr.bf16.gmra.mrb[24].mxu1 %v8089_v3  ;;  %7593 = vmatpush3.bf16.msra.mxu0 %v8095_v31  ;;  %v3495_v3 = vrot.slane %v6574_v56, 5  ;;  %v725_v27 = vsel %vm8368_vm2, %v720_v16, %v724_v62  ;;  %v3499_v31 = vrot.slane %v6576_v26, 5  ;;  %v762_v62 = vrot.slane %v760_v46, 5 }
  0x5f   : > { %7342 = vmatprep.mubr.bf16.mxu1 %v8092_v15  ;;  %7594 = vmatprep.subr.bf16.mxu0 %v8097_v58  ;;  %v746_v15 = vshll.u32 %v656_v6, 16  ;;  %v6308_v32 = vcombine.low %v715_v22, %v725_v27  ;;  %v3506_v6 = vrot.slane %v6579_v53, 5  ;;  %v788_v16 = vshrl.u32 %v661_v60, 16  ;;  %v6583_v27 = vld [vmem:[%s8345_s5 + $0x98] sm:$0x1] }
  0x60   : > { %v3496_v13 = vsel %vm8468_vm5, %v3494_v2, %v3495_v3  ;;  %v3500_v39 = vsel %vm8468_vm5, %v6605_v30, %v3499_v31  ;;  %v3501_v40 = vrot.slane %v3499_v31, 4  ;;  %v8098_v2 = vld [vmem:[%s9522_s1 + $0x88] sm:$0xff]   ;;  %v767_v8 = vor.u32 %v766_v63, %v762_v62 }
  0x61   : > { %7563 = vmatmul.mubr.bf16.gmra.mrb[8].mxu0 %v6633_v37  ;;  %v6636_v17 = vcombine.low %v3493_v1, %v3496_v13  ;;  %v748_v25 = vrot.slane %v746_v15, 5  ;;  %v8103_v37 = vld [vmem:[%s9522_s1 + $0x1b8] sm:$0xff]   ;;  %v662_v1 = vld [vmem:[%s8345_s5 + $0x2c] sm:$0x1]  ;;  %v3507_v14 = vsel %vm8468_vm5, %v6606_v5, %v3506_v6  ;;  %v3508_v15 = vrot.slane %v3506_v6, 4  ;;  %v8105_v5 = vld [vmem:[%s9522_s1 + $0xa0] sm:$0xff]  }
  0x62   : > { %7566 = vmatprep.mubr.bf16.mxu0 %v6634_v38  ;;  %7595 = vmatpush3.bf16.msra.mxu0 %v8097_v58  ;;  %v734_v38 = vrot.slane %v733_v28, 4  ;;  %v3503_v50 = vsel %vm8468_vm5, %v3501_v40, %v3502_v35  ;;  %v756_v58 = vrot.slane %v754_v45, 5  ;;  %v768_v19 = vrot.slane %v767_v8, 4  ;;  %v665_v40 = vld [vmem:[%s8345_s5 + $0x38] sm:$0x1] }
  0x63   : > { %7596 = vmatprep.subr.bf16.mxu0 %v8099_v11  ;;  %v6637_v56 = vcombine.low %v3500_v39, %v3503_v50  ;;  %v794_v26 = vshll.u32 %v662_v1, 16  ;;  %v664_v39 = vld [vmem:[%s8345_s5 + $0x34] sm:$0xf]  ;;  %v3516_v42 = vrot.slane %v6583_v27, 5  ;;  %v6584_v45 = vld [vmem:[%s8345_s5 + $0x9c] sm:$0xe] }
  0x64   : > { %v739_v49 = vsel %vm8368_vm2, %v734_v38, %v738_v23  ;;  %v757_v3 = vor.u32 %v756_v58, %v753_v57  ;;  %v773_v28 = vsel %vm8368_vm2, %v768_v19, %v772_v0  ;;  %v808_v50 = vshll.u32 %v664_v39, 16 }
  0x65   : > { %v3520_v8 = vrot.slane %v6585_v51, 5 }
  0x66   : > { %7343 = vmatmul.mubr.bf16.gmra.mrb[28].mxu1 %v8093_v34  ;;  %v743_v34 = vor.u32 %v742_v24, %v738_v23  ;;  %7597 = vmatpush3.bf16.msra.mxu0 %v8099_v11  ;;  %v784_v11 = vshll.u32 %v661_v60, 16  ;;  %v758_v13 = vrot.slane %v757_v3, 4  ;;  %v3510_v24 = vsel %vm8468_vm5, %v3508_v15, %v3509_v7  ;;  %v668_v3 = vld [vmem:[%s8345_s5 + $0x44] sm:$0x1] }
  0x67   : > { %7598 = vmatprep.subr.bf16.mxu0 %v8101_v21  ;;  %7362 = vmatprep.mubr.bf16.mxu1 %v6308_v32  ;;  %v6638_v29 = vcombine.low %v3507_v14, %v3510_v24  ;;  %v663_v32 = vld [vmem:[%s8345_s5 + $0x30] sm:$0xf]  ;;  %v818_v60 = vshll.u32 %v665_v40, 16  ;;  %v6608_v7 = vrot.slane %v6584_v45, 9  ;;  %v6587_v14 = vld [vmem:[%s8345_s5 + $0xa8] sm:$0xe] }
  0x68   : > { %v744_v43 = vrot.slane %v743_v34, 4  ;;  %v786_v22 = vrot.slane %v784_v11, 5  ;;  %v763_v23 = vsel %vm8368_vm2, %v758_v13, %v762_v62  ;;  %v8102_v34 = vld [vmem:[%s9522_s1 + $0x98] sm:$0xff]   ;;  %v802_v44 = vshll.u32 %v663_v32, 16  ;;  %v667_v62 = vld [vmem:[%s8345_s5 + $0x40] sm:$0xf] }
  0x69   : > { %7567 = vmatmul.mubr.bf16.gmra.mrb[12].mxu0 %v6635_v59  ;;  %v660_v59 = vld [vmem:[%s8345_s5 + $0x24] sm:$0xf]  ;;  %v6310_v35 = vcombine.low %v763_v23, %v773_v28  ;;  %v820_v6 = vrot.slane %v818_v60, 5  ;;  %v3521_v15 = vsel %vm8468_vm5, %v6608_v7, %v3520_v8  ;;  %v836_v19 = vshrl.u32 %v667_v62, 16  ;;  %v6589_v24 = vld [vmem:[%s8345_s5 + $0xb0] sm:$0x1] }
  0x6a   : > { %7570 = vmatprep.mubr.bf16.mxu0 %v6636_v17  ;;  %v749_v55 = vsel %vm8368_vm2, %v744_v43, %v748_v25  ;;  %7599 = vmatpush3.bf16.msra.mxu0 %v8101_v21  ;;  %v775_v9 = vshrl.u32 %v660_v59, 16  ;;  %v778_v10 = vshll.u32 %v660_v59, 16  ;;  %v6581_v17 = vld [vmem:[%s8345_s5 + $0x90] sm:$0xe]  ;;  %v790_v25 = vrot.slane %v788_v16, 4  ;;  %v8117_v7 = vld [vmem:[%s9522_s1 + $0xb8] sm:$0xff]  }
  0x6b   : > { %v6309_v61 = vcombine.low %v739_v49, %v749_v55  ;;  %7600 = vmatprep.subr.bf16.mxu0 %v8103_v37  ;;  %v6607_v31 = vrot.slane %v6581_v17, 9  ;;  %v799_v43 = vshrl.u32 %v663_v32, 16  ;;  %v804_v54 = vrot.slane %v802_v44, 5 }
  0x6c   : > { %v777_v20 = vrot.slane %v775_v9, 4  ;;  %v780_v21 = vrot.slane %v778_v10, 5  ;;  %v791_v36 = vor.u32 %v790_v25, %v786_v22  ;;  %v812_v55 = vshrl.u32 %v664_v39, 16  ;;  %v8109_v25 = vld [vmem:[%s9522_s1 + $0xa8] sm:$0xff]  }
  0x6d   : > { %v801_v53 = vrot.slane %v799_v43, 4  ;;  %v810_v59 = vrot.slane %v808_v50, 5  ;;  %v3522_v16 = vrot.slane %v3520_v8, 4  ;;  %v832_v17 = vshll.u32 %v667_v62, 16 }
  0x6e   : > { %7363 = vmatmul.mubr.bf16.vlgmr.msra.gmra.mrb[0].mxu1 %v6309_v61  ;;  %7601 = vmatpush3.bf16.msra.mxu0 %v8103_v37  ;;  %v781_v30 = vor.u32 %v780_v21, %v777_v20  ;;  %v796_v37 = vrot.slane %v794_v26, 5  ;;  %v792_v46 = vrot.slane %v791_v36, 4  ;;  %v666_v61 = vld [vmem:[%s8345_s5 + $0x3c] sm:$0xf]  ;;  %v6588_v20 = vld [vmem:[%s8345_s5 + $0xac] sm:$0xf] }
  0x6f   : > { %7395 = vmatpush3.bf16.msra.mxu1 %v8569_v47  ;;  %v6582_v47 = vld [vmem:[%s8345_s5 + $0x94] sm:$0xf]  ;;  %7634 = vmatprep.subr.bf16.mxu0 %v8633_v18  ;;  %v805_v1 = vor.u32 %v804_v54, %v801_v53  ;;  %v826_v13 = vshll.u32 %v666_v61, 16  ;;  %v834_v27 = vrot.slane %v832_v17, 5  ;;  %v838_v28 = vrot.slane %v836_v19, 4 }
  0x70   : > { %7396 = vmatprep.subr.bf16.mxu1 %v8098_v2  ;;  %v3513_v38 = vrot.slane %v6582_v47, 5  ;;  %v782_v41 = vrot.slane %v781_v30, 4  ;;  %7366 = vmatprep.mubr.bf16.mxu1 %v6310_v35  ;;  %v797_v57 = vsel %vm8368_vm2, %v792_v46, %v796_v37  ;;  %v669_v35 = vld [vmem:[%s8345_s5 + $0x48] sm:$0xf]  ;;  %v8113_v36 = vld [vmem:[%s9522_s1 + $0xb0] sm:$0xff]   ;;  %v3527_v40 = vrot.slane %v6588_v20, 5 }
  0x71   : > { %7571 = vmatmul.mubr.bf16.gmra.mrb[16].mxu0 %v6637_v56  ;;  %v6586_v56 = vld [vmem:[%s8345_s5 + $0xa4] sm:$0x1]  ;;  %v806_v10 = vrot.slane %v805_v1, 4  ;;  %v828_v23 = vrot.slane %v826_v13, 5  ;;  %v3530_v44 = vrot.slane %v6589_v24, 5  ;;  %v847_v45 = vshrl.u32 %v669_v35, 16 }
  0x72   : > { %7574 = vmatprep.mubr.bf16.mxu0 %v6638_v29  ;;  %v3514_v48 = vsel %vm8468_vm5, %v6607_v31, %v3513_v38  ;;  %v3515_v49 = vrot.slane %v3513_v38, 4  ;;  %v787_v52 = vsel %vm8368_vm2, %v782_v41, %v786_v22  ;;  %v3523_v9 = vrot.slane %v6586_v56, 5  ;;  %v670_v41 = vld [vmem:[%s8345_s5 + $0x4c] sm:$0xf]  ;;  %v6591_v53 = vld [vmem:[%s8345_s5 + $0xb8] sm:$0xf] }
  0x73   : > { %7397 = vmatpush3.bf16.msra.mxu1 %v8098_v2  ;;  %v6311_v63 = vcombine.low %v787_v52, %v797_v57  ;;  %v814_v2 = vrot.slane %v812_v55, 4  ;;  %v811_v21 = vsel %vm8368_vm2, %v806_v10, %v810_v59  ;;  %v842_v29 = vshll.u32 %v668_v3, 16 }
  0x74   : > { %7398 = vmatprep.subr.bf16.mxu1 %v8100_v12  ;;  %v3517_v58 = vsel %vm8468_vm5, %v3515_v49, %v3516_v42  ;;  %v3524_v26 = vsel %vm8468_vm5, %v3522_v16, %v3523_v9  ;;  %v839_v38 = vor.u32 %v838_v28, %v834_v27  ;;  %v671_v42 = vld [vmem:[%s8345_s5 + $0x50] sm:$0x1]  ;;  %v850_v46 = vshll.u32 %v669_v35, 16  ;;  %v6593_v16 = vld [vmem:[%s8345_s5 + $0xc0] sm:$0xe] }
  0x75   : > { %v6639_v0 = vcombine.low %v3514_v48, %v3517_v58  ;;  %v815_v11 = vor.u32 %v814_v2, %v810_v59  ;;  %v6640_v31 = vcombine.low %v3521_v15, %v3524_v26  ;;  %v844_v39 = vrot.slane %v842_v29, 5  ;;  %v6590_v48 = vld [vmem:[%s8345_s5 + $0xb4] sm:$0xe]  ;;  %v6592_v58 = vld [vmem:[%s8345_s5 + $0xbc] sm:$0x1] }
  0x76   : > { %7367 = vmatmul.mubr.bf16.gmra.mrb[4].mxu1 %v6311_v63  ;;  %v840_v49 = vrot.slane %v839_v38, 4  ;;  %v3529_v51 = vrot.slane %v3527_v40, 4  ;;  %v856_v52 = vshll.u32 %v670_v41, 16  ;;  %v849_v55 = vrot.slane %v847_v45, 4  ;;  %v672_v63 = vld [vmem:[%s8345_s5 + $0x54] sm:$0xf] }
  0x77   : > { %7399 = vmatpush3.bf16.msra.mxu1 %v8100_v12  ;;  %v823_v12 = vshrl.u32 %v666_v61, 16  ;;  %v816_v22 = vrot.slane %v815_v11, 4  ;;  %v852_v56 = vrot.slane %v850_v46, 5  ;;  %v860_v57 = vshrl.u32 %v670_v41, 16  ;;  %v6595_v26 = vld [vmem:[%s8345_s5 + $0xc8] sm:$0x1] }
  0x78   : > { %7400 = vmatprep.subr.bf16.mxu1 %v8102_v34  ;;  %v845_v59 = vsel %vm8368_vm2, %v840_v49, %v844_v39  ;;  %v3531_v60 = vsel %vm8468_vm5, %v3529_v51, %v3530_v44  ;;  %v858_v61 = vrot.slane %v856_v52, 5  ;;  %v866_v62 = vshll.u32 %v671_v42, 16  ;;  %v676_v42 = vld [vmem:[%s8345_s5 + $0x64] sm:$0xf] }
  0x79   : > { %7575 = vmatmul.mubr.bf16.gmra.mrb[20].mxu0 %v6639_v0  ;;  %v825_v47 = vrot.slane %v823_v12, 4  ;;  %v821_v30 = vsel %vm8368_vm2, %v816_v22, %v820_v6  ;;  %v673_v0 = vld [vmem:[%s8345_s5 + $0x58] sm:$0xf]  ;;  %v853_v3 = vor.u32 %v852_v56, %v849_v55  ;;  %v674_v6 = vld [vmem:[%s8345_s5 + $0x5c] sm:$0x1]  ;;  %v6610_v9 = vrot.slane %v6590_v48, 9 }
  0x7a   : > { %v6312_v37 = vcombine.low %v811_v21, %v821_v30  ;;  %7578 = vmatprep.mubr.bf16.mxu0 %v6640_v31  ;;  %v868_v8 = vrot.slane %v866_v62, 5  ;;  %v3534_v10 = vrot.slane %v6591_v53, 5  ;;  %v3537_v11 = vrot.slane %v6592_v58, 5  ;;  %v6594_v22 = vld [vmem:[%s8345_s5 + $0xc4] sm:$0xf] }
  0x7b   : > { %7401 = vmatpush3.bf16.msra.mxu1 %v8102_v34  ;;  %v829_v32 = vor.u32 %v828_v23, %v825_v47  ;;  %v6609_v34 = vrot.slane %v6587_v14, 9  ;;  %v854_v12 = vrot.slane %v853_v3, 4  ;;  %v871_v14 = vshrl.u32 %v672_v63, 16  ;;  %v678_v58 = vld [vmem:[%s8345_s5 + $0x6c] sm:$0xf] }
  0x7c   : > { %7402 = vmatprep.subr.bf16.mxu1 %v8105_v5  ;;  %7370 = vmatprep.mubr.bf16.mxu1 %v6312_v37  ;;  %v874_v15 = vshll.u32 %v672_v63, 16  ;;  %v3535_v17 = vsel %vm8468_vm5, %v6610_v9, %v3534_v10  ;;  %v3536_v19 = vrot.slane %v3534_v10, 4  ;;  %v880_v20 = vshll.u32 %v673_v0, 16  ;;  %v675_v37 = vld [vmem:[%s8345_s5 + $0x60] sm:$0xf] }
  0x7d   : > { %v830_v43 = vrot.slane %v829_v32, 4  ;;  %v3528_v50 = vsel %vm8468_vm5, %v6609_v34, %v3527_v40  ;;  %v884_v21 = vshrl.u32 %v673_v0, 16  ;;  %v859_v47 = vsel %vm8368_vm2, %v854_v12, %v858_v61  ;;  %v679_v63 = vld [vmem:[%s8345_s5 + $0x70] sm:$0xf]  ;;  %v680_v0 = vld [vmem:[%s8345_s5 + $0x74] sm:$0x1] }
  0x7e   : > { %v6641_v2 = vcombine.low %v3528_v50, %v3531_v60  ;;  %v873_v24 = vrot.slane %v871_v14, 4  ;;  %v3538_v28 = vsel %vm8468_vm5, %v3536_v19, %v3537_v11  ;;  %v882_v29 = vrot.slane %v880_v20, 5 }
  0x7f   : > { %7403 = vmatpush3.bf16.msra.mxu1 %v8105_v5  ;;  %v835_v54 = vsel %vm8368_vm2, %v830_v43, %v834_v27  ;;  %v862_v5 = vrot.slane %v860_v57, 4  ;;  %v8714_v27 = vld [vmem:[%s9522_s1 + $0xc0] sm:$0xff]   ;;  %v886_v30 = vrot.slane %v884_v21, 4  ;;  %v890_v31 = vshll.u32 %v674_v6, 16  ;;  %v677_v43 = vld [vmem:[%s8345_s5 + $0x68] sm:$0x1] }
  0x80   : > { %7404 = vmatprep.subr.bf16.mxu1 %v8109_v25  ;;  %v6313_v1 = vcombine.low %v835_v54, %v845_v59  ;;  %v6642_v34 = vcombine.low %v3535_v17, %v3538_v28  ;;  %v3541_v41 = vrot.slane %v6594_v22, 5  ;;  %v3544_v45 = vrot.slane %v6595_v26, 5  ;;  %v8104_v57 = vld [vmem:[%s8345_s5 + $0x18] sm:$0xff]   ;;  %v8106_v22 = vld [vmem:[%s8345_s5 + $0x24] sm:$0xff]   ;;  %v8108_v26 = vld [vmem:[%s8345_s5 + $0x30] sm:$0xff]  }
  0x81   : > { %7579 = vmatmul.mubr.bf16.gmra.mrb[24].mxu0 %v6641_v2  ;;  %v863_v13 = vor.u32 %v862_v5, %v858_v61  ;;  %v887_v39 = vor.u32 %v886_v30, %v882_v29  ;;  %v892_v40 = vrot.slane %v890_v31, 5  ;;  %v895_v46 = vshrl.u32 %v675_v37, 16 }
  0x82   : > { %7371 = vmatmul.mubr.bf16.gmra.mrb[8].mxu1 %v6313_v1  ;;  %7582 = vmatprep.mubr.bf16.mxu0 %v6642_v34  ;;  %v898_v48 = vshll.u32 %v675_v37, 16  ;;  %v3543_v51 = vrot.slane %v3541_v41, 4  ;;  %v904_v52 = vshll.u32 %v676_v42, 16  ;;  %v908_v56 = vshrl.u32 %v676_v42, 16  ;;  %v684_v37 = vld [vmem:[%s8345_s5 + $0x84] sm:$0xf] }
  0x83   : > { %7405 = vmatpush3.bf16.msra.mxu1 %v8109_v25  ;;  %v864_v23 = vrot.slane %v863_v13, 4  ;;  %v876_v25 = vrot.slane %v874_v15, 5  ;;  %v888_v49 = vrot.slane %v887_v39, 4  ;;  %v897_v54 = vrot.slane %v895_v46, 4 }
  0x84   : > { %7406 = vmatprep.subr.bf16.mxu1 %v8113_v36  ;;  %v900_v55 = vrot.slane %v898_v48, 5  ;;  %v3545_v60 = vsel %vm8468_vm5, %v3543_v51, %v3544_v45  ;;  %v906_v61 = vrot.slane %v904_v52, 5  ;;  %v914_v62 = vshll.u32 %v677_v43, 16  ;;  %v685_v43 = vld [vmem:[%s8345_s5 + $0x88] sm:$0xf] }
  0x85   : > { %v869_v32 = vsel %vm8368_vm2, %v864_v23, %v868_v8  ;;  %v877_v35 = vor.u32 %v876_v25, %v873_v24  ;;  %v893_v59 = vsel %vm8368_vm2, %v888_v49, %v892_v40  ;;  %v910_v5 = vrot.slane %v908_v56, 4  ;;  %v681_v23 = vld [vmem:[%s8345_s5 + $0x78] sm:$0xf]  ;;  %v682_v24 = vld [vmem:[%s8345_s5 + $0x7c] sm:$0xf] }
  0x86   : > { %v6314_v38 = vcombine.low %v859_v47, %v869_v32  ;;  %v901_v3 = vor.u32 %v900_v55, %v897_v54  ;;  %v916_v6 = vrot.slane %v914_v62, 5  ;;  %v922_v8 = vshll.u32 %v678_v58, 16  ;;  %v683_v25 = vld [vmem:[%s8345_s5 + $0x80] sm:$0x1]  ;;  %v686_v48 = vld [vmem:[%s8345_s5 + $0x8c] sm:$0x1] }
  0x87   : > { %7407 = vmatpush3.bf16.msra.mxu1 %v8113_v36  ;;  %v6611_v36 = vrot.slane %v6593_v16, 9  ;;  %v878_v44 = vrot.slane %v877_v35, 4  ;;  %v928_v9 = vshll.u32 %v679_v63, 16  ;;  %v911_v11 = vor.u32 %v910_v5, %v906_v61  ;;  %v8115_v54 = vld [vmem:[%s9522_s1 + $0x1d0] sm:$0xff]  }
  0x88   : > { %7408 = vmatprep.subr.bf16.mxu1 %v8117_v7  ;;  %7374 = vmatprep.mubr.bf16.mxu1 %v6314_v38  ;;  %v902_v10 = vrot.slane %v901_v3, 4  ;;  %v932_v12 = vshrl.u32 %v679_v63, 16  ;;  %v938_v13 = vshll.u32 %v680_v0, 16  ;;  %v924_v15 = vrot.slane %v922_v8, 5  ;;  %v8111_v38 = vld [vmem:[%s9522_s1 + $0x1c8] sm:$0xff]   ;;  %v8110_v63 = vld [vmem:[%s8345_s5 + $0x3c] sm:$0xff]  }
  0x89   : > { %v3542_v50 = vsel %vm8468_vm5, %v6611_v36, %v3541_v41  ;;  %v883_v53 = vsel %vm8368_vm2, %v878_v44, %v882_v29  ;;  %v930_v16 = vrot.slane %v928_v9, 5  ;;  %v912_v19 = vrot.slane %v911_v11, 4  ;;  %v8112_v3 = vld [vmem:[%s8345_s5 + $0x48] sm:$0xff]   ;;  %v688_v8 = vld [vmem:[%s8345_s5 + $0x94] sm:$0xf] }
  0x8a   : > { %v6315_v1 = vcombine.low %v883_v53, %v893_v59  ;;  %v6643_v2 = vcombine.low %v3542_v50, %v3545_v60  ;;  %v907_v17 = vsel %vm8368_vm2, %v902_v10, %v906_v61  ;;  %v934_v20 = vrot.slane %v932_v12, 4  ;;  %v689_v9 = vld [vmem:[%s8345_s5 + $0x98] sm:$0x1] }
  0x8b   : > { %7409 = vmatpush3.bf16.msra.mxu1 %v8117_v7  ;;  %v919_v7 = vshrl.u32 %v678_v58, 16  ;;  %v940_v21 = vrot.slane %v938_v13, 5  ;;  %v917_v28 = vsel %vm8368_vm2, %v912_v19, %v916_v6  ;;  %v943_v30 = vshrl.u32 %v681_v23, 16 }
  0x8c   : > { %7442 = vmatprep.subr.bf16.mxu1 %v8714_v27  ;;  %7375 = vmatmul.mubr.bf16.gmra.mrb[12].mxu1 %v6315_v1  ;;  %v935_v29 = vor.u32 %v934_v20, %v930_v16  ;;  %v946_v31 = vshll.u32 %v681_v23, 16  ;;  %v6316_v32 = vcombine.low %v907_v17, %v917_v28  ;;  %v952_v35 = vshll.u32 %v682_v24, 16  ;;  %v690_v20 = vld [vmem:[%s8345_s5 + $0x9c] sm:$0xf] }
  0x8d   : > { %7583 = vmatmul.mubr.bf16.gmra.mrb[28].mxu0 %v6643_v2  ;;  %v921_v14 = vrot.slane %v919_v7, 4  ;;  %v956_v36 = vshrl.u32 %v682_v24, 16  ;;  %v945_v40 = vrot.slane %v943_v30, 4  ;;  %v962_v42 = vshll.u32 %v683_v25, 16  ;;  %v687_v2 = vld [vmem:[%s8345_s5 + $0x90] sm:$0xf] }
  0x8e   : > { %7602 = vmatprep.mubr.bf16.mxu0 %v8104_v57  ;;  %v936_v39 = vrot.slane %v935_v29, 4  ;;  %v948_v41 = vrot.slane %v946_v31, 5  ;;  %7378 = vmatprep.mubr.bf16.mxu1 %v6316_v32  ;;  %v954_v45 = vrot.slane %v952_v35, 5  ;;  %v967_v49 = vshrl.u32 %v684_v37, 16  ;;  %v691_v24 = vld [vmem:[%s8345_s5 + $0xa0] sm:$0xf] }
  0x8f   : > { %v925_v47 = vor.u32 %v924_v15, %v921_v14  ;;  %v958_v46 = vrot.slane %v956_v36, 4  ;;  %v964_v52 = vrot.slane %v962_v42, 5  ;;  %v970_v53 = vshll.u32 %v684_v37, 16  ;;  %v8119_v14 = vld [vmem:[%s9522_s1 + $0x1d8] sm:$0xff]   ;;  %v692_v29 = vld [vmem:[%s8345_s5 + $0xa4] sm:$0x1] }
  0x90   : > { %v941_v50 = vsel %vm8368_vm2, %v936_v39, %v940_v21  ;;  %v949_v51 = vor.u32 %v948_v41, %v945_v40  ;;  %v969_v57 = vrot.slane %v967_v49, 4  ;;  %v976_v58 = vshll.u32 %v685_v43, 16  ;;  %v8123_v36 = vld [vmem:[%s9522_s1 + $0x1e0] sm:$0xff]  }
  0x91   : > { %v926_v34 = vrot.slane %v925_v47, 4  ;;  %v959_v56 = vor.u32 %v958_v46, %v954_v45  ;;  %v972_v60 = vrot.slane %v970_v53, 5  ;;  %v980_v61 = vshrl.u32 %v685_v43, 16  ;;  %v693_v53 = vld [vmem:[%s8345_s5 + $0xa8] sm:$0xf] }
  0x92   : > { %v950_v59 = vrot.slane %v949_v51, 4  ;;  %v986_v62 = vshll.u32 %v686_v48, 16  ;;  %v978_v1 = vrot.slane %v976_v58, 5  ;;  %v991_v11 = vshrl.u32 %v687_v2, 16  ;;  %v695_v58 = vld [vmem:[%s8345_s5 + $0xb0] sm:$0x1] }
  0x93   : > { %v931_v44 = vsel %vm8368_vm2, %v926_v34, %v930_v16  ;;  %v960_v0 = vrot.slane %v959_v56, 4  ;;  %v973_v5 = vor.u32 %v972_v60, %v969_v57  ;;  %v982_v6 = vrot.slane %v980_v61, 4 }
  0x94   : > { %v6317_v55 = vcombine.low %v931_v44, %v941_v50  ;;  %v988_v7 = vrot.slane %v986_v62, 5  ;;  %v994_v12 = vshll.u32 %v687_v2, 16  ;;  %v1000_v13 = vshll.u32 %v688_v8, 16  ;;  %v8116_v50 = vld [vmem:[%s8345_s5 + $0x60] sm:$0xff]  }
  0x95   : > { %7603 = vmatmul.mubr.bf16.vlgmr.msra.gmra.mrb[0].mxu0 %v8106_v22  ;;  %v965_v10 = vsel %vm8368_vm2, %v960_v0, %v964_v52  ;;  %v974_v16 = vrot.slane %v973_v5, 4  ;;  %v983_v17 = vor.u32 %v982_v6, %v978_v1  ;;  %v1004_v19 = vshrl.u32 %v688_v8, 16  ;;  %v8127_v0 = vld [vmem:[%s9522_s1 + $0x1e8] sm:$0xff]   ;;  %v696_v5 = vld [vmem:[%s8345_s5 + $0xb4] sm:$0xf] }
  0x96   : > { %7635 = vmatpush3.bf16.msra.mxu0 %v8633_v18  ;;  %7606 = vmatprep.mubr.bf16.mxu0 %v8108_v26  ;;  %v955_v18 = vsel %vm8368_vm2, %v950_v59, %v954_v45  ;;  %v993_v21 = vrot.slane %v991_v11, 4  ;;  %v996_v22 = vrot.slane %v994_v12, 5  ;;  %v1002_v47 = vrot.slane %v1000_v13, 5  ;;  %v8114_v45 = vld [vmem:[%s8345_s5 + $0x54] sm:$0xff]  }
  0x97   : > { %7636 = vmatprep.subr.bf16.mxu0 %v8111_v38  ;;  %7379 = vmatmul.mubr.bf16.gmra.mrb[16].mxu1 %v6317_v55  ;;  %v6318_v15 = vcombine.low %v955_v18, %v965_v10  ;;  %v1010_v23 = vshll.u32 %v689_v9, 16  ;;  %v979_v25 = vsel %vm8368_vm2, %v974_v16, %v978_v1  ;;  %v984_v26 = vrot.slane %v983_v17, 4  ;;  %v697_v9 = vld [vmem:[%s8345_s5 + $0xb8] sm:$0xf]  ;;  %v698_v10 = vld [vmem:[%s8345_s5 + $0xbc] sm:$0x1] }
  0x98   : > { %v1006_v28 = vrot.slane %v1004_v19, 4  ;;  %v1015_v30 = vshrl.u32 %v690_v20, 16  ;;  %v997_v31 = vor.u32 %v996_v22, %v993_v21  ;;  %v1018_v34 = vshll.u32 %v690_v20, 16 }
  0x99   : > { %7382 = vmatprep.mubr.bf16.mxu1 %v6318_v15  ;;  %v1012_v32 = vrot.slane %v1010_v23, 5  ;;  %v1024_v35 = vshll.u32 %v691_v24, 16  ;;  %v989_v37 = vsel %vm8368_vm2, %v984_v26, %v988_v7  ;;  %v1028_v40 = vshrl.u32 %v691_v24, 16  ;;  %v8131_v15 = vld [vmem:[%s9522_s1 + $0x1f0] sm:$0xff]  }
  0x9a   : > { %7637 = vmatpush3.bf16.msra.mxu0 %v8111_v38  ;;  %v1007_v38 = vor.u32 %v1006_v28, %v1002_v47  ;;  %v1017_v39 = vrot.slane %v1015_v30, 4  ;;  %v6319_v41 = vcombine.low %v979_v25, %v989_v37  ;;  %v998_v42 = vrot.slane %v997_v31, 4  ;;  %v8118_v24 = vld [vmem:[%s8345_s5 + $0x6c] sm:$0xff]   ;;  %v1472_v37 = vld [vmem:[%s8345_s5] sm:$0xe] }
  0x9b   : > { %7638 = vmatprep.subr.bf16.mxu0 %v8115_v54  ;;  %v1020_v43 = vrot.slane %v1018_v34, 5  ;;  %v1026_v44 = vrot.slane %v1024_v35, 5  ;;  %v1030_v48 = vrot.slane %v1028_v40, 4  ;;  %v1034_v49 = vshll.u32 %v692_v29, 16  ;;  %v8120_v29 = vld [vmem:[%s8345_s5 + $0x78] sm:$0xff]  }
  0x9c   : > { %v1008_v46 = vrot.slane %v1007_v38, 4  ;;  %v1003_v51 = vsel %vm8368_vm2, %v998_v42, %v1002_v47  ;;  %v1039_v59 = vshrl.u32 %v693_v53, 16  ;;  %v1042_v62 = vshll.u32 %v693_v53, 16  ;;  %v8135_v34 = vld [vmem:[%s9522_s1 + $0x1f8] sm:$0xff]   ;;  %v1473_v38 = vld [vmem:[%s8345_s5 + $0x4] sm:$0xf] }
  0x9d   : > { %7607 = vmatmul.mubr.bf16.gmra.mrb[4].mxu0 %v8110_v63  ;;  %v1021_v52 = vor.u32 %v1020_v43, %v1017_v39  ;;  %v1031_v56 = vor.u32 %v1030_v48, %v1026_v44  ;;  %v1036_v57 = vrot.slane %v1034_v49, 5  ;;  %v1058_v18 = vshll.u32 %v695_v58, 16  ;;  %v1474_v39 = vld [vmem:[%s8345_s5 + $0x8] sm:$0x1]  ;;  %v1475_v48 = vld [vmem:[%s8345_s5 + $0xc] sm:$0xe] }
  0x9e   : > { %7610 = vmatprep.mubr.bf16.mxu0 %v8112_v3  ;;  %7639 = vmatpush3.bf16.msra.mxu0 %v8115_v54  ;;  %v694_v54 = vld [vmem:[%s8345_s5 + $0xac] sm:$0xf]  ;;  %v1013_v55 = vsel %vm8368_vm2, %v1008_v46, %v1012_v32  ;;  %v1041_v2 = vrot.slane %v1039_v59, 4  ;;  %v1044_v7 = vrot.slane %v1042_v62, 5  ;;  %v1066_v19 = vshll.u32 %v696_v5, 16 }
  0x9f   : > { %7640 = vmatprep.subr.bf16.mxu0 %v8119_v14  ;;  %7383 = vmatmul.mubr.bf16.gmra.mrb[20].mxu1 %v6319_v41  ;;  %v6320_v60 = vcombine.low %v1003_v51, %v1013_v55  ;;  %v1022_v61 = vrot.slane %v1021_v52, 4  ;;  %v1048_v63 = vshll.u32 %v694_v54, 16  ;;  %v1032_v1 = vrot.slane %v1031_v56, 4  ;;  %v1476_v49 = vld [vmem:[%s8345_s5 + $0x10] sm:$0xf]  ;;  %v8122_v55 = vld [vmem:[%s8345_s5 + $0x84] sm:$0xff]  }
  0xa0   : > { %v1052_v3 = vshrl.u32 %v694_v54, 16  ;;  %v1060_v13 = vrot.slane %v1058_v18, 5  ;;  %v1045_v17 = vor.u32 %v1044_v7, %v1041_v2  ;;  %v1072_v20 = vshll.u32 %v697_v9, 16  ;;  %v1477_v53 = vld [vmem:[%s8345_s5 + $0x14] sm:$0x1]  ;;  %v8824_v56 = vld [vmem:[%s9522_s1 + $0x200] sm:$0xff]  }
  0xa1   : > { %7386 = vmatprep.mubr.bf16.mxu1 %v6320_v60  ;;  %v1027_v6 = vsel %vm8368_vm2, %v1022_v61, %v1026_v44  ;;  %v1050_v8 = vrot.slane %v1048_v63, 5  ;;  %v1037_v11 = vsel %vm8368_vm2, %v1032_v1, %v1036_v57  ;;  %v1076_v47 = vshrl.u32 %v697_v9, 16  ;;  %v1478_v1 = vld [vmem:[%s8345_s5 + $0x18] sm:$0xe]  ;;  %v8124_v2 = vld [vmem:[%s8345_s5 + $0x90] sm:$0xff]  }
  0xa2   : > { %7641 = vmatpush3.bf16.msra.mxu0 %v8119_v14  ;;  %v1054_v12 = vrot.slane %v1052_v3, 4  ;;  %v1063_v14 = vshrl.u32 %v696_v5, 16  ;;  %v6321_v16 = vcombine.low %v1027_v6, %v1037_v11  ;;  %v1082_v23 = vshll.u32 %v698_v10, 16  ;;  %v1479_v3 = vld [vmem:[%s8345_s5 + $0x1c] sm:$0xf] }
  0xa3   : > { %7642 = vmatprep.subr.bf16.mxu0 %v8123_v36  ;;  %v1046_v25 = vrot.slane %v1045_v17, 4  ;;  %v1068_v26 = vrot.slane %v1066_v19, 5  ;;  %v1074_v28 = vrot.slane %v1072_v20, 5  ;;  %v1078_v31 = vrot.slane %v1076_v47, 4  ;;  %v1480_v18 = vld [vmem:[%s8345_s5 + $0x20] sm:$0x1] }
  0xa4   : > { %v1055_v21 = vor.u32 %v1054_v12, %v1050_v8  ;;  %v1065_v22 = vrot.slane %v1063_v14, 4  ;;  %v1084_v32 = vrot.slane %v1082_v23, 5  ;;  %v6332_v42 = vrot.slane %v1472_v37, 9  ;;  %v1481_v10 = vld [vmem:[%s8345_s5 + $0x24] sm:$0xe]  ;;  %v8126_v47 = vld [vmem:[%s8345_s5 + $0x9c] sm:$0xff]  }
  0xa5   : > { %7611 = vmatmul.mubr.bf16.gmra.mrb[8].mxu0 %v8114_v45  ;;  %v1051_v35 = vsel %vm8368_vm2, %v1046_v25, %v1050_v8  ;;  %v1079_v41 = vor.u32 %v1078_v31, %v1074_v28  ;;  %v1573_v43 = vrot.slane %v1473_v38, 5  ;;  %v1576_v46 = vrot.slane %v1474_v39, 5  ;;  %v1482_v11 = vld [vmem:[%s8345_s5 + $0x28] sm:$0xf]  ;;  %v1483_v12 = vld [vmem:[%s8345_s5 + $0x2c] sm:$0x1] }
  0xa6   : > { %7614 = vmatprep.mubr.bf16.mxu0 %v8116_v50  ;;  %7643 = vmatpush3.bf16.msra.mxu0 %v8123_v36  ;;  %v1056_v30 = vrot.slane %v1055_v21, 4  ;;  %v1069_v36 = vor.u32 %v1068_v26, %v1065_v22  ;;  %v6333_v54 = vrot.slane %v1475_v48, 9  ;;  %v1580_v58 = vrot.slane %v1476_v49, 5  ;;  %v8125_v22 = vld [vmem:[%s9522_s1 + $0xc8] sm:$0xff]   ;;  %v1485_v25 = vld [vmem:[%s8345_s5 + $0x34] sm:$0xf] }
  0xa7   : > { %7644 = vmatprep.subr.bf16.mxu0 %v8127_v0  ;;  %7387 = vmatmul.mubr.bf16.gmra.mrb[24].mxu1 %v6321_v16  ;;  %v1080_v50 = vrot.slane %v1079_v41, 4  ;;  %v1574_v51 = vsel %vm8468_vm5, %v6332_v42, %v1573_v43  ;;  %v1575_v52 = vrot.slane %v1573_v43, 4  ;;  %v1583_v59 = vrot.slane %v1477_v53, 5  ;;  %v1486_v26 = vld [vmem:[%s8345_s5 + $0x38] sm:$0x1]  ;;  %v8128_v31 = vld [vmem:[%s8345_s5 + $0xa8] sm:$0xff]  }
  0xa8   : > { %v1061_v40 = vsel %vm8368_vm2, %v1056_v30, %v1060_v13  ;;  %v1070_v45 = vrot.slane %v1069_v36, 4  ;;  %v6334_v5 = vrot.slane %v1478_v1, 9  ;;  %v1587_v6 = vrot.slane %v1479_v3, 5  ;;  %v1489_v36 = vld [vmem:[%s8345_s5 + $0x44] sm:$0x1]  ;;  %v8130_v48 = vld [vmem:[%s8345_s5 + $0xb4] sm:$0xff]  }
  0xa9   : > { %v6322_v44 = vcombine.low %v1051_v35, %v1061_v40  ;;  %v1085_v60 = vsel %vm8368_vm2, %v1080_v50, %v1084_v32  ;;  %v1577_v61 = vsel %vm8468_vm5, %v1575_v52, %v1576_v46  ;;  %v1590_v7 = vrot.slane %v1480_v18, 5  ;;  %v1487_v32 = vld [vmem:[%s8345_s5 + $0x3c] sm:$0xe]  ;;  %v1488_v35 = vld [vmem:[%s8345_s5 + $0x40] sm:$0xf]  ;;  %v8129_v40 = vld [vmem:[%s9522_s1 + $0xd0] sm:$0xff]  }
  0xaa   : > { %7645 = vmatpush3.bf16.msra.mxu0 %v8127_v0  ;;  %v1075_v57 = vsel %vm8368_vm2, %v1070_v45, %v1074_v28  ;;  %v6364_v63 = vcombine.low %v1574_v51, %v1577_v61  ;;  %v1582_v0 = vrot.slane %v1580_v58, 4  ;;  %v1581_v8 = vsel %vm8468_vm5, %v6333_v54, %v1580_v58  ;;  %v1491_v49 = vld [vmem:[%s8345_s5 + $0x4c] sm:$0xf]  ;;  %v1492_v50 = vld [vmem:[%s8345_s5 + $0x50] sm:$0x1]  ;;  %v8133_v52 = vld [vmem:[%s9522_s1 + $0xd8] sm:$0xff]  }
  0xab   : > { %7646 = vmatprep.subr.bf16.mxu0 %v8131_v15  ;;  %7390 = vmatprep.mubr.bf16.mxu1 %v6322_v44  ;;  %v6323_v62 = vcombine.low %v1075_v57, %v1085_v60  ;;  %v1588_v13 = vsel %vm8468_vm5, %v6334_v5, %v1587_v6  ;;  %v1589_v14 = vrot.slane %v1587_v6, 4  ;;  %v6335_v16 = vrot.slane %v1481_v10, 9  ;;  %v1490_v44 = vld [vmem:[%s8345_s5 + $0x48] sm:$0xe]  ;;  %v1493_v57 = vld [vmem:[%s8345_s5 + $0x54] sm:$0xe] }
  0xac   : > { %v1584_v9 = vsel %vm8468_vm5, %v1582_v0, %v1583_v59  ;;  %v1597_v21 = vrot.slane %v1483_v12, 5  ;;  %v1604_v30 = vrot.slane %v1486_v26, 5  ;;  %v1608_v39 = vrot.slane %v1488_v35, 5  ;;  %v1494_v58 = vld [vmem:[%s8345_s5 + $0x58] sm:$0xf]  ;;  %v8132_v61 = vld [vmem:[%s8345_s5 + $0xc0] sm:$0xff]  }
  0xad   : > { %7615 = vmatmul.mubr.bf16.gmra.mrb[12].mxu0 %v8118_v24  ;;  %v6365_v17 = vcombine.low %v1581_v8, %v1584_v9  ;;  %v1591_v19 = vsel %vm8468_vm5, %v1589_v14, %v1590_v7  ;;  %v1484_v24 = vld [vmem:[%s8345_s5 + $0x30] sm:$0xe]  ;;  %v6337_v42 = vrot.slane %v1487_v32, 9  ;;  %v1611_v43 = vrot.slane %v1489_v36, 5  ;;  %v1495_v59 = vld [vmem:[%s8345_s5 + $0x5c] sm:$0x1] }
  0xae   : > { %7618 = vmatprep.mubr.bf16.mxu0 %v8120_v29  ;;  %7647 = vmatpush3.bf16.msra.mxu0 %v8131_v15  ;;  %v1594_v15 = vrot.slane %v1482_v11, 5  ;;  %v6366_v23 = vcombine.low %v1588_v13, %v1591_v19  ;;  %v6336_v28 = vrot.slane %v1484_v24, 9  ;;  %v1601_v29 = vrot.slane %v1485_v25, 5  ;;  %v8136_v6 = vld [vmem:[%s9522_s1 + $0xe0] sm:$0xff]   ;;  %v1498_v11 = vld [vmem:[%s8345_s5 + $0x68] sm:$0x1] }
  0xaf   : > { %7648 = vmatprep.subr.bf16.mxu0 %v8135_v34  ;;  %7391 = vmatmul.mubr.bf16.gmra.mrb[28].mxu1 %v6323_v62  ;;  %v1610_v46 = vrot.slane %v1608_v39, 4  ;;  %v6338_v51 = vrot.slane %v1490_v44, 9  ;;  %v1615_v54 = vrot.slane %v1491_v49, 5  ;;  %v6339_v62 = vrot.slane %v1493_v57, 9  ;;  %v1496_v7 = vld [vmem:[%s8345_s5 + $0x60] sm:$0xe] }
  0xb0   : > { %7410 = vmatprep.mubr.bf16.mxu1 %v6364_v63  ;;  %v1596_v20 = vrot.slane %v1594_v15, 4  ;;  %v1595_v37 = vsel %vm8468_vm5, %v6335_v16, %v1594_v15  ;;  %v1622_v63 = vrot.slane %v1494_v58, 5  ;;  %v1609_v0 = vsel %vm8468_vm5, %v6337_v42, %v1608_v39  ;;  %v1497_v8 = vld [vmem:[%s8345_s5 + $0x64] sm:$0xf]  ;;  %v6724_v13 = vld [vmem:[%s8345_s5 + $0x18] sm:$0xf] }
  0xb1   : > { %v1617_v60 = vrot.slane %v1615_v54, 4  ;;  %v1612_v1 = vsel %vm8468_vm5, %v1610_v46, %v1611_v43  ;;  %v1616_v3 = vsel %vm8468_vm5, %v6338_v51, %v1615_v54  ;;  %v1629_v12 = vrot.slane %v1497_v8, 5  ;;  %v8134_v16 = vld [vmem:[%s8345_s5 + $0xcc] sm:$0xff]   ;;  %v6725_v19 = vld [vmem:[%s8345_s5 + $0x1c] sm:$0xf] }
  0xb2   : > { %7649 = vmatpush3.bf16.msra.mxu0 %v8135_v34  ;;  %v1603_v34 = vrot.slane %v1601_v29, 4  ;;  %v1598_v38 = vsel %vm8468_vm5, %v1596_v20, %v1597_v21  ;;  %v1624_v5 = vrot.slane %v1622_v63, 4  ;;  %v6369_v9 = vcombine.low %v1609_v0, %v1612_v1  ;;  %v6726_v20 = vld [vmem:[%s8345_s5 + $0x20] sm:$0x1]  ;;  %v1499_v26 = vld [vmem:[%s8345_s5 + $0x6c] sm:$0xe] }
  0xb3   : > { %7682 = vmatprep.subr.bf16.mxu0 %v8824_v56  ;;  %v6367_v45 = vcombine.low %v1595_v37, %v1598_v38  ;;  %v8897_v10 = vsel %vm8468_vm5, %v6339_v62, %v1622_v63  ;;  %v4432_v21 = vshrl.u32 %v6724_v13, 16  ;;  %v4435_v24 = vshll.u32 %v6724_v13, 16  ;;  %v1501_v36 = vld [vmem:[%s8345_s5 + $0x74] sm:$0x1]  ;;  %v6727_v46 = vld [vmem:[%s8345_s5 + $0x24] sm:$0xf] }
  0xb4   : > { %v1605_v41 = vsel %vm8468_vm5, %v1603_v34, %v1604_v30  ;;  %v4441_v25 = vshll.u32 %v6725_v19, 16  ;;  %v4451_v30 = vshll.u32 %v6726_v20, 16  ;;  %v6341_v32 = vrot.slane %v1499_v26, 9  ;;  %v6729_v51 = vld [vmem:[%s8345_s5 + $0x2c] sm:$0x1] }
  0xb5   : > { %7619 = vmatmul.mubr.bf16.gmra.mrb[16].mxu0 %v8122_v55  ;;  %v1618_v55 = vrot.slane %v1492_v50, 5  ;;  %v4437_v34 = vrot.slane %v4435_v24, 5  ;;  %v6728_v50 = vld [vmem:[%s8345_s5 + $0x28] sm:$0xf]  ;;  %v1504_v8 = vld [vmem:[%s8345_s5 + $0x80] sm:$0x1] }
  0xb6   : > { %7622 = vmatprep.mubr.bf16.mxu0 %v8124_v2  ;;  %v1625_v2 = vrot.slane %v1495_v59, 5  ;;  %v4443_v35 = vrot.slane %v4441_v25, 5  ;;  %v4453_v44 = vrot.slane %v4451_v30, 5  ;;  %v4465_v57 = vshll.u32 %v6728_v50, 16  ;;  %v6732_v20 = vld [vmem:[%s8345_s5 + $0x38] sm:$0x1] }
  0xb7   : > { %7411 = vmatmul.mubr.bf16.vlgmr.msra.gmra.mrb[0].mxu1 %v6365_v17  ;;  %v1619_v18 = vsel %vm8468_vm5, %v1617_v60, %v1618_v55  ;;  %v6340_v17 = vrot.slane %v1496_v7, 9  ;;  %v4469_v58 = vshrl.u32 %v6728_v50, 16  ;;  %v1503_v7 = vld [vmem:[%s8345_s5 + $0x7c] sm:$0xf]  ;;  %v1505_v26 = vld [vmem:[%s8345_s5 + $0x84] sm:$0xe] }
  0xb8   : > { %7443 = vmatpush3.bf16.msra.mxu1 %v8714_v27  ;;  %7414 = vmatprep.mubr.bf16.mxu1 %v6366_v23  ;;  %v1602_v27 = vsel %vm8468_vm5, %v6336_v28, %v1601_v29  ;;  %v6370_v14 = vcombine.low %v1616_v3, %v1619_v18  ;;  %v8903_v15 = vsel %vm8468_vm5, %v1624_v5, %v1625_v2  ;;  %v1632_v23 = vrot.slane %v1498_v11, 5  ;;  %v1502_v3 = vld [vmem:[%s8345_s5 + $0x78] sm:$0xe] }
  0xb9   : > { %7444 = vmatprep.subr.bf16.mxu1 %v8125_v22  ;;  %v6368_v53 = vcombine.low %v1602_v27, %v1605_v41  ;;  %v4434_v28 = vrot.slane %v4432_v21, 4  ;;  %v4445_v29 = vshrl.u32 %v6725_v19, 16  ;;  %v6371_v38 = vcombine.low %v8897_v10, %v8903_v15  ;;  %v8140_v41 = vld [vmem:[%s9522_s1 + $0xf0] sm:$0xff]   ;;  %v8142_v10 = vld [vmem:[%s9522_s1 + $0xf8] sm:$0xff]  }
  0xba   : > { %v1630_v39 = vsel %vm8468_vm5, %v6340_v17, %v1629_v12  ;;  %v1639_v27 = vrot.slane %v1501_v36, 5  ;;  %v4467_v0 = vrot.slane %v4465_v57, 5  ;;  %v4471_v1 = vrot.slane %v4469_v58, 4  ;;  %v6730_v15 = vld [vmem:[%s8345_s5 + $0x30] sm:$0xf] }
  0xbb   : > { %v4438_v43 = vor.u32 %v4437_v34, %v4434_v28  ;;  %v4475_v2 = vshll.u32 %v6729_v51, 16  ;;  %v1646_v19 = vrot.slane %v1504_v8, 5  ;;  %v4480_v21 = vshrl.u32 %v6730_v15, 16 }
  0xbc   : > { %7445 = vmatpush3.bf16.msra.mxu1 %v8125_v22  ;;  %v8138_v22 = vld [vmem:[%s9522_s1 + $0xe8] sm:$0xff]  }
  0xbd   : > { %7623 = vmatmul.mubr.bf16.gmra.mrb[20].mxu0 %v8126_v47  ;;  %7446 = vmatprep.subr.bf16.mxu1 %v8129_v40  ;;  %v1631_v47 = vrot.slane %v1629_v12, 4  ;;  %v4439_v54 = vrot.slane %v4438_v43, 4  ;;  %v4472_v12 = vor.u32 %v4471_v1, %v4467_v0  ;;  %v4477_v13 = vrot.slane %v4475_v2, 5  ;;  %v6733_v43 = vld [vmem:[%s8345_s5 + $0x3c] sm:$0xf] }
  0xbe   : > { %7626 = vmatprep.mubr.bf16.mxu0 %v8128_v31  ;;  %v1500_v31 = vld [vmem:[%s8345_s5 + $0x70] sm:$0xf] }
  0xbf   : > { %7415 = vmatmul.mubr.bf16.gmra.mrb[4].mxu1 %v6367_v45  ;;  %v1636_v37 = vrot.slane %v1500_v31, 5  ;;  %v1633_v42 = vsel %vm8468_vm5, %v1631_v47, %v1632_v23  ;;  %v4444_v63 = vsel %vm8368_vm2, %v4439_v54, %v4443_v35  ;;  %v4473_v47 = vrot.slane %v4472_v12, 4  ;;  %v8143_v12 = vld [vmem:[%s9522_s1 + $0x218] sm:$0xff]  }
  0xc0   : > { %7418 = vmatprep.mubr.bf16.mxu1 %v6368_v53  ;;  %7447 = vmatpush3.bf16.msra.mxu1 %v8129_v40  ;;  %v4447_v40 = vrot.slane %v4445_v29, 4  ;;  %v4459_v53 = vshll.u32 %v6727_v46, 16  ;;  %v6372_v59 = vcombine.low %v1630_v39, %v1633_v42  ;;  %v4482_v29 = vrot.slane %v4480_v21, 4 }
  0xc1   : > { %7448 = vmatprep.subr.bf16.mxu1 %v8133_v52  ;;  %v1638_v45 = vrot.slane %v1636_v37, 4  ;;  %v8926_v49 = vsel %vm8468_vm5, %v6341_v32, %v1636_v37  ;;  %v1506_v32 = vld [vmem:[%s8345_s5 + $0x88] sm:$0xf]  ;;  %v4478_v34 = vsel %vm8368_vm2, %v4473_v47, %v4477_v13  ;;  %v4499_v37 = vshll.u32 %v6732_v20, 16 }
  0xc2   : > { %v4461_v62 = vrot.slane %v4459_v53, 5  ;;  %v4504_v53 = vshrl.u32 %v6733_v43, 16  ;;  %v4507_v54 = vshll.u32 %v6733_v43, 16 }
  0xc3   : > { %v8932_v55 = vsel %vm8468_vm5, %v1638_v45, %v1639_v27  ;;  %v6343_v45 = vrot.slane %v1505_v26, 9 }
  0xc4   : > { %7449 = vmatpush3.bf16.msra.mxu1 %v8133_v52  ;;  %v4456_v52 = vshrl.u32 %v6727_v46, 16  ;;  %v6373_v5 = vcombine.low %v8926_v49, %v8932_v55  ;;  %v1650_v46 = vrot.slane %v1506_v32, 5  ;;  %v6734_v49 = vld [vmem:[%s8345_s5 + $0x40] sm:$0xf] }
  0xc5   : > { %7627 = vmatmul.mubr.bf16.gmra.mrb[24].mxu0 %v8130_v48  ;;  %7450 = vmatprep.subr.bf16.mxu1 %v8136_v6  ;;  %v4448_v48 = vor.u32 %v4447_v40, %v4443_v35  ;;  %v4513_v58 = vshll.u32 %v6734_v49, 16 }
  0xc6   : > { %7630 = vmatprep.mubr.bf16.mxu0 %v8132_v61  ;;  %v4458_v61 = vrot.slane %v4456_v52, 4  ;;  %v6735_v52 = vld [vmem:[%s8345_s5 + $0x44] sm:$0x1]  ;;  %v1651_v55 = vsel %vm8468_vm5, %v6343_v45, %v1650_v46  ;;  %v1652_v57 = vrot.slane %v1650_v46, 4 }
  0xc7   : > { %7419 = vmatmul.mubr.bf16.gmra.mrb[8].mxu1 %v6369_v9  ;;  %v4449_v60 = vrot.slane %v4448_v48, 4  ;;  %v6342_v9 = vrot.slane %v1502_v3, 9  ;;  %v4515_v2 = vrot.slane %v4513_v58, 5  ;;  %v8146_v45 = vld [vmem:[%s9522_s1 + $0x220] sm:$0xff]  }
  0xc8   : > { %7422 = vmatprep.mubr.bf16.mxu1 %v6370_v14  ;;  %7451 = vmatpush3.bf16.msra.mxu1 %v8136_v6  ;;  %v4462_v6 = vor.u32 %v4461_v62, %v4458_v61  ;;  %v1643_v14 = vrot.slane %v1503_v7, 5  ;;  %v4506_v62 = vrot.slane %v4504_v53, 4 }
  0xc9   : > { %7452 = vmatprep.subr.bf16.mxu1 %v8138_v22  ;;  %v4454_v18 = vsel %vm8368_vm2, %v4449_v60, %v4453_v44  ;;  %v4501_v44 = vrot.slane %v4499_v37, 5  ;;  %v8972_v60 = vld [vmem:[%s9522_s1 + $0x100] sm:$0xff]  }
  0xca   : > { %v6788_v11 = vcombine.low %v4444_v63, %v4454_v18  ;;  %v4463_v17 = vrot.slane %v4462_v6, 4  ;;  %v1644_v23 = vsel %vm8468_vm5, %v6342_v9, %v1643_v14  ;;  %v1645_v24 = vrot.slane %v1643_v14, 4  ;;  %v1509_v9 = vld [vmem:[%s8345_s5 + $0x94] sm:$0xf] }
  0xcb   : > { %v4509_v63 = vrot.slane %v4507_v54, 5  ;;  %v4523_v18 = vshll.u32 %v6735_v52, 16  ;;  %v6741_v54 = vld [vmem:[%s8345_s5 + $0x5c] sm:$0x1] }
  0xcc   : > { %7453 = vmatpush3.bf16.msra.mxu1 %v8138_v22  ;;  %v4483_v22 = vshll.u32 %v6730_v15, 16  ;;  %v4468_v28 = vsel %vm8368_vm2, %v4463_v17, %v4467_v0  ;;  %v1647_v35 = vsel %vm8468_vm5, %v1645_v24, %v1646_v19  ;;  %v8141_v0 = vld [vmem:[%s9522_s1 + $0x210] sm:$0xff]   ;;  %v6736_v17 = vld [vmem:[%s8345_s5 + $0x48] sm:$0xf]  ;;  %v6737_v19 = vld [vmem:[%s8345_s5 + $0x4c] sm:$0xf] }
  0xcd   : > { %7631 = vmatmul.mubr.bf16.gmra.mrb[28].mxu0 %v8134_v16  ;;  %7454 = vmatprep.subr.bf16.mxu1 %v8140_v41  ;;  %v6731_v16 = vld [vmem:[%s8345_s5 + $0x34] sm:$0xf]  ;;  %v6789_v39 = vcombine.low %v4468_v28, %v4478_v34  ;;  %v6374_v40 = vcombine.low %v1644_v23, %v1647_v35  ;;  %v4510_v8 = vor.u32 %v4509_v63, %v4506_v62  ;;  %v4525_v15 = vrot.slane %v4523_v18, 5  ;;  %v1512_v35 = vld [vmem:[%s8345_s5 + $0xa0] sm:$0xf] }
  0xce   : > { %7650 = vmatprep.mubr.bf16.mxu0 %v6788_v11  ;;  %v4489_v25 = vshll.u32 %v6731_v16, 16  ;;  %v4485_v30 = vrot.slane %v4483_v22, 5  ;;  %v4493_v31 = vshrl.u32 %v6731_v16, 16  ;;  %v1657_v16 = vrot.slane %v1509_v9, 5  ;;  %v6738_v22 = vld [vmem:[%s8345_s5 + $0x50] sm:$0x1] }
  0xcf   : > { %7423 = vmatmul.mubr.bf16.gmra.mrb[12].mxu1 %v6371_v38  ;;  %v1507_v38 = vld [vmem:[%s8345_s5 + $0x8c] sm:$0x1]  ;;  %v4511_v20 = vrot.slane %v4510_v8, 4  ;;  %v4528_v47 = vshrl.u32 %v6736_v17, 16  ;;  %v4531_v23 = vshll.u32 %v6736_v17, 16  ;;  %v4537_v28 = vshll.u32 %v6737_v19, 16 }
  0xd0   : > { %7426 = vmatprep.mubr.bf16.mxu1 %v6372_v59  ;;  %7455 = vmatpush3.bf16.msra.mxu1 %v8140_v41  ;;  %v4491_v36 = vrot.slane %v4489_v25, 5  ;;  %v4486_v27 = vor.u32 %v4485_v30, %v4482_v29  ;;  %v4495_v42 = vrot.slane %v4493_v31, 4  ;;  %v8139_v41 = vld [vmem:[%s9522_s1 + $0x208] sm:$0xff]   ;;  %v1653_v48 = vrot.slane %v1507_v38, 5  ;;  %v1511_v29 = vld [vmem:[%s8345_s5 + $0x9c] sm:$0xe] }
  0xd1   : > { %7456 = vmatprep.subr.bf16.mxu1 %v8142_v10  ;;  %v4517_v59 = vshrl.u32 %v6734_v49, 16  ;;  %v1659_v26 = vrot.slane %v1657_v16, 4  ;;  %v4516_v30 = vsel %vm8368_vm2, %v4511_v20, %v4515_v2  ;;  %v4530_v31 = vrot.slane %v4528_v47, 4  ;;  %v6742_v20 = vld [vmem:[%s8345_s5 + $0x60] sm:$0xf] }
  0xd2   : > { %v4487_v50 = vrot.slane %v4486_v27, 4  ;;  %v4496_v51 = vor.u32 %v4495_v42, %v4491_v36  ;;  %v1654_v1 = vsel %vm8468_vm5, %v1652_v57, %v1653_v48  ;;  %v4533_v32 = vrot.slane %v4531_v23, 5  ;;  %v6744_v23 = vld [vmem:[%s8345_s5 + $0x68] sm:$0x1] }
  0xd3   : > { %v4519_v3 = vrot.slane %v4517_v59, 4  ;;  %v6375_v7 = vcombine.low %v1651_v55, %v1654_v1  ;;  %v4541_v34 = vshrl.u32 %v6737_v19, 16  ;;  %v4539_v38 = vrot.slane %v4537_v28, 5 }
  0xd4   : > { %7457 = vmatpush3.bf16.msra.mxu1 %v8142_v10  ;;  %v4492_v61 = vsel %vm8368_vm2, %v4487_v50, %v4491_v36  ;;  %v1510_v10 = vld [vmem:[%s8345_s5 + $0x98] sm:$0x1]  ;;  %v4534_v43 = vor.u32 %v4533_v32, %v4530_v31  ;;  %v6345_v48 = vrot.slane %v1511_v29, 9  ;;  %v1664_v49 = vrot.slane %v1512_v35, 5  ;;  %v1517_v31 = vld [vmem:[%s8345_s5 + $0xb4] sm:$0xe] }
  0xd5   : > { %7651 = vmatmul.mubr.bf16.vlgmr.msra.gmra.mrb[0].mxu0 %v6789_v39  ;;  %7730 = vmatprep.subr.bf16.mxu1 %v8972_v60  ;;  %v4520_v14 = vor.u32 %v4519_v3, %v4515_v2  ;;  %v1660_v21 = vrot.slane %v1510_v10, 5  ;;  %v4547_v39 = vshll.u32 %v6738_v22, 16  ;;  %v8149_v2 = vld [vmem:[%s9522_s1 + $0x228] sm:$0xff]  }
  0xd6   : > { %7683 = vmatpush3.bf16.msra.mxu0 %v8824_v56  ;;  %v4497_v56 = vrot.slane %v4496_v51, 4  ;;  %v6740_v51 = vld [vmem:[%s8345_s5 + $0x58] sm:$0xf]  ;;  %v4535_v52 = vrot.slane %v4534_v43, 4  ;;  %v1665_v58 = vsel %vm8468_vm5, %v6345_v48, %v1664_v49  ;;  %v1666_v59 = vrot.slane %v1664_v49, 4 }
  0xd7   : > { %7427 = vmatmul.mubr.bf16.gmra.mrb[16].mxu1 %v6373_v5  ;;  %7684 = vmatprep.subr.bf16.mxu0 %v8139_v41  ;;  %v1508_v5 = vld [vmem:[%s8345_s5 + $0x90] sm:$0xe]  ;;  %v4521_v24 = vrot.slane %v4520_v14, 4  ;;  %v1661_v37 = vsel %vm8468_vm5, %v1659_v26, %v1660_v21  ;;  %v4549_v46 = vrot.slane %v4547_v39, 5  ;;  %v6743_v21 = vld [vmem:[%s8345_s5 + $0x64] sm:$0xf] }
  0xd8   : > { %7430 = vmatprep.mubr.bf16.mxu1 %v6374_v40  ;;  %v4502_v6 = vsel %vm8368_vm2, %v4497_v56, %v4501_v44  ;;  %v6344_v11 = vrot.slane %v1508_v5, 9  ;;  %v1513_v40 = vld [vmem:[%s8345_s5 + $0xa4] sm:$0x1]  ;;  %v6739_v44 = vld [vmem:[%s8345_s5 + $0x54] sm:$0xf]  ;;  %v4565_v56 = vshrl.u32 %v6740_v51, 16  ;;  %v4540_v62 = vsel %vm8368_vm2, %v4535_v52, %v4539_v38 }
  0xd9   : > { %v6790_v13 = vcombine.low %v4492_v61, %v4502_v6  ;;  %v4526_v36 = vsel %vm8368_vm2, %v4521_v24, %v4525_v15  ;;  %v1667_v50 = vrot.slane %v1513_v40, 5  ;;  %v4552_v55 = vshrl.u32 %v6739_v44, 16  ;;  %v8152_v14 = vld [vmem:[%s9522_s1 + $0x230] sm:$0xff]   ;;  %v8155_v48 = vld [vmem:[%s9522_s1 + $0x238] sm:$0xff]  }
  0xda   : > { %7685 = vmatpush3.bf16.msra.mxu0 %v8139_v41  ;;  %v1658_v25 = vsel %vm8468_vm5, %v6344_v11, %v1657_v16  ;;  %v6791_v27 = vcombine.low %v4516_v30, %v4526_v36  ;;  %v4543_v41 = vrot.slane %v4541_v34, 4  ;;  %v4555_v57 = vshll.u32 %v6739_v44, 16  ;;  %v1515_v11 = vld [vmem:[%s8345_s5 + $0xac] sm:$0xf] }
  0xdb   : > { %7686 = vmatprep.subr.bf16.mxu0 %v8141_v0  ;;  %7654 = vmatprep.mubr.bf16.mxu0 %v6790_v13  ;;  %v6376_v42 = vcombine.low %v1658_v25, %v1661_v37  ;;  %v4561_v61 = vshll.u32 %v6740_v51, 16  ;;  %v1668_v3 = vsel %vm8468_vm5, %v1666_v59, %v1667_v50  ;;  %v4567_v5 = vrot.slane %v4565_v56, 4  ;;  %v1518_v37 = vld [vmem:[%s8345_s5 + $0xb8] sm:$0xf] }
  0xdc   : > { %v4544_v53 = vor.u32 %v4543_v41, %v4539_v38  ;;  %v4557_v1 = vrot.slane %v4555_v57, 5  ;;  %v4571_v6 = vshll.u32 %v6741_v54, 16  ;;  %v6377_v9 = vcombine.low %v1665_v58, %v1668_v3  ;;  %v6747_v57 = vld [vmem:[%s8345_s5 + $0x74] sm:$0x1] }
  0xdd   : > { %7655 = vmatmul.mubr.bf16.gmra.mrb[4].mxu0 %v6791_v27  ;;  %v4563_v18 = vrot.slane %v4561_v61, 5  ;;  %v1671_v19 = vrot.slane %v1515_v11, 5  ;;  %v4576_v24 = vshrl.u32 %v6742_v20, 16  ;;  %v4579_v25 = vshll.u32 %v6742_v20, 16 }
  0xde   : > { %7687 = vmatpush3.bf16.msra.mxu0 %v8141_v0  ;;  %v4545_v63 = vrot.slane %v4544_v53, 4  ;;  %v4554_v0 = vrot.slane %v4552_v55, 4  ;;  %v4573_v17 = vrot.slane %v4571_v6, 5  ;;  %v4585_v30 = vshll.u32 %v6743_v21, 16  ;;  %v6746_v53 = vld [vmem:[%s8345_s5 + $0x70] sm:$0xf] }
  0xdf   : > { %7431 = vmatmul.mubr.bf16.gmra.mrb[20].mxu1 %v6375_v7  ;;  %7688 = vmatprep.subr.bf16.mxu0 %v8143_v12  ;;  %v1514_v7 = vld [vmem:[%s8345_s5 + $0xa8] sm:$0xe]  ;;  %v4568_v16 = vor.u32 %v4567_v5, %v4563_v18  ;;  %v1673_v29 = vrot.slane %v1671_v19, 4  ;;  %v4578_v34 = vrot.slane %v4576_v24, 4  ;;  %v4581_v35 = vrot.slane %v4579_v25, 5 }
  0xe0   : > { %7434 = vmatprep.mubr.bf16.mxu1 %v6376_v42  ;;  %v4550_v8 = vsel %vm8368_vm2, %v4545_v63, %v4549_v46  ;;  %v4558_v10 = vor.u32 %v4557_v1, %v4554_v0  ;;  %v6346_v13 = vrot.slane %v1514_v7, 9  ;;  %v4589_v36 = vshrl.u32 %v6743_v21, 16  ;;  %v1519_v42 = vld [vmem:[%s8345_s5 + $0xbc] sm:$0x1]  ;;  %v6745_v46 = vld [vmem:[%s8345_s5 + $0x6c] sm:$0xf] }
  0xe1   : > { %v6792_v15 = vcombine.low %v4540_v62, %v4550_v8  ;;  %v4569_v26 = vrot.slane %v4568_v16, 4  ;;  %v4587_v40 = vrot.slane %v4585_v30, 5  ;;  %v4595_v27 = vshll.u32 %v6744_v23, 16  ;;  %v8144_v8 = vld [vmem:[%s8345_s5 + $0xc] sm:$0xff]  }
  0xe2   : > { %7689 = vmatpush3.bf16.msra.mxu0 %v8143_v12  ;;  %v1516_v12 = vld [vmem:[%s8345_s5 + $0xb0] sm:$0x1]  ;;  %v4559_v22 = vrot.slane %v4558_v10, 4  ;;  %v1672_v28 = vsel %vm8468_vm5, %v6346_v13, %v1671_v19  ;;  %v4582_v44 = vor.u32 %v4581_v35, %v4578_v34  ;;  %v6347_v50 = vrot.slane %v1517_v31, 9  ;;  %v6749_v13 = vld [vmem:[%s8345_s5 + $0x7c] sm:$0xf] }
  0xe3   : > { %7690 = vmatprep.subr.bf16.mxu0 %v8146_v45  ;;  %v1674_v47 = vrot.slane %v1516_v12, 5  ;;  %7658 = vmatprep.mubr.bf16.mxu0 %v6792_v15  ;;  %v4574_v38 = vsel %vm8368_vm2, %v4569_v26, %v4573_v17  ;;  %v4597_v49 = vrot.slane %v4595_v27, 5  ;;  %v1678_v51 = vrot.slane %v1518_v37, 5  ;;  %v6748_v12 = vld [vmem:[%s8345_s5 + $0x78] sm:$0xf] }
  0xe4   : > { %v4564_v32 = vsel %vm8368_vm2, %v4559_v22, %v4563_v18  ;;  %v1681_v52 = vrot.slane %v1519_v42, 5  ;;  %v4583_v54 = vrot.slane %v4582_v44, 4  ;;  %v4600_v58 = vshrl.u32 %v6745_v46, 16  ;;  %v6750_v17 = vld [vmem:[%s8345_s5 + $0x80] sm:$0x1] }
  0xe5   : > { %v1675_v39 = vsel %vm8468_vm5, %v1673_v29, %v1674_v47  ;;  %v6793_v43 = vcombine.low %v4564_v32, %v4574_v38  ;;  %v4603_v59 = vshll.u32 %v6745_v46, 16  ;;  %v1679_v61 = vsel %vm8468_vm5, %v6347_v50, %v1678_v51  ;;  %v6751_v26 = vld [vmem:[%s8345_s5 + $0x84] sm:$0xf]  ;;  %v6752_v32 = vld [vmem:[%s8345_s5 + $0x88] sm:$0xf] }
  0xe6   : > { %7691 = vmatpush3.bf16.msra.mxu0 %v8146_v45  ;;  %v6378_v41 = vcombine.low %v1672_v28, %v1675_v39  ;;  %v4591_v45 = vrot.slane %v4589_v36, 4  ;;  %v1680_v56 = vrot.slane %v1678_v51, 4  ;;  %v4609_v62 = vshll.u32 %v6746_v53, 16  ;;  %v8145_v36 = vld [vmem:[%s8345_s5 + $0x18] sm:$0xff]   ;;  %v6753_v37 = vld [vmem:[%s8345_s5 + $0x8c] sm:$0x1] }
  0xe7   : > { %7435 = vmatmul.mubr.bf16.gmra.mrb[24].mxu1 %v6377_v9  ;;  %7692 = vmatprep.subr.bf16.mxu0 %v8149_v2  ;;  %v4613_v63 = vshrl.u32 %v6746_v53, 16  ;;  %v4588_v0 = vsel %vm8368_vm2, %v4583_v54, %v4587_v40  ;;  %v4605_v3 = vrot.slane %v4603_v59, 5  ;;  %v4619_v7 = vshll.u32 %v6747_v57, 16  ;;  %v6755_v57 = vld [vmem:[%s8345_s5 + $0x94] sm:$0xf] }
  0xe8   : > { %7659 = vmatmul.mubr.bf16.gmra.mrb[8].mxu0 %v6793_v43  ;;  %7438 = vmatprep.mubr.bf16.mxu1 %v6378_v41  ;;  %v4592_v55 = vor.u32 %v4591_v45, %v4587_v40  ;;  %v1682_v18 = vsel %vm8468_vm5, %v1680_v56, %v1681_v52  ;;  %v4611_v5 = vrot.slane %v4609_v62, 5  ;;  %v4624_v19 = vshrl.u32 %v6748_v12, 16  ;;  %v8147_v41 = vld [vmem:[%s8345_s5 + $0x24] sm:$0xff]  }
  0xe9   : > { %v4615_v6 = vrot.slane %v4613_v63, 4  ;;  %v6379_v10 = vcombine.low %v1679_v61, %v1682_v18  ;;  %v4621_v16 = vrot.slane %v4619_v7, 5  ;;  %v4627_v21 = vshll.u32 %v6748_v12, 16  ;;  %v6756_v61 = vld [vmem:[%s8345_s5 + $0x98] sm:$0x1] }
  0xea   : > { %7693 = vmatpush3.bf16.msra.mxu0 %v8149_v2  ;;  %v4593_v1 = vrot.slane %v4592_v55, 4  ;;  %v4602_v2 = vrot.slane %v4600_v58, 4  ;;  %v4633_v22 = vshll.u32 %v6749_v13, 16  ;;  %v4637_v47 = vshrl.u32 %v6749_v13, 16  ;;  %v6754_v55 = vld [vmem:[%s8345_s5 + $0x90] sm:$0xf] }
  0xeb   : > { %7694 = vmatprep.subr.bf16.mxu0 %v8152_v14  ;;  %v4616_v15 = vor.u32 %v4615_v6, %v4611_v5  ;;  %v4626_v24 = vrot.slane %v4624_v19, 4  ;;  %v4643_v25 = vshll.u32 %v6750_v17, 16  ;;  %v4629_v29 = vrot.slane %v4627_v21, 5  ;;  %v6759_v12 = vld [vmem:[%s8345_s5 + $0xa4] sm:$0x1]  ;;  %v8148_v17 = vld [vmem:[%s8345_s5 + $0x30] sm:$0xff]  }
  0xec   : > { %v4598_v9 = vsel %vm8368_vm2, %v4593_v1, %v4597_v49  ;;  %v4606_v11 = vor.u32 %v4605_v3, %v4602_v2  ;;  %v4635_v30 = vrot.slane %v4633_v22, 5  ;;  %v4639_v31 = vrot.slane %v4637_v47, 4  ;;  %v6757_v3 = vld [vmem:[%s8345_s5 + $0x9c] sm:$0xf] }
  0xed   : > { %v4617_v23 = vrot.slane %v4616_v15, 4  ;;  %v4645_v35 = vrot.slane %v4643_v25, 5  ;;  %v4648_v38 = vshrl.u32 %v6751_v26, 16  ;;  %v4651_v39 = vshll.u32 %v6751_v26, 16 }
  0xee   : > { %7695 = vmatpush3.bf16.msra.mxu0 %v8152_v14  ;;  %v6794_v14 = vcombine.low %v4588_v0, %v4598_v9  ;;  %v4607_v20 = vrot.slane %v4606_v11, 4  ;;  %v4630_v27 = vor.u32 %v4629_v29, %v4626_v24  ;;  %v4640_v42 = vor.u32 %v4639_v31, %v4635_v30  ;;  %v6758_v9 = vld [vmem:[%s8345_s5 + $0xa0] sm:$0xf]  ;;  %v8166_v29 = vld [vmem:[%s9522_s1 + $0x110] sm:$0xff]  }
  0xef   : > { %7696 = vmatprep.subr.bf16.mxu0 %v8155_v48  ;;  %7439 = vmatmul.mubr.bf16.gmra.mrb[28].mxu1 %v6379_v10  ;;  %v4622_v34 = vsel %vm8368_vm2, %v4617_v23, %v4621_v16  ;;  %v4657_v43 = vshll.u32 %v6752_v32, 16  ;;  %v4650_v44 = vrot.slane %v4648_v38, 4  ;;  %v4653_v45 = vrot.slane %v4651_v39, 5  ;;  %v8150_v23 = vld [vmem:[%s8345_s5 + $0x3c] sm:$0xff]   ;;  %v6761_v38 = vld [vmem:[%s8345_s5 + $0xac] sm:$0xf] }
  0xf0   : > { %7662 = vmatprep.mubr.bf16.mxu0 %v6794_v14  ;;  %7458 = vmatprep.mubr.bf16.mxu1 %v8144_v8  ;;  %v4612_v28 = vsel %vm8368_vm2, %v4607_v20, %v4611_v5  ;;  %v4661_v46 = vshrl.u32 %v6752_v32, 16  ;;  %v4631_v49 = vrot.slane %v4630_v27, 4  ;;  %v4641_v50 = vrot.slane %v4640_v42, 4  ;;  %v8165_v8 = vld [vmem:[%s9522_s1 + $0x108] sm:$0xff]   ;;  %v6762_v39 = vld [vmem:[%s8345_s5 + $0xb0] sm:$0x1] }
  0xf1   : > { %v6795_v40 = vcombine.low %v4612_v28, %v4622_v34  ;;  %v4659_v51 = vrot.slane %v4657_v43, 5  ;;  %v4654_v52 = vor.u32 %v4653_v45, %v4650_v44  ;;  %v4672_v56 = vshrl.u32 %v6754_v55, 16  ;;  %v6760_v34 = vld [vmem:[%s8345_s5 + $0xa8] sm:$0xf] }
  0xf2   : > { %7697 = vmatpush3.bf16.msra.mxu0 %v8155_v48  ;;  %v4667_v48 = vshll.u32 %v6753_v37, 16  ;;  %v4663_v53 = vrot.slane %v4661_v46, 4  ;;  %v4636_v58 = vsel %vm8368_vm2, %v4631_v49, %v4635_v30  ;;  %v4646_v59 = vsel %vm8368_vm2, %v4641_v50, %v4645_v35  ;;  %v8151_v49 = vld [vmem:[%s8345_s5 + $0x48] sm:$0xff]   ;;  %v8167_v50 = vld [vmem:[%s9522_s1 + $0x118] sm:$0xff]  }
  0xf3   : > { %7663 = vmatmul.mubr.bf16.gmra.mrb[12].mxu0 %v6795_v40  ;;  %v4675_v62 = vshll.u32 %v6754_v55, 16  ;;  %v6796_v63 = vcombine.low %v4636_v58, %v4646_v59  ;;  %v4655_v0 = vrot.slane %v4654_v52, 4  ;;  %v4681_v2 = vshll.u32 %v6755_v57, 16  ;;  %v6763_v55 = vld [vmem:[%s8345_s5 + $0xb4] sm:$0xf] }
  0xf4   : > { %v4669_v54 = vrot.slane %v4667_v48, 5  ;;  %v4664_v1 = vor.u32 %v4663_v53, %v4659_v51  ;;  %v4674_v18 = vrot.slane %v4672_v56, 4  ;;  %v4685_v6 = vshrl.u32 %v6755_v57, 16  ;;  %v8153_v57 = vld [vmem:[%s8345_s5 + $0x54] sm:$0xff]  }
  0xf5   : > { %v4677_v5 = vrot.slane %v4675_v62, 5  ;;  %v4691_v7 = vshll.u32 %v6756_v61, 16  ;;  %7666 = vmatprep.mubr.bf16.mxu0 %v6796_v63  ;;  %v4660_v10 = vsel %vm8368_vm2, %v4655_v0, %v4659_v51  ;;  %v4683_v11 = vrot.slane %v4681_v2, 5  ;;  %v6764_v56 = vld [vmem:[%s8345_s5 + $0xb8] sm:$0xf] }
  0xf6   : > { %v4696_v13 = vshrl.u32 %v6757_v3, 16  ;;  %v4687_v15 = vrot.slane %v4685_v6, 4  ;;  %v4699_v19 = vshll.u32 %v6757_v3, 16  ;;  %v4705_v22 = vshll.u32 %v6758_v9, 16  ;;  %v6765_v62 = vld [vmem:[%s8345_s5 + $0xbc] sm:$0x1] }
  0xf7   : > { %7459 = vmatmul.mubr.bf16.vlgmr.msra.gmra.mrb[0].mxu1 %v8145_v36  ;;  %v4678_v14 = vor.u32 %v4677_v5, %v4674_v18  ;;  %v4693_v16 = vrot.slane %v4691_v7, 5  ;;  %v4709_v47 = vshrl.u32 %v6758_v9, 16  ;;  %v4715_v32 = vshll.u32 %v6759_v12, 16  ;;  %v8168_v7 = vld [vmem:[%s9522_s1 + $0x120] sm:$0xff]  }
  0xf8   : > { %7738 = vmatpush3.bf16.msra.mxu1 %v8972_v60  ;;  %7462 = vmatprep.mubr.bf16.mxu1 %v8147_v41  ;;  %v4665_v60 = vrot.slane %v4664_v1, 4  ;;  %v4698_v21 = vrot.slane %v4696_v13, 4  ;;  %v4688_v26 = vor.u32 %v4687_v15, %v4683_v11  ;;  %v4701_v28 = vrot.slane %v4699_v19, 5  ;;  %v6767_v15 = vld [vmem:[%s8345_s5 + $0xc4] sm:$0xf] }
  0xf9   : > { %7731 = vmatprep.subr.bf16.mxu1 %v8165_v8  ;;  %v4679_v25 = vrot.slane %v4678_v14, 4  ;;  %v4707_v30 = vrot.slane %v4705_v22, 5  ;;  %v4711_v31 = vrot.slane %v4709_v47, 4  ;;  %v4720_v40 = vshrl.u32 %v6760_v34, 16 }
  0xfa   : > { %v4670_v20 = vsel %vm8368_vm2, %v4665_v60, %v4669_v54  ;;  %v4689_v36 = vrot.slane %v4688_v26, 4  ;;  %v4702_v37 = vor.u32 %v4701_v28, %v4698_v21  ;;  %v4717_v42 = vrot.slane %v4715_v32, 5  ;;  %v6768_v21 = vld [vmem:[%s8345_s5 + $0xc8] sm:$0x1]  ;;  %v8154_v26 = vld [vmem:[%s8345_s5 + $0x60] sm:$0xff]  }
  0xfb   : > { %v6797_v24 = vcombine.low %v4660_v10, %v4670_v20  ;;  %v4684_v35 = vsel %vm8368_vm2, %v4679_v25, %v4683_v11  ;;  %v4712_v27 = vor.u32 %v4711_v31, %v4707_v30  ;;  %v4723_v43 = vshll.u32 %v6760_v34, 16  ;;  %v6766_v11 = vld [vmem:[%s8345_s5 + $0xc0] sm:$0xf]  ;;  %v8169_v28 = vld [vmem:[%s9522_s1 + $0x128] sm:$0xff]  }
  0xfc   : > { %7739 = vmatpush3.bf16.msra.mxu1 %v8165_v8  ;;  %v4729_v41 = vshll.u32 %v6761_v38, 16  ;;  %v4694_v44 = vsel %vm8368_vm2, %v4689_v36, %v4693_v16  ;;  %v4703_v45 = vrot.slane %v4702_v37, 4  ;;  %v4722_v46 = vrot.slane %v4720_v40, 4  ;;  %v6769_v34 = vld [vmem:[%s8345_s5 + $0xcc] sm:$0xf] }
  0xfd   : > { %7732 = vmatprep.subr.bf16.mxu1 %v8166_v29  ;;  %7667 = vmatmul.mubr.bf16.gmra.mrb[16].mxu0 %v6797_v24  ;;  %v4733_v48 = vshrl.u32 %v6761_v38, 16  ;;  %v6798_v51 = vcombine.low %v4684_v35, %v4694_v44  ;;  %v4713_v52 = vrot.slane %v4712_v27, 4  ;;  %v4725_v53 = vrot.slane %v4723_v43, 5  ;;  %v6770_v35 = vld [vmem:[%s8345_s5 + $0xd0] sm:$0xf] }
  0xfe   : > { %v4731_v54 = vrot.slane %v4729_v41, 5  ;;  %v4708_v58 = vsel %vm8368_vm2, %v4703_v45, %v4707_v30  ;;  %v4739_v61 = vshll.u32 %v6762_v39, 16  ;;  %v4744_v1 = vshrl.u32 %v6763_v55, 16  ;;  %v8156_v36 = vld [vmem:[%s8345_s5 + $0x6c] sm:$0xff]   ;;  %v6771_v40 = vld [vmem:[%s8345_s5 + $0xd4] sm:$0x1] }
  0xff   : > { %7463 = vmatmul.mubr.bf16.gmra.mrb[4].mxu1 %v8148_v17  ;;  %v4735_v59 = vrot.slane %v4733_v48, 4  ;;  %7670 = vmatprep.mubr.bf16.mxu0 %v6798_v51  ;;  %v4718_v63 = vsel %vm8368_vm2, %v4713_v52, %v4717_v42  ;;  %v4726_v0 = vor.u32 %v4725_v53, %v4722_v46  ;;  %v4747_v2 = vshll.u32 %v6763_v55, 16 }
 0x100   : > { %7466 = vmatprep.mubr.bf16.mxu1 %v8150_v23  ;;  %7740 = vmatpush3.bf16.msra.mxu1 %v8166_v29  ;;  %v6799_v3 = vcombine.low %v4708_v58, %v4718_v63  ;;  %v4741_v5 = vrot.slane %v4739_v61, 5  ;;  %v4753_v6 = vshll.u32 %v6764_v56, 16  ;;  %v4746_v9 = vrot.slane %v4744_v1, 4  ;;  %v6812_v61 = vld [vmem:[%s8345_s5 + $0x18] sm:$0xe] }
 0x101   : > { %7733 = vmatprep.subr.bf16.mxu1 %v8167_v50  ;;  %v4736_v18 = vor.u32 %v4735_v59, %v4731_v54  ;;  %v4727_v8 = vrot.slane %v4726_v0, 4  ;;  %v4749_v10 = vrot.slane %v4747_v2, 5  ;;  %v4757_v60 = vshrl.u32 %v6764_v56, 16  ;;  %v6813_v56 = vld [vmem:[%s8345_s5 + $0x1c] sm:$0xf] }
 0x102   : > { %v4755_v13 = vrot.slane %v4753_v6, 5  ;;  %v4763_v14 = vshll.u32 %v6765_v62, 16  ;;  %v4768_v16 = vshrl.u32 %v6766_v11, 16  ;;  %v4771_v22 = vshll.u32 %v6766_v11, 16  ;;  %v6814_v0 = vld [vmem:[%s8345_s5 + $0x20] sm:$0x1] }
 0x103   : > { %v4737_v12 = vrot.slane %v4736_v18, 4  ;;  %v4732_v17 = vsel %vm8368_vm2, %v4727_v8, %v4731_v54  ;;  %v4750_v19 = vor.u32 %v4749_v10, %v4746_v9  ;;  %v4759_v20 = vrot.slane %v4757_v60, 4  ;;  %v8157_v6 = vld [vmem:[%s8345_s5 + $0x78] sm:$0xff]   ;;  %v6815_v60 = vld [vmem:[%s8345_s5 + $0x24] sm:$0xe] }
 0x104   : > { %7741 = vmatpush3.bf16.msra.mxu1 %v8167_v50  ;;  %v4765_v23 = vrot.slane %v4763_v14, 5  ;;  %v4770_v24 = vrot.slane %v4768_v16, 4  ;;  %v4777_v25 = vshll.u32 %v6767_v15, 16  ;;  %v4773_v32 = vrot.slane %v4771_v22, 5  ;;  %v8170_v50 = vld [vmem:[%s9522_s1 + $0x130] sm:$0xff]   ;;  %v8158_v16 = vld [vmem:[%s8345_s5 + $0x84] sm:$0xff]  }
 0x105   : > { %7734 = vmatprep.subr.bf16.mxu1 %v8168_v7  ;;  %7671 = vmatmul.mubr.bf16.gmra.mrb[20].mxu0 %v6799_v3  ;;  %v4742_v47 = vsel %vm8368_vm2, %v4737_v12, %v4741_v5  ;;  %v4751_v30 = vrot.slane %v4750_v19, 4  ;;  %v4760_v31 = vor.u32 %v4759_v20, %v4755_v13  ;;  %v4781_v38 = vshrl.u32 %v6767_v15, 16  ;;  %v6816_v11 = vld [vmem:[%s8345_s5 + $0x28] sm:$0xf]  ;;  %v6817_v15 = vld [vmem:[%s8345_s5 + $0x2c] sm:$0x1] }
 0x106   : > { %v6800_v29 = vcombine.low %v4732_v17, %v4742_v47  ;;  %v4779_v37 = vrot.slane %v4777_v25, 5  ;;  %v4787_v39 = vshll.u32 %v6768_v21, 16  ;;  %v4792_v27 = vshrl.u32 %v6769_v34, 16  ;;  %v6818_v22 = vld [vmem:[%s8345_s5 + $0x30] sm:$0xe] }
 0x107   : > { %7467 = vmatmul.mubr.bf16.gmra.mrb[8].mxu1 %v8151_v49  ;;  %v4756_v42 = vsel %vm8368_vm2, %v4751_v30, %v4755_v13  ;;  %v4761_v43 = vrot.slane %v4760_v31, 4  ;;  %v4774_v41 = vor.u32 %v4773_v32, %v4770_v24  ;;  %v4795_v44 = vshll.u32 %v6769_v34, 16  ;;  %v6819_v25 = vld [vmem:[%s8345_s5 + $0x34] sm:$0xf] }
 0x108   : > { %7470 = vmatprep.mubr.bf16.mxu1 %v8153_v57  ;;  %7742 = vmatpush3.bf16.msra.mxu1 %v8168_v7  ;;  %v4783_v45 = vrot.slane %v4781_v38, 4  ;;  %v4789_v46 = vrot.slane %v4787_v39, 5  ;;  %v4794_v48 = vrot.slane %v4792_v27, 4  ;;  %v4801_v49 = vshll.u32 %v6770_v35, 16  ;;  %v8171_v7 = vld [vmem:[%s9522_s1 + $0x138] sm:$0xff]  }
 0x109   : > { %7735 = vmatprep.subr.bf16.mxu1 %v8169_v28  ;;  %7674 = vmatprep.mubr.bf16.mxu0 %v6800_v29  ;;  %v4766_v51 = vsel %vm8368_vm2, %v4761_v43, %v4765_v23  ;;  %v4775_v52 = vrot.slane %v4774_v41, 4  ;;  %v4797_v53 = vrot.slane %v4795_v44, 5  ;;  %v4805_v54 = vshrl.u32 %v6770_v35, 16  ;;  %v6823_v38 = vld [vmem:[%s8345_s5 + $0x44] sm:$0x1] }
 0x10a   : > { %v6801_v55 = vcombine.low %v4756_v42, %v4766_v51  ;;  %v4784_v57 = vor.u32 %v4783_v45, %v4779_v37  ;;  %v4803_v58 = vrot.slane %v4801_v49, 5  ;;  %v4811_v59 = vshll.u32 %v6771_v40, 16  ;;  %v8159_v42 = vld [vmem:[%s8345_s5 + $0x90] sm:$0xff]   ;;  %v6824_v41 = vld [vmem:[%s8345_s5 + $0x48] sm:$0xe] }
 0x10b   : > { %v4798_v62 = vor.u32 %v4797_v53, %v4794_v48  ;;  %v4807_v63 = vrot.slane %v4805_v54, 4  ;;  %v6860_v1 = vrot.slane %v6812_v61, 9  ;;  %v4780_v2 = vsel %vm8368_vm2, %v4775_v52, %v4779_v37  ;;  %v6822_v37 = vld [vmem:[%s8345_s5 + $0x40] sm:$0xf]  ;;  %v6825_v49 = vld [vmem:[%s8345_s5 + $0x4c] sm:$0xf] }
 0x10c   : > { %7743 = vmatpush3.bf16.msra.mxu1 %v8169_v28  ;;  %v4785_v3 = vrot.slane %v4784_v57, 4  ;;  %v5299_v18 = vrot.slane %v6813_v56, 5  ;;  %v5302_v5 = vrot.slane %v6814_v0, 5  ;;  %v4813_v10 = vrot.slane %v4811_v59, 5  ;;  %v8160_v48 = vld [vmem:[%s8345_s5 + $0x9c] sm:$0xff]  }
 0x10d   : > { %7736 = vmatprep.subr.bf16.mxu1 %v8170_v50  ;;  %7675 = vmatmul.mubr.bf16.gmra.mrb[24].mxu0 %v6801_v55  ;;  %v4799_v8 = vrot.slane %v4798_v62, 4  ;;  %v4808_v9 = vor.u32 %v4807_v63, %v4803_v58  ;;  %v5306_v21 = vrot.slane %v6816_v11, 5  ;;  %v6861_v23 = vrot.slane %v6815_v60, 9  ;;  %v6827_v57 = vld [vmem:[%s8345_s5 + $0x54] sm:$0xe] }
 0x10e   : > { %v4790_v12 = vsel %vm8368_vm2, %v4785_v3, %v4789_v46  ;;  %v5300_v13 = vsel %vm8468_vm5, %v6860_v1, %v5299_v18  ;;  %v5301_v14 = vrot.slane %v5299_v18, 4  ;;  %v5309_v24 = vrot.slane %v6817_v15, 5  ;;  %v6829_v59 = vld [vmem:[%s8345_s5 + $0x5c] sm:$0x1]  ;;  %v6830_v18 = vld [vmem:[%s8345_s5 + $0x60] sm:$0xe] }
 0x10f   : > { %7471 = vmatmul.mubr.bf16.gmra.mrb[12].mxu1 %v8154_v26  ;;  %v6802_v17 = vcombine.low %v4780_v2, %v4790_v12  ;;  %v4804_v19 = vsel %vm8368_vm2, %v4799_v8, %v4803_v58  ;;  %v4809_v20 = vrot.slane %v4808_v9, 4  ;;  %v6820_v26 = vld [vmem:[%s8345_s5 + $0x38] sm:$0x1]  ;;  %v5308_v30 = vrot.slane %v5306_v21, 4  ;;  %v6832_v8 = vld [vmem:[%s8345_s5 + $0x68] sm:$0x1] }
 0x110   : > { %7474 = vmatprep.mubr.bf16.mxu1 %v8156_v36  ;;  %7744 = vmatpush3.bf16.msra.mxu1 %v8170_v50  ;;  %v5303_v47 = vsel %vm8468_vm5, %v5301_v14, %v5302_v5  ;;  %v6862_v31 = vrot.slane %v6818_v22, 9  ;;  %v5313_v34 = vrot.slane %v6819_v25, 5  ;;  %v5316_v35 = vrot.slane %v6820_v26, 5  ;;  %v6821_v36 = vld [vmem:[%s8345_s5 + $0x3c] sm:$0xe]  ;;  %v8161_v15 = vld [vmem:[%s8345_s5 + $0xa8] sm:$0xff]  }
 0x111   : > { %7737 = vmatprep.subr.bf16.mxu1 %v8171_v7  ;;  %7678 = vmatprep.mubr.bf16.mxu0 %v6802_v17  ;;  %v4814_v28 = vsel %vm8368_vm2, %v4809_v20, %v4813_v10  ;;  %v6892_v29 = vcombine.low %v5300_v13, %v5303_v47  ;;  %v6863_v39 = vrot.slane %v6821_v36, 9  ;;  %v5320_v40 = vrot.slane %v6822_v37, 5  ;;  %v6826_v50 = vld [vmem:[%s8345_s5 + $0x50] sm:$0x1]  ;;  %v6828_v58 = vld [vmem:[%s8345_s5 + $0x58] sm:$0xf] }
 0x112   : > { %v6803_v32 = vcombine.low %v4804_v19, %v4814_v28  ;;  %v5315_v27 = vrot.slane %v5313_v34, 4  ;;  %v5323_v43 = vrot.slane %v6823_v38, 5  ;;  %v5307_v44 = vsel %vm8468_vm5, %v6861_v23, %v5306_v21  ;;  %v6831_v5 = vld [vmem:[%s8345_s5 + $0x64] sm:$0xf]  ;;  %v6833_v13 = vld [vmem:[%s8345_s5 + $0x6c] sm:$0xe] }
 0x113   : > { %v5310_v45 = vsel %vm8468_vm5, %v5308_v30, %v5309_v24  ;;  %v5322_v46 = vrot.slane %v5320_v40, 4  ;;  %v6864_v51 = vrot.slane %v6824_v41, 9  ;;  %v5314_v52 = vsel %vm8468_vm5, %v6862_v31, %v5313_v34  ;;  %v6834_v19 = vld [vmem:[%s8345_s5 + $0x70] sm:$0xf]  ;;  %v6835_v20 = vld [vmem:[%s8345_s5 + $0x74] sm:$0x1] }
 0x114   : > { %7745 = vmatpush3.bf16.msra.mxu1 %v8171_v7  ;;  %v5317_v53 = vsel %vm8468_vm5, %v5315_v27, %v5316_v35  ;;  %v5327_v54 = vrot.slane %v6825_v49, 5  ;;  %v5330_v55 = vrot.slane %v6826_v50, 5  ;;  %v6893_v61 = vcombine.low %v5307_v44, %v5310_v45  ;;  %v8162_v23 = vld [vmem:[%s8345_s5 + $0xb4] sm:$0xff]   ;;  %v6484_v26 = vld [vmem:[%s8345_s5 + $0x6c] sm:$0xf] }
 0x115   : > { %7679 = vmatmul.mubr.bf16.gmra.mrb[28].mxu0 %v6803_v32  ;;  %v9182_v56 = vsel %vm8468_vm5, %v6863_v39, %v5320_v40  ;;  %v6865_v63 = vrot.slane %v6827_v57, 9  ;;  %v6894_v0 = vcombine.low %v5314_v52, %v5317_v53  ;;  %v9186_v1 = vsel %vm8468_vm5, %v5322_v46, %v5323_v43  ;;  %v6485_v28 = vld [vmem:[%s8345_s5 + $0x70] sm:$0xf]  ;;  %v6486_v31 = vld [vmem:[%s8345_s5 + $0x74] sm:$0x1] }
 0x116   : > { %7698 = vmatprep.mubr.bf16.mxu0 %v6892_v29  ;;  %v5329_v62 = vrot.slane %v5327_v54, 4  ;;  %v5334_v2 = vrot.slane %v6828_v58, 5  ;;  %v5337_v3 = vrot.slane %v6829_v59, 5  ;;  %v6866_v9 = vrot.slane %v6830_v18, 9  ;;  %v6836_v35 = vld [vmem:[%s8345_s5 + $0x78] sm:$0xe] }
 0x117   : > { %7475 = vmatmul.mubr.bf16.gmra.mrb[16].mxu1 %v8157_v6  ;;  %v9192_v6 = vsel %vm8468_vm5, %v6864_v51, %v5327_v54  ;;  %v5341_v10 = vrot.slane %v6831_v5, 5  ;;  %v5344_v12 = vrot.slane %v6832_v8, 5  ;;  %v6895_v14 = vcombine.low %v9182_v56, %v9186_v1  ;;  %v6837_v40 = vld [vmem:[%s8345_s5 + $0x7c] sm:$0xf]  ;;  %v6838_v27 = vld [vmem:[%s8345_s5 + $0x80] sm:$0x1] }
 0x118   : > { %7478 = vmatprep.mubr.bf16.mxu1 %v8158_v16  ;;  %v9196_v7 = vsel %vm8468_vm5, %v5329_v62, %v5330_v55  ;;  %v9201_v60 = vsel %vm8468_vm5, %v6865_v63, %v5334_v2  ;;  %v5336_v11 = vrot.slane %v5334_v2, 4  ;;  %v6867_v21 = vrot.slane %v6833_v13, 9  ;;  %v6487_v45 = vld [vmem:[%s8345_s5 + $0x78] sm:$0xf]  ;;  %v6488_v51 = vld [vmem:[%s8345_s5 + $0x7c] sm:$0xf] }
 0x119   : > { %v9209_v16 = vsel %vm8468_vm5, %v6866_v9, %v5341_v10  ;;  %v5343_v17 = vrot.slane %v5341_v10, 4  ;;  %v6896_v22 = vcombine.low %v9192_v6, %v9196_v7  ;;  %v5348_v24 = vrot.slane %v6834_v19, 5  ;;  %v6489_v57 = vld [vmem:[%s8345_s5 + $0x80] sm:$0x1]  ;;  %v6839_v62 = vld [vmem:[%s8345_s5 + $0x84] sm:$0xe] }
 0x11a   : > { %v9217_v47 = vsel %vm8468_vm5, %v5336_v11, %v5337_v3  ;;  %v5351_v25 = vrot.slane %v6835_v20, 5  ;;  %v2761_v32 = vshrl.u32 %v6484_v26, 16  ;;  %v2764_v34 = vshll.u32 %v6484_v26, 16  ;;  %v6840_v3 = vld [vmem:[%s8345_s5 + $0x88] sm:$0xf]  ;;  %v8163_v9 = vld [vmem:[%s8345_s5 + $0xc0] sm:$0xff]  }
 0x11b   : > { %v6897_v29 = vcombine.low %v9201_v60, %v9217_v47  ;;  %v9226_v30 = vsel %vm8468_vm5, %v5343_v17, %v5344_v12  ;;  %v9234_v37 = vsel %vm8468_vm5, %v6867_v21, %v5348_v24  ;;  %v5350_v38 = vrot.slane %v5348_v24, 4  ;;  %v6841_v8 = vld [vmem:[%s8345_s5 + $0x8c] sm:$0x1]  ;;  %v6491_v21 = vld [vmem:[%s8345_s5 + $0x88] sm:$0xf] }
 0x11c   : > { %v6898_v36 = vcombine.low %v9209_v16, %v9226_v30  ;;  %v2770_v39 = vshll.u32 %v6485_v28, 16  ;;  %v2766_v43 = vrot.slane %v2764_v34, 5  ;;  %v2774_v41 = vshrl.u32 %v6485_v28, 16 }
 0x11d   : > { %7699 = vmatmul.mubr.bf16.vlgmr.msra.gmra.mrb[0].mxu0 %v6893_v61  ;;  %v2780_v44 = vshll.u32 %v6486_v31, 16  ;;  %v9241_v46 = vsel %vm8468_vm5, %v5350_v38, %v5351_v25  ;;  %v6868_v49 = vrot.slane %v6836_v35, 9  ;;  %v5355_v50 = vrot.slane %v6837_v40, 5  ;;  %v6492_v31 = vld [vmem:[%s8345_s5 + $0x8c] sm:$0x1] }
 0x11e   : > { %7702 = vmatprep.mubr.bf16.mxu0 %v6894_v0  ;;  %v6899_v52 = vcombine.low %v9234_v37, %v9241_v46  ;;  %v2776_v54 = vrot.slane %v2774_v41, 4  ;;  %v5358_v61 = vrot.slane %v6838_v27, 5  ;;  %v2785_v56 = vshrl.u32 %v6487_v45, 16  ;;  %v6842_v27 = vld [vmem:[%s8345_s5 + $0x90] sm:$0xe] }
 0x11f   : > { %7479 = vmatmul.mubr.bf16.gmra.mrb[20].mxu1 %v8159_v42  ;;  %v2763_v42 = vrot.slane %v2761_v32, 4  ;;  %v2782_v55 = vrot.slane %v2780_v44, 5  ;;  %v9249_v58 = vsel %vm8468_vm5, %v6868_v49, %v5355_v50  ;;  %v5357_v59 = vrot.slane %v5355_v50, 4 }
 0x120   : > { %7482 = vmatprep.mubr.bf16.mxu1 %v8160_v48  ;;  %v2772_v48 = vrot.slane %v2770_v39, 5  ;;  %v2788_v1 = vshll.u32 %v6487_v45, 16  ;;  %v2794_v2 = vshll.u32 %v6488_v51, 16  ;;  %v2787_v5 = vrot.slane %v2785_v56, 4  ;;  %v6843_v45 = vld [vmem:[%s8345_s5 + $0x94] sm:$0xf] }
 0x121   : > { %v2767_v53 = vor.u32 %v2766_v43, %v2763_v42  ;;  %v9255_v18 = vsel %vm8468_vm5, %v5357_v59, %v5358_v61  ;;  %v2798_v6 = vshrl.u32 %v6488_v51, 16  ;;  %v2804_v7 = vshll.u32 %v6489_v57, 16  ;;  %v6494_v57 = vld [vmem:[%s8345_s5 + $0x94] sm:$0xf] }
 0x122   : > { %v2777_v0 = vor.u32 %v2776_v54, %v2772_v48  ;;  %v6900_v12 = vcombine.low %v9249_v58, %v9255_v18  ;;  %v2790_v13 = vrot.slane %v2788_v1, 5  ;;  %v6869_v20 = vrot.slane %v6839_v62, 9  ;;  %v6493_v54 = vld [vmem:[%s8345_s5 + $0x90] sm:$0xf]  ;;  %v6845_v1 = vld [vmem:[%s8345_s5 + $0x9c] sm:$0xe] }
 0x123   : > { %v2768_v63 = vrot.slane %v2767_v53, 4  ;;  %v2800_v17 = vrot.slane %v2798_v6, 4  ;;  %v2806_v19 = vrot.slane %v2804_v7, 5  ;;  %v5362_v24 = vrot.slane %v6840_v3, 5  ;;  %v6844_v53 = vld [vmem:[%s8345_s5 + $0x98] sm:$0x1] }
 0x124   : > { %v2778_v11 = vrot.slane %v2777_v0, 4  ;;  %v5365_v25 = vrot.slane %v6841_v8, 5  ;;  %v2818_v40 = vshll.u32 %v6491_v21, 16  ;;  %v2822_v44 = vshrl.u32 %v6491_v21, 16  ;;  %v6846_v7 = vld [vmem:[%s8345_s5 + $0xa0] sm:$0xf] }
 0x125   : > { %7703 = vmatmul.mubr.bf16.gmra.mrb[4].mxu0 %v6895_v14  ;;  %v2773_v10 = vsel %vm8368_vm2, %v2768_v63, %v2772_v48  ;;  %v6490_v14 = vld [vmem:[%s8345_s5 + $0x84] sm:$0xf]  ;;  %v9270_v38 = vsel %vm8468_vm5, %v6869_v20, %v5362_v24  ;;  %v5364_v39 = vrot.slane %v5362_v24, 4  ;;  %v2828_v51 = vshll.u32 %v6492_v31, 16  ;;  %v6495_v63 = vld [vmem:[%s8345_s5 + $0x98] sm:$0x1] }
 0x126   : > { %7706 = vmatprep.mubr.bf16.mxu0 %v6896_v22  ;;  %v2783_v22 = vsel %vm8368_vm2, %v2778_v11, %v2782_v55  ;;  %v2809_v32 = vshrl.u32 %v6490_v14, 16  ;;  %v2812_v34 = vshll.u32 %v6490_v14, 16  ;;  %v2820_v50 = vrot.slane %v2818_v40, 5  ;;  %v6496_v20 = vld [vmem:[%s8345_s5 + $0x9c] sm:$0xf] }
 0x127   : > { %7483 = vmatmul.mubr.bf16.gmra.mrb[24].mxu1 %v8161_v15  ;;  %v2796_v15 = vrot.slane %v2794_v2, 5  ;;  %v6532_v26 = vcombine.low %v2773_v10, %v2783_v22  ;;  %v9281_v49 = vsel %vm8468_vm5, %v5364_v39, %v5365_v25  ;;  %v2824_v55 = vrot.slane %v2822_v44, 4  ;;  %v6497_v25 = vld [vmem:[%s8345_s5 + $0xa0] sm:$0xf]  ;;  %v6498_v39 = vld [vmem:[%s8345_s5 + $0xa4] sm:$0x1] }
 0x128   : > { %7486 = vmatprep.mubr.bf16.mxu1 %v8162_v23  ;;  %v2791_v23 = vor.u32 %v2790_v13, %v2787_v5  ;;  %v2811_v43 = vrot.slane %v2809_v32, 4  ;;  %v2814_v41 = vrot.slane %v2812_v34, 5  ;;  %v6901_v47 = vcombine.low %v9270_v38, %v9281_v49  ;;  %v6847_v13 = vld [vmem:[%s8345_s5 + $0xa4] sm:$0x1]  ;;  %v6849_v44 = vld [vmem:[%s8345_s5 + $0xac] sm:$0xf] }
 0x129   : > { %v2801_v28 = vor.u32 %v2800_v17, %v2796_v15  ;;  %v2830_v61 = vrot.slane %v2828_v51, 5  ;;  %v6870_v56 = vrot.slane %v6842_v27, 9  ;;  %v5369_v62 = vrot.slane %v6843_v45, 5 }
 0x12a   : > { %v2792_v35 = vrot.slane %v2791_v23, 4  ;;  %v2825_v16 = vor.u32 %v2824_v55, %v2820_v50  ;;  %v5372_v30 = vrot.slane %v6844_v53, 5  ;;  %v2836_v5 = vshll.u32 %v6493_v54, 16  ;;  %v6850_v53 = vld [vmem:[%s8345_s5 + $0xb0] sm:$0x1] }
 0x12b   : > { %v2802_v42 = vrot.slane %v2801_v28, 4  ;;  %v9297_v2 = vsel %vm8468_vm5, %v6870_v56, %v5369_v62  ;;  %v5371_v3 = vrot.slane %v5369_v62, 4  ;;  %v2842_v6 = vshll.u32 %v6494_v57, 16 }
 0x12c   : > { %v2797_v48 = vsel %vm8368_vm2, %v2792_v35, %v2796_v15  ;;  %v2846_v11 = vshrl.u32 %v6494_v57, 16  ;;  %v2838_v15 = vrot.slane %v2836_v5, 5  ;;  %v6871_v24 = vrot.slane %v6845_v1, 9 }
 0x12d   : > { %7707 = vmatmul.mubr.bf16.gmra.mrb[8].mxu0 %v6897_v29  ;;  %v2807_v60 = vsel %vm8368_vm2, %v2802_v42, %v2806_v19  ;;  %v2815_v29 = vor.u32 %v2814_v41, %v2811_v43  ;;  %v5373_v14 = vsel %vm8468_vm5, %v5371_v3, %v5372_v30  ;;  %v2844_v17 = vrot.slane %v2842_v6, 5  ;;  %v6848_v43 = vld [vmem:[%s8345_s5 + $0xa8] sm:$0xe] }
 0x12e   : > { %7710 = vmatprep.mubr.bf16.mxu0 %v6898_v36  ;;  %v6533_v59 = vcombine.low %v2797_v48, %v2807_v60  ;;  %v2833_v36 = vshrl.u32 %v6493_v54, 16  ;;  %v2852_v19 = vshll.u32 %v6495_v63, 16  ;;  %v6902_v22 = vcombine.low %v9297_v2, %v5373_v14  ;;  %v6499_v54 = vld [vmem:[%s8345_s5 + $0xa8] sm:$0xf]  ;;  %v6851_v2 = vld [vmem:[%s8345_s5 + $0xb4] sm:$0xe] }
 0x12f   : > { %7487 = vmatmul.mubr.bf16.gmra.mrb[28].mxu1 %v8163_v9  ;;  %v2816_v0 = vrot.slane %v2815_v29, 4  ;;  %v2826_v9 = vrot.slane %v2825_v16, 4  ;;  %v2848_v23 = vrot.slane %v2846_v11, 4  ;;  %v5376_v32 = vrot.slane %v6846_v7, 5  ;;  %v6853_v14 = vld [vmem:[%s8345_s5 + $0xbc] sm:$0x1] }
 0x130   : > { %7522 = vmatprep.mubr.bf16.mxu1 %v6532_v26  ;;  %v2835_v10 = vrot.slane %v2833_v36, 4  ;;  %v2854_v31 = vrot.slane %v2852_v19, 5  ;;  %v5379_v35 = vrot.slane %v6847_v13, 5  ;;  %v2857_v40 = vshrl.u32 %v6496_v20, 16 }
 0x131   : > { %v2821_v8 = vsel %vm8368_vm2, %v2816_v0, %v2820_v50  ;;  %v2831_v21 = vsel %vm8368_vm2, %v2826_v9, %v2830_v61  ;;  %v2849_v34 = vor.u32 %v2848_v23, %v2844_v17  ;;  %v2860_v27 = vshll.u32 %v6496_v20, 16  ;;  %v6501_v0 = vld [vmem:[%s8345_s5 + $0xb0] sm:$0x1]  ;;  %v6503_v23 = vld [vmem:[%s8345_s5 + $0xb8] sm:$0xf] }
 0x132   : > { %v6534_v26 = vcombine.low %v2821_v8, %v2831_v21  ;;  %v2839_v28 = vor.u32 %v2838_v15, %v2835_v10  ;;  %v9319_v46 = vsel %vm8468_vm5, %v6871_v24, %v5376_v32  ;;  %v2866_v42 = vshll.u32 %v6497_v25, 16  ;;  %v6852_v8 = vld [vmem:[%s8345_s5 + $0xb8] sm:$0xf] }
 0x133   : > { %v2850_v58 = vrot.slane %v2849_v34, 4  ;;  %v2859_v18 = vrot.slane %v2857_v40, 4  ;;  %v2870_v41 = vshrl.u32 %v6497_v25, 16  ;;  %v2876_v51 = vshll.u32 %v6498_v39, 16  ;;  %v6504_v34 = vld [vmem:[%s8345_s5 + $0xbc] sm:$0x1] }
 0x134   : > { %v2840_v37 = vrot.slane %v2839_v28, 4  ;;  %v2868_v50 = vrot.slane %v2866_v42, 5  ;;  %v6872_v62 = vrot.slane %v6848_v43, 9  ;;  %v5383_v63 = vrot.slane %v6849_v44, 5 }
 0x135   : > { %7711 = vmatmul.mubr.bf16.gmra.mrb[12].mxu0 %v6899_v52  ;;  %v5378_v52 = vrot.slane %v5376_v32, 4  ;;  %v2855_v60 = vsel %vm8368_vm2, %v2850_v58, %v2854_v31  ;;  %v2872_v57 = vrot.slane %v2870_v41, 4  ;;  %v2878_v56 = vrot.slane %v2876_v51, 5  ;;  %v6505_v51 = vld [vmem:[%s8345_s5 + $0xc0] sm:$0xf] }
 0x136   : > { %7714 = vmatprep.mubr.bf16.mxu0 %v6900_v12  ;;  %v2862_v12 = vrot.slane %v2860_v27, 5  ;;  %v2845_v45 = vsel %vm8368_vm2, %v2840_v37, %v2844_v17  ;;  %v5386_v36 = vrot.slane %v6850_v53, 5  ;;  %v2881_v1 = vshrl.u32 %v6499_v54, 16  ;;  %v6502_v17 = vld [vmem:[%s8345_s5 + $0xb4] sm:$0xf] }
 0x137   : > { %7523 = vmatmul.mubr.bf16.vlgmr.msra.gmra.mrb[16].mxu1 %v6533_v59  ;;  %v9327_v48 = vsel %vm8468_vm5, %v5378_v52, %v5379_v35  ;;  %v6500_v59 = vld [vmem:[%s8345_s5 + $0xac] sm:$0xf]  ;;  %v6535_v61 = vcombine.low %v2845_v45, %v2855_v60  ;;  %v2873_v30 = vor.u32 %v2872_v57, %v2868_v50  ;;  %v5384_v3 = vsel %vm8468_vm5, %v6872_v62, %v5383_v63  ;;  %v6854_v52 = vld [vmem:[%s8345_s5 + $0xc0] sm:$0xe] }
 0x138   : > { %7526 = vmatprep.mubr.bf16.mxu1 %v6534_v26  ;;  %v6903_v29 = vcombine.low %v9319_v46, %v9327_v48  ;;  %v2863_v55 = vor.u32 %v2862_v12, %v2859_v18  ;;  %v5385_v5 = vrot.slane %v5383_v63, 4  ;;  %v2884_v6 = vshll.u32 %v6499_v54, 16  ;;  %v6855_v12 = vld [vmem:[%s8345_s5 + $0xc4] sm:$0xf] }
 0x139   : > { %v2890_v7 = vshll.u32 %v6500_v59, 16  ;;  %v2874_v10 = vrot.slane %v2873_v30, 4  ;;  %v2883_v11 = vrot.slane %v2881_v1, 4  ;;  %v2894_v13 = vshrl.u32 %v6500_v59, 16 }
 0x13a   : > { %v2864_v16 = vrot.slane %v2863_v55, 4  ;;  %v5387_v38 = vsel %vm8468_vm5, %v5385_v5, %v5386_v36  ;;  %v2886_v49 = vrot.slane %v2884_v6, 5  ;;  %v2900_v15 = vshll.u32 %v6501_v0, 16  ;;  %v6857_v5 = vld [vmem:[%s8345_s5 + $0xcc] sm:$0xe] }
 0x13b   : > { %v2879_v19 = vsel %vm8368_vm2, %v2874_v10, %v2878_v56  ;;  %v6904_v20 = vcombine.low %v5384_v3, %v5387_v38  ;;  %v2896_v21 = vrot.slane %v2894_v13, 4  ;;  %v5390_v28 = vrot.slane %v6852_v8, 5  ;;  %v6858_v10 = vld [vmem:[%s8345_s5 + $0xd0] sm:$0xf] }
 0x13c   : > { %v2869_v9 = vsel %vm8368_vm2, %v2864_v16, %v2868_v50  ;;  %v2887_v25 = vor.u32 %v2886_v49, %v2883_v11  ;;  %v2902_v26 = vrot.slane %v2900_v15, 5  ;;  %v5393_v32 = vrot.slane %v6853_v14, 5  ;;  %v6856_v50 = vld [vmem:[%s8345_s5 + $0xc8] sm:$0x1]  ;;  %v6859_v49 = vld [vmem:[%s8345_s5 + $0xd4] sm:$0x1] }
 0x13d   : > { %7715 = vmatmul.mubr.bf16.gmra.mrb[16].mxu0 %v6901_v47  ;;  %v2892_v47 = vrot.slane %v2890_v7, 5  ;;  %v6536_v24 = vcombine.low %v2869_v9, %v2879_v19  ;;  %v2905_v35 = vshrl.u32 %v6502_v17, 16  ;;  %v2908_v39 = vshll.u32 %v6502_v17, 16  ;;  %v6507_v16 = vld [vmem:[%s8345_s5 + $0xc8] sm:$0x1] }
 0x13e   : > { %7718 = vmatprep.mubr.bf16.mxu0 %v6902_v22  ;;  %v6873_v22 = vrot.slane %v6851_v2, 9  ;;  %v2888_v40 = vrot.slane %v2887_v25, 4  ;;  %v5392_v37 = vrot.slane %v5390_v28, 4  ;;  %v2914_v46 = vshll.u32 %v6503_v23, 16 }
 0x13f   : > { %7527 = vmatmul.mubr.bf16.gmra.mrb[20].mxu1 %v6535_v61  ;;  %v2897_v31 = vor.u32 %v2896_v21, %v2892_v47  ;;  %v2907_v43 = vrot.slane %v2905_v35, 4  ;;  %v2910_v58 = vrot.slane %v2908_v39, 5  ;;  %v2918_v18 = vshrl.u32 %v6503_v23, 16 }
 0x140   : > { %7530 = vmatprep.mubr.bf16.mxu1 %v6536_v24  ;;  %v5391_v27 = vsel %vm8468_vm5, %v6873_v22, %v5390_v28  ;;  %v2893_v41 = vsel %vm8368_vm2, %v2888_v40, %v2892_v47  ;;  %v5394_v44 = vsel %vm8468_vm5, %v5392_v37, %v5393_v32  ;;  %v2916_v45 = vrot.slane %v2914_v46, 5 }
 0x141   : > { %v2898_v42 = vrot.slane %v2897_v31, 4  ;;  %v2924_v48 = vshll.u32 %v6504_v34, 16  ;;  %v6905_v54 = vcombine.low %v5391_v27, %v5394_v44  ;;  %v2911_v60 = vor.u32 %v2910_v58, %v2907_v43 }
 0x142   : > { %v2920_v55 = vrot.slane %v2918_v18, 4  ;;  %v6874_v61 = vrot.slane %v6854_v52, 9  ;;  %v5397_v56 = vrot.slane %v6855_v12, 5  ;;  %v5400_v0 = vrot.slane %v6856_v50, 5 }
 0x143   : > { %v2903_v53 = vsel %vm8368_vm2, %v2898_v42, %v2902_v26  ;;  %v2926_v59 = vrot.slane %v2924_v48, 5  ;;  %v2912_v62 = vrot.slane %v2911_v60, 4  ;;  %v2929_v30 = vshrl.u32 %v6505_v51, 16 }
 0x144   : > { %v6537_v57 = vcombine.low %v2893_v41, %v2903_v53  ;;  %v2921_v63 = vor.u32 %v2920_v55, %v2916_v45  ;;  %v5398_v36 = vsel %vm8468_vm5, %v6874_v61, %v5397_v56  ;;  %v5399_v1 = vrot.slane %v5397_v56, 4 }
 0x145   : > { %7719 = vmatmul.mubr.bf16.gmra.mrb[20].mxu0 %v6903_v29  ;;  %v6506_v29 = vld [vmem:[%s8345_s5 + $0xc4] sm:$0xf]  ;;  %v2932_v2 = vshll.u32 %v6505_v51, 16  ;;  %v2917_v6 = vsel %vm8368_vm2, %v2912_v62, %v2916_v45  ;;  %v2931_v8 = vrot.slane %v2929_v30, 4  ;;  %v2948_v38 = vshll.u32 %v6507_v16, 16 }
 0x146   : > { %7722 = vmatprep.mubr.bf16.mxu0 %v6904_v20  ;;  %v2938_v3 = vshll.u32 %v6506_v29, 16  ;;  %v2922_v7 = vrot.slane %v2921_v63, 4  ;;  %v2942_v9 = vshrl.u32 %v6506_v29, 16  ;;  %v5401_v11 = vsel %vm8468_vm5, %v5399_v1, %v5400_v0 }
 0x147   : > { %7531 = vmatmul.mubr.bf16.gmra.mrb[24].mxu1 %v6537_v57  ;;  %v2934_v13 = vrot.slane %v2932_v2, 5  ;;  %v6906_v15 = vcombine.low %v5398_v36, %v5401_v11  ;;  %v6875_v19 = vrot.slane %v6857_v5, 9  ;;  %v5404_v22 = vrot.slane %v6858_v10, 5 }
 0x148   : > { %v2940_v14 = vrot.slane %v2938_v3, 5  ;;  %v2927_v47 = vsel %vm8368_vm2, %v2922_v7, %v2926_v59  ;;  %v2944_v17 = vrot.slane %v2942_v9, 4  ;;  %v2950_v24 = vrot.slane %v2948_v38, 5 }
 0x149   : > { %v6538_v20 = vcombine.low %v2917_v6, %v2927_v47  ;;  %v2935_v21 = vor.u32 %v2934_v13, %v2931_v8  ;;  %v5407_v25 = vrot.slane %v6859_v49, 5  ;;  %v5405_v28 = vsel %vm8468_vm5, %v6875_v19, %v5404_v22 }
 0x14a   : > { %v2945_v23 = vor.u32 %v2944_v17, %v2940_v14  ;;  %v5406_v31 = vrot.slane %v5404_v22, 4 }
 0x14b   : > { %7534 = vmatprep.mubr.bf16.mxu1 %v6538_v20  ;;  %v2936_v26 = vrot.slane %v2935_v21, 4 }
 0x14c   : > { %v2946_v32 = vrot.slane %v2945_v23, 4  ;;  %v5408_v35 = vsel %vm8468_vm5, %v5406_v31, %v5407_v25 }
 0x14d   : > { %7723 = vmatmul.mubr.bf16.gmra.mrb[24].mxu0 %v6905_v54  ;;  %v2941_v34 = vsel %vm8368_vm2, %v2936_v26, %v2940_v14  ;;  %v6907_v40 = vcombine.low %v5405_v28, %v5408_v35  ;;  %v9406_v54 = vld [vmem:[%s9523_s2] ss:$0 sm:$0xff] }
 0x14e   : > { %7726 = vmatprep.mubr.bf16.mxu0 %v6906_v15  ;;  %v2951_v39 = vsel %vm8368_vm2, %v2946_v32, %v2950_v24 }
 0x14f   : > { %v6539_v27 = vcombine.low %v2941_v34, %v2951_v39 }
 0x151   : > { %7535 = vmatmul.mubr.bf16.gmra.mrb[28].mxu1 %v6539_v27 }
 0x155   : > { %7727 = vmatmul.mubr.bf16.gmra.mrb[28].mxu0 %v6907_v40 }
 0x1ca   : > { %v7460_v37 = vpop.f32.mrb[0].mxu1 }
 0x1cb   : > { %v2329_v46 = vpop.f32.mrb[1].mxu1 }
 0x1cc   : > { %v7461_v52 = vpop.f32.mrb[2].mxu1 }
 0x1cd   : > { %v2332_v42 = vpop.f32.mrb[3].mxu1 }
 0x1d2   : > { %v7464_v43 = vpop.f32.mrb[4].mxu1 }
 0x1d3   : > { %v2345_v58 = vpop.f32.mrb[5].mxu1 }
 0x1d4   : > { %v7465_v18 = vpop.f32.mrb[6].mxu1 }
 0x1d5   : > { %v2348_v12 = vpop.f32.mrb[7].mxu1 }
 0x1da   : > { %v9387_v41 = vpop.f32.mrb[8].mxu1 }
 0x1db   : > { %v9389_v44 = vpop.f32.mrb[9].mxu1 }
 0x1dc   : > { %v9391_v4 = vpop.f32.mrb[10].mxu1 }
 0x1dd   : > { %v9393_v33 = vpop.f32.mrb[11].mxu1 }
 0x1e2   : > { %v9395_v45 = vpop.f32.mrb[12].mxu1 }
 0x1e3   : > { %v9397_v48 = vpop.f32.mrb[13].mxu1 }
 0x1e4   : > { %v9399_v50 = vpop.f32.mrb[14].mxu1 }
 0x1e5   : > { %v9401_v51 = vpop.f32.mrb[15].mxu1 }
 0x1f0   : > { %v7700_v53 = vpop.f32.mrb[0].mxu0 }
 0x1f1   : > { %v7746_v60 = vadd.f32 %v7700_v53, %v7460_v37  ;;  %v5604_v55 = vpop.f32.mrb[1].mxu0 }
 0x1f2   : > { %v7747_v29 = vadd.f32 %v5604_v55, %v2329_v46  ;;  %v7701_v57 = vpop.f32.mrb[2].mxu0 }
 0x1f3   : > { %v5836_v59 = vadd.f32 %v7746_v60, %v9406_v54  ;;  %v7748_v61 = vadd.f32 %v7701_v57, %v7461_v52  ;;  %v5607_v56 = vpop.f32.mrb[3].mxu0 }
 0x1f4   : > { %v5834_v62 = vadd.f32 %v7747_v29, %v9406_v54  ;;  %v7749_v63 = vadd.f32 %v5607_v56, %v2332_v42 }
 0x1f5   : > { %v5868_v0 = vadd.f32 3.0, %v5836_v59  ;;  %v5837_v16 = vadd.f32 %v7748_v61, %v9406_v54 }
 0x1f6   : > { %v5866_v30 = vadd.f32 3.0, %v5834_v62  ;;  %v5835_v36 = vadd.f32 %v7749_v63, %v9406_v54 }
 0x1f7   : > { %v5900_v1 = vmax.f32 %v5868_v0, 0.0  ;;  %v5869_v2 = vadd.f32 3.0, %v5837_v16 }
 0x1f8   : > { %v5898_v3 = vmax.f32 %v5866_v30, 0.0  ;;  %v5867_v5 = vadd.f32 3.0, %v5835_v36  ;;  %v7704_v6 = vpop.f32.mrb[4].mxu0 }
 0x1f9   : > { %v5932_v7 = vmin.f32 %v5900_v1, 6.0  ;;  %v5901_v8 = vmax.f32 %v5869_v2, 0.0  ;;  %v7750_v9 = vadd.f32 %v7704_v6, %v7464_v43  ;;  %v5620_v10 = vpop.f32.mrb[5].mxu0 }
 0x1fa   : > { %v5930_v11 = vmin.f32 %v5898_v3, 6.0  ;;  %v5899_v13 = vmax.f32 %v5867_v5, 0.0  ;;  %v7751_v14 = vadd.f32 %v5620_v10, %v2345_v58  ;;  %v7705_v38 = vpop.f32.mrb[6].mxu0 }
 0x1fb   : > { %v5964_v49 = vmul.f32 %v5932_v7, %v5836_v59  ;;  %v5933_v47 = vmin.f32 %v5901_v8, 6.0  ;;  %v5840_v15 = vadd.f32 %v7750_v9, %v9406_v54  ;;  %v7752_v17 = vadd.f32 %v7705_v38, %v7465_v18  ;;  %v5623_v19 = vpop.f32.mrb[7].mxu0 }
 0x1fc   : > { %v5962_v20 = vmul.f32 %v5930_v11, %v5834_v62  ;;  %v5931_v21 = vmin.f32 %v5899_v13, 6.0  ;;  %v5838_v22 = vadd.f32 %v7751_v14, %v9406_v54  ;;  %v7753_v23 = vadd.f32 %v5623_v19, %v2348_v12 }
 0x1fd   : > { %v5965_v24 = vmul.f32 %v5933_v47, %v5837_v16  ;;  %v5872_v25 = vadd.f32 3.0, %v5840_v15  ;;  %v5841_v26 = vadd.f32 %v7752_v17, %v9406_v54  ;;  %v5996_v28 = vmul.f32 0.16666667, %v5964_v49 }
 0x1fe   : > { %v5963_v31 = vmul.f32 %v5931_v21, %v5835_v36  ;;  %v5870_v32 = vadd.f32 3.0, %v5838_v22  ;;  %v5839_v34 = vadd.f32 %v7753_v23, %v9406_v54  ;;  %v5994_v35 = vmul.f32 0.16666667, %v5962_v20 }
 0x1ff   : > { %v5997_v39 = vmul.f32 0.16666667, %v5965_v24  ;;  %v5904_v40 = vmax.f32 %v5872_v25, 0.0  ;;  %v5873_v27 = vadd.f32 3.0, %v5841_v26 }
 0x200   : > { %v5995_v37 = vmul.f32 0.16666667, %v5963_v31  ;;  %v5902_v46 = vmax.f32 %v5870_v32, 0.0  ;;  %v5871_v52 = vadd.f32 3.0, %v5839_v34  ;;  %v7708_v42 = vpop.f32.mrb[8].mxu0 }
 0x201   : > { %v6995_v43 = vpack.c.bf16 %v5997_v39, %v5996_v28  ;;  %v5936_v58 = vmin.f32 %v5904_v40, 6.0  ;;  %v5905_v18 = vmax.f32 %v5873_v27, 0.0  ;;  %v7754_v12 = vadd.f32 %v7708_v42, %v9387_v41  ;;  %v5636_v53 = vpop.f32.mrb[9].mxu0 }
 0x202   : > { %v6990_v60 = vpack.c.bf16 %v5995_v37, %v5994_v35  ;;  %v5934_v55 = vmin.f32 %v5902_v46, 6.0  ;;  %v5903_v29 = vmax.f32 %v5871_v52, 0.0  ;;  %v7755_v57 = vadd.f32 %v5636_v53, %v9389_v44  ;;  %v7709_v59 = vpop.f32.mrb[10].mxu0 }
 0x203   : > { %7067 = vst [vmem:[%s9421_s11 + $0x8] sm:$0xff] %v6995_v43   ;;  %v5968_v61 = vmul.f32 %v5936_v58, %v5840_v15  ;;  %v5937_v56 = vmin.f32 %v5905_v18, 6.0  ;;  %v5844_v62 = vadd.f32 %v7754_v12, %v9406_v54  ;;  %v7756_v63 = vadd.f32 %v7709_v59, %v9391_v4  ;;  %v5639_v0 = vpop.f32.mrb[11].mxu0 }
 0x204   : > { %6991 = vst [vmem:[%s9421_s11] sm:$0xff] %v6990_v60   ;;  %v5966_v41 = vmul.f32 %v5934_v55, %v5838_v22  ;;  %v5935_v16 = vmin.f32 %v5903_v29, 6.0  ;;  %v5842_v30 = vadd.f32 %v7755_v57, %v9406_v54  ;;  %v7757_v44 = vadd.f32 %v5639_v0, %v9393_v33 }
 0x205   : > { %v6000_v36 = vmul.f32 0.16666667, %v5968_v61  ;;  %v5969_v1 = vmul.f32 %v5937_v56, %v5841_v26  ;;  %v5876_v2 = vadd.f32 3.0, %v5844_v62  ;;  %v5845_v3 = vadd.f32 %v7756_v63, %v9406_v54 }
 0x206   : > { %v5998_v5 = vmul.f32 0.16666667, %v5966_v41  ;;  %v5967_v6 = vmul.f32 %v5935_v16, %v5839_v34  ;;  %v5874_v7 = vadd.f32 3.0, %v5842_v30  ;;  %v5843_v8 = vadd.f32 %v7757_v44, %v9406_v54 }
 0x207   : > { %v6001_v4 = vmul.f32 0.16666667, %v5969_v1  ;;  %v5908_v10 = vmax.f32 %v5876_v2, 0.0  ;;  %v5877_v11 = vadd.f32 3.0, %v5845_v3 }
 0x208   : > { %v5999_v14 = vmul.f32 0.16666667, %v5967_v6  ;;  %v5906_v38 = vmax.f32 %v5874_v7, 0.0  ;;  %v5875_v49 = vadd.f32 3.0, %v5843_v8  ;;  %v7712_v33 = vpop.f32.mrb[12].mxu0 }
 0x209   : > { %v7005_v15 = vpack.c.bf16 %v6001_v4, %v6000_v36  ;;  %v5940_v17 = vmin.f32 %v5908_v10, 6.0  ;;  %v5909_v19 = vmax.f32 %v5877_v11, 0.0  ;;  %v7758_v20 = vadd.f32 %v7712_v33, %v9395_v45  ;;  %v5652_v21 = vpop.f32.mrb[13].mxu0 }
 0x20a   : > { %v7524_v9 = vpop.f32.mrb[16].mxu1  ;;  %v7000_v23 = vpack.c.bf16 %v5999_v14, %v5998_v5  ;;  %v5938_v24 = vmin.f32 %v5906_v38, 6.0  ;;  %v5907_v25 = vmax.f32 %v5875_v49, 0.0  ;;  %v7759_v26 = vadd.f32 %v5652_v21, %v9397_v48  ;;  %v7713_v28 = vpop.f32.mrb[14].mxu0 }
 0x20b   : > { %v3211_v13 = vpop.f32.mrb[17].mxu1  ;;  %7069 = vst [vmem:[%s9421_s11 + $0x18] sm:$0xff] %v7005_v15   ;;  %v5972_v31 = vmul.f32 %v5940_v17, %v5844_v62  ;;  %v5941_v32 = vmin.f32 %v5909_v19, 6.0  ;;  %v5848_v34 = vadd.f32 %v7758_v20, %v9406_v54  ;;  %v7760_v35 = vadd.f32 %v7713_v28, %v9399_v50  ;;  %v5655_v39 = vpop.f32.mrb[15].mxu0 }
 0x20c   : > { %v7525_v47 = vpop.f32.mrb[18].mxu1  ;;  %7068 = vst [vmem:[%s9421_s11 + $0x10] sm:$0xff] %v7000_v23   ;;  %v5970_v40 = vmul.f32 %v5938_v24, %v5842_v30  ;;  %v5939_v27 = vmin.f32 %v5907_v25, 6.0  ;;  %v5846_v45 = vadd.f32 %v7759_v26, %v9406_v54  ;;  %v7761_v37 = vadd.f32 %v5655_v39, %v9401_v51 }
 0x20d   : > { %v3214_v22 = vpop.f32.mrb[19].mxu1  ;;  %v5973_v46 = vmul.f32 %v5941_v32, %v5845_v3  ;;  %v5880_v52 = vadd.f32 3.0, %v5848_v34  ;;  %v5849_v48 = vadd.f32 %v7760_v35, %v9406_v54  ;;  %v6004_v42 = vmul.f32 0.16666667, %v5972_v31 }
 0x20e   : > { %v5971_v43 = vmul.f32 %v5939_v27, %v5843_v8  ;;  %v5878_v58 = vadd.f32 3.0, %v5846_v45  ;;  %v5847_v18 = vadd.f32 %v7761_v37, %v9406_v54  ;;  %v6002_v12 = vmul.f32 0.16666667, %v5970_v40 }
 0x20f   : > { %v6005_v53 = vmul.f32 0.16666667, %v5973_v46  ;;  %v5912_v50 = vmax.f32 %v5880_v52, 0.0  ;;  %v5881_v60 = vadd.f32 3.0, %v5849_v48 }
 0x210   : > { %v6003_v55 = vmul.f32 0.16666667, %v5971_v43  ;;  %v5910_v29 = vmax.f32 %v5878_v58, 0.0  ;;  %v5879_v57 = vadd.f32 3.0, %v5847_v18  ;;  %v7716_v59 = vpop.f32.mrb[16].mxu0 }
 0x211   : > { %v7015_v51 = vpack.c.bf16 %v6005_v53, %v6004_v42  ;;  %v5944_v56 = vmin.f32 %v5912_v50, 6.0  ;;  %v5913_v62 = vmax.f32 %v5881_v60, 0.0  ;;  %v7762_v63 = vadd.f32 %v7716_v59, %v7524_v9  ;;  %v5668_v0 = vpop.f32.mrb[17].mxu0 }
 0x212   : > { %v7528_v61 = vpop.f32.mrb[20].mxu1  ;;  %v7010_v16 = vpack.c.bf16 %v6003_v55, %v6002_v12  ;;  %v5942_v30 = vmin.f32 %v5910_v29, 6.0  ;;  %v5911_v44 = vmax.f32 %v5879_v57, 0.0  ;;  %v7763_v36 = vadd.f32 %v5668_v0, %v3211_v13  ;;  %v7717_v1 = vpop.f32.mrb[18].mxu0 }
 0x213   : > { %v3227_v41 = vpop.f32.mrb[21].mxu1  ;;  %7071 = vst [vmem:[%s9421_s11 + $0x28] sm:$0xff] %v7015_v51   ;;  %v5976_v3 = vmul.f32 %v5944_v56, %v5848_v34  ;;  %v5945_v5 = vmin.f32 %v5913_v62, 6.0  ;;  %v5852_v6 = vadd.f32 %v7762_v63, %v9406_v54  ;;  %v7764_v7 = vadd.f32 %v7717_v1, %v7525_v47  ;;  %v5671_v8 = vpop.f32.mrb[19].mxu0 }
 0x214   : > { %v7529_v2 = vpop.f32.mrb[22].mxu1  ;;  %7070 = vst [vmem:[%s9421_s11 + $0x20] sm:$0xff] %v7010_v16   ;;  %v5974_v10 = vmul.f32 %v5942_v30, %v5846_v45  ;;  %v5943_v9 = vmin.f32 %v5911_v44, 6.0  ;;  %v5850_v11 = vadd.f32 %v7763_v36, %v9406_v54  ;;  %v7765_v14 = vadd.f32 %v5671_v8, %v3214_v22 }
 0x215   : > { %v3230_v4 = vpop.f32.mrb[23].mxu1  ;;  %v5977_v38 = vmul.f32 %v5945_v5, %v5849_v48  ;;  %v5884_v49 = vadd.f32 3.0, %v5852_v6  ;;  %v5853_v13 = vadd.f32 %v7764_v7, %v9406_v54  ;;  %v6008_v33 = vmul.f32 0.16666667, %v5976_v3 }
 0x216   : > { %v5975_v15 = vmul.f32 %v5943_v9, %v5847_v18  ;;  %v5882_v17 = vadd.f32 3.0, %v5850_v11  ;;  %v5851_v19 = vadd.f32 %v7765_v14, %v9406_v54  ;;  %v6006_v20 = vmul.f32 0.16666667, %v5974_v10 }
 0x217   : > { %v6009_v21 = vmul.f32 0.16666667, %v5977_v38  ;;  %v5916_v47 = vmax.f32 %v5884_v49, 0.0  ;;  %v5885_v23 = vadd.f32 3.0, %v5853_v13 }
 0x218   : > { %v6007_v24 = vmul.f32 0.16666667, %v5975_v15  ;;  %v5914_v25 = vmax.f32 %v5882_v17, 0.0  ;;  %v5883_v26 = vadd.f32 3.0, %v5851_v19  ;;  %v7720_v28 = vpop.f32.mrb[20].mxu0 }
 0x219   : > { %v7025_v31 = vpack.c.bf16 %v6009_v21, %v6008_v33  ;;  %v5948_v22 = vmin.f32 %v5916_v47, 6.0  ;;  %v5917_v32 = vmax.f32 %v5885_v23, 0.0  ;;  %v7766_v34 = vadd.f32 %v7720_v28, %v7528_v61  ;;  %v5684_v35 = vpop.f32.mrb[21].mxu0 }
 0x21a   : > { %v7020_v39 = vpack.c.bf16 %v6007_v24, %v6006_v20  ;;  %v5946_v40 = vmin.f32 %v5914_v25, 6.0  ;;  %v5915_v27 = vmax.f32 %v5883_v26, 0.0  ;;  %v7767_v45 = vadd.f32 %v5684_v35, %v3227_v41  ;;  %v7721_v37 = vpop.f32.mrb[22].mxu0  ;;  %v7532_v50 = vpop.f32.mrb[24].mxu1 }
 0x21b   : > { %7073 = vst [vmem:[%s9421_s11 + $0x38] sm:$0xff] %v7025_v31   ;;  %v5980_v46 = vmul.f32 %v5948_v22, %v5852_v6  ;;  %v5949_v52 = vmin.f32 %v5917_v32, 6.0  ;;  %v5856_v48 = vadd.f32 %v7766_v34, %v9406_v54  ;;  %v7768_v42 = vadd.f32 %v7721_v37, %v7529_v2  ;;  %v5687_v43 = vpop.f32.mrb[23].mxu0  ;;  %v3243_v59 = vpop.f32.mrb[25].mxu1 }
 0x21c   : > { %7072 = vst [vmem:[%s9421_s11 + $0x30] sm:$0xff] %v7020_v39   ;;  %v5978_v58 = vmul.f32 %v5946_v40, %v5850_v11  ;;  %v5947_v18 = vmin.f32 %v5915_v27, 6.0  ;;  %v5854_v12 = vadd.f32 %v7767_v45, %v9406_v54  ;;  %v7769_v53 = vadd.f32 %v5687_v43, %v3230_v4  ;;  %v7533_v63 = vpop.f32.mrb[26].mxu1 }
 0x21d   : > { %v6012_v60 = vmul.f32 0.16666667, %v5980_v46  ;;  %v5981_v55 = vmul.f32 %v5949_v52, %v5853_v13  ;;  %v5888_v29 = vadd.f32 3.0, %v5856_v48  ;;  %v5857_v57 = vadd.f32 %v7768_v42, %v9406_v54  ;;  %v3246_v30 = vpop.f32.mrb[27].mxu1 }
 0x21e   : > { %v6010_v61 = vmul.f32 0.16666667, %v5978_v58  ;;  %v5979_v51 = vmul.f32 %v5947_v18, %v5851_v19  ;;  %v5886_v56 = vadd.f32 3.0, %v5854_v12  ;;  %v5855_v62 = vadd.f32 %v7769_v53, %v9406_v54 }
 0x21f   : > { %v6013_v0 = vmul.f32 0.16666667, %v5981_v55  ;;  %v5920_v41 = vmax.f32 %v5888_v29, 0.0  ;;  %v5889_v16 = vadd.f32 3.0, %v5857_v57 }
 0x220   : > { %v6011_v44 = vmul.f32 0.16666667, %v5979_v51  ;;  %v5918_v36 = vmax.f32 %v5886_v56, 0.0  ;;  %v5887_v1 = vadd.f32 3.0, %v5855_v62  ;;  %v7724_v2 = vpop.f32.mrb[24].mxu0 }
 0x221   : > { %v7035_v3 = vpack.c.bf16 %v6013_v0, %v6012_v60  ;;  %v5952_v5 = vmin.f32 %v5920_v41, 6.0  ;;  %v5921_v6 = vmax.f32 %v5889_v16, 0.0  ;;  %v7770_v7 = vadd.f32 %v7724_v2, %v7532_v50  ;;  %v5700_v8 = vpop.f32.mrb[25].mxu0 }
 0x222   : > { %v7030_v4 = vpack.c.bf16 %v6011_v44, %v6010_v61  ;;  %v5950_v10 = vmin.f32 %v5918_v36, 6.0  ;;  %v5919_v9 = vmax.f32 %v5887_v1, 0.0  ;;  %v7771_v11 = vadd.f32 %v5700_v8, %v3243_v59  ;;  %v7725_v14 = vpop.f32.mrb[26].mxu0 }
 0x223   : > { %7075 = vst [vmem:[%s9421_s11 + $0x48] sm:$0xff] %v7035_v3   ;;  %v5984_v38 = vmul.f32 %v5952_v5, %v5856_v48  ;;  %v5953_v49 = vmin.f32 %v5921_v6, 6.0  ;;  %v5860_v13 = vadd.f32 %v7770_v7, %v9406_v54  ;;  %v7772_v33 = vadd.f32 %v7725_v14, %v7533_v63  ;;  %v5703_v15 = vpop.f32.mrb[27].mxu0 }
 0x224   : > { %7074 = vst [vmem:[%s9421_s11 + $0x40] sm:$0xff] %v7030_v4   ;;  %v5982_v17 = vmul.f32 %v5950_v10, %v5854_v12  ;;  %v5951_v19 = vmin.f32 %v5919_v9, 6.0  ;;  %v5858_v20 = vadd.f32 %v7771_v11, %v9406_v54  ;;  %v7773_v21 = vadd.f32 %v5703_v15, %v3246_v30  ;;  %v7536_v45 = vpop.f32.mrb[28].mxu1 }
 0x225   : > { %v5985_v47 = vmul.f32 %v5953_v49, %v5857_v57  ;;  %v5892_v23 = vadd.f32 3.0, %v5860_v13  ;;  %v5861_v24 = vadd.f32 %v7772_v33, %v9406_v54  ;;  %v6016_v25 = vmul.f32 0.16666667, %v5984_v38  ;;  %v3259_v43 = vpop.f32.mrb[29].mxu1 }
 0x226   : > { %v5983_v26 = vmul.f32 %v5951_v19, %v5855_v62  ;;  %v5890_v28 = vadd.f32 3.0, %v5858_v20  ;;  %v5859_v31 = vadd.f32 %v7773_v21, %v9406_v54  ;;  %v6014_v22 = vmul.f32 0.16666667, %v5982_v17  ;;  %v7537_v60 = vpop.f32.mrb[30].mxu1 }
 0x227   : > { %v6017_v32 = vmul.f32 0.16666667, %v5985_v47  ;;  %v5924_v34 = vmax.f32 %v5892_v23, 0.0  ;;  %v5893_v35 = vadd.f32 3.0, %v5861_v24  ;;  %v3262_v51 = vpop.f32.mrb[31].mxu1 }
 0x228   : > { %v6015_v39 = vmul.f32 0.16666667, %v5983_v26  ;;  %v5922_v40 = vmax.f32 %v5890_v28, 0.0  ;;  %v5891_v27 = vadd.f32 3.0, %v5859_v31  ;;  %v7728_v37 = vpop.f32.mrb[28].mxu0 }
 0x229   : > { %v7045_v46 = vpack.c.bf16 %v6017_v32, %v6016_v25  ;;  %v5956_v52 = vmin.f32 %v5924_v34, 6.0  ;;  %v5925_v48 = vmax.f32 %v5893_v35, 0.0  ;;  %v7774_v42 = vadd.f32 %v7728_v37, %v7536_v45  ;;  %v5716_v58 = vpop.f32.mrb[29].mxu0 }
 0x22a   : > { %v7040_v18 = vpack.c.bf16 %v6015_v39, %v6014_v22  ;;  %v5954_v12 = vmin.f32 %v5922_v40, 6.0  ;;  %v5923_v53 = vmax.f32 %v5891_v27, 0.0  ;;  %v7775_v50 = vadd.f32 %v5716_v58, %v3259_v43  ;;  %v7729_v55 = vpop.f32.mrb[30].mxu0 }
 0x22b   : > { %7077 = vst [vmem:[%s9421_s11 + $0x58] sm:$0xff] %v7045_v46   ;;  %v5988_v29 = vmul.f32 %v5956_v52, %v5860_v13  ;;  %v5957_v57 = vmin.f32 %v5925_v48, 6.0  ;;  %v5864_v59 = vadd.f32 %v7774_v42, %v9406_v54  ;;  %v7776_v61 = vadd.f32 %v7729_v55, %v7537_v60  ;;  %v5719_v56 = vpop.f32.mrb[31].mxu0 }
 0x22c   : > { %7076 = vst [vmem:[%s9421_s11 + $0x50] sm:$0xff] %v7040_v18   ;;  %v5986_v62 = vmul.f32 %v5954_v12, %v5858_v20  ;;  %v5955_v63 = vmin.f32 %v5923_v53, 6.0  ;;  %v5862_v0 = vadd.f32 %v7775_v50, %v9406_v54  ;;  %v7777_v41 = vadd.f32 %v5719_v56, %v3262_v51 }
 0x22d   : > { %v5989_v16 = vmul.f32 %v5957_v57, %v5861_v24  ;;  %v5896_v30 = vadd.f32 3.0, %v5864_v59  ;;  %v5865_v44 = vadd.f32 %v7776_v61, %v9406_v54  ;;  %v6020_v3 = vmul.f32 0.16666667, %v5988_v29 }
 0x22e   : > { %v5987_v36 = vmul.f32 %v5955_v63, %v5859_v31  ;;  %v5894_v1 = vadd.f32 3.0, %v5862_v0  ;;  %v5863_v2 = vadd.f32 %v7777_v41, %v9406_v54  ;;  %v6018_v8 = vmul.f32 0.16666667, %v5986_v62 }
 0x22f   : > { %v6021_v5 = vmul.f32 0.16666667, %v5989_v16  ;;  %v5928_v6 = vmax.f32 %v5896_v30, 0.0  ;;  %v5897_v7 = vadd.f32 3.0, %v5865_v44 }
 0x230   : > { %v6019_v4 = vmul.f32 0.16666667, %v5987_v36  ;;  %v5926_v10 = vmax.f32 %v5894_v1, 0.0  ;;  %v5895_v9 = vadd.f32 3.0, %v5863_v2 }
 0x231   : > { %v7055_v11 = vpack.c.bf16 %v6021_v5, %v6020_v3  ;;  %v5960_v14 = vmin.f32 %v5928_v6, 6.0  ;;  %v5929_v38 = vmax.f32 %v5897_v7, 0.0 }
 0x232   : > { %v7050_v49 = vpack.c.bf16 %v6019_v4, %v6018_v8  ;;  %v5958_v13 = vmin.f32 %v5926_v10, 6.0  ;;  %v5927_v33 = vmax.f32 %v5895_v9, 0.0 }
 0x233   : > { %7079 = vst [vmem:[%s9421_s11 + $0x68] sm:$0xff] %v7055_v11   ;;  %v5992_v15 = vmul.f32 %v5960_v14, %v5864_v59  ;;  %v5961_v54 = vmin.f32 %v5929_v38, 6.0 }
 0x234   : > { %7078 = vst [vmem:[%s9421_s11 + $0x60] sm:$0xff] %v7050_v49   ;;  %v5990_v17 = vmul.f32 %v5958_v13, %v5862_v0  ;;  %v5959_v19 = vmin.f32 %v5927_v33, 6.0 }
 0x235   : > { %v5993_v20 = vmul.f32 %v5961_v54, %v5865_v44  ;;  %v6024_v47 = vmul.f32 0.16666667, %v5992_v15 }
 0x236   : > { %v5991_v21 = vmul.f32 %v5959_v19, %v5863_v2  ;;  %v6022_v24 = vmul.f32 0.16666667, %v5990_v17 }
 0x237   : > { %v6025_v23 = vmul.f32 0.16666667, %v5993_v20 }
 0x238   : > { %v6023_v25 = vmul.f32 0.16666667, %v5991_v21 }
 0x239   : > { %v7065_v26 = vpack.c.bf16 %v6025_v23, %v6024_v47 }
 0x23a   : > { %v7060_v28 = vpack.c.bf16 %v6023_v25, %v6022_v24 }
 0x23b   : > { %7081 = vst [vmem:[%s9421_s11 + $0x78] sm:$0xff] %v7065_v26  }
 0x23c   : > { %7080 = vst [vmem:[%s9421_s11 + $0x70] sm:$0xff] %v7060_v28  }
 0x23d   : > { %8185 = shalt.err (!%p8182_p3)
}
 0x23e   : > { %s8186_s30 = scalar_lea.hbm %s9472_s25, 2048  ;;  %s8190_s7 = scalar_lea.hbm %s9524_s3, 4096 }
 0x23f   : > { %p8187_p4 = scmp.ne.s32.totalorder %s9472_s25, %s8186_s30  ;;  %p8191_p9 = scmp.lt.u32.totalorder %s9472_s25, %s9524_s3 }
 0x240   : > { %p8192_p10 = scmp.lt.u32.totalorder %s8190_s7, %s8186_s30  ;;  %p8194_p12 = scmp.lt.u32.totalorder %s8186_s30, %s9472_s25 }
 0x241   : > { %p8188_p7 = pnand %p8187_p4, %p8297_p5 }
 0x242   : > { %p8193_p11 = por %p8192_p10, %p8191_p9 }
 0x243   : > { %p8189_p8 = pneg %p8188_p7 }
 0x244   : > { %p8195_p13 = por %p8194_p12, %p8193_p11 }
 0x246   : > { %p8196_p0 = pnand %p8195_p13, %p8189_p8 }
 0x248   : > { %8199 = shalt.err (!%p8196_p0)
}
 0x249   : > { %s8237_s9 = smov 64   ;;  %s8238_s10 = smov 4  }
 0x24a   : > { %8003 = dma.vmem_to_hbm [thread:$0]  (%p8297_p5), %s9474_s19, 2048, %s9472_s25, %s9480_s16, %s8237_s9, %s8237_s9, %s8238_s10  }
 0x24b PF: > { %p8009_p1 = scmp.ge.s32.totalorder %s8234_s15, 2  ;;  %s6215_s11 = sand.u32 1, %s8222_s12  }
 0x24c   : > { %s6216_s17 = scalar_lea.sflag [#allocation4], %s6215_s11 }
 0x24d   : > { %p8006_p2 = pnand %p8009_p1, %p8301_p6 }
 0x24f   : > { %8217 = dma.done.wait (!%p8006_p2), %s6216_s17, 2048  }
 0x250   : > { %8219 = vsyncadd (!%p8006_p2), %s6216_s17, 4294965248  ;;  %p13_p3 = scmp.ge.s32.totalorder %s8284_s18, 4   ;;  %s9531_s12 = smov %s8226_s13 }
 0x251   : > { %s9532_s13 = smov %s8230_s14  ;;  %s9533_s14 = smov %s8295_s21 }
 0x252   : > { %s9534_s15 = smov %s8284_s18  ;;  %15 = sbr.rel (!%p13_p3) target bundleno = 3 (0x3), region = 77 }
 0x259   :  { %6221 = vsyncpa [#allocation4], 1 }
 0x25a   :  { %6223 = vsyncpa [#allocation4 + $0x1], 1 }

</bundles_post_ra>
